<compile_context>
chip_gen: v5e
topology: v5e:2x2
jax: 0.10.0
libtpu: 0.0.40
codegen_flags: <defaults>
</compile_context>

<pallas_src>
import functools
import math

import numpy as np

import jax
import jax.numpy as jnp
from jax import lax
from jax.experimental import pallas as pl
from jax.experimental.pallas import tpu as pltpu

# ----------------------------- model dimensions ------------------------------
D_MODEL  = 32                      # block width
N_HEADS  = 4
HEAD_DIM = D_MODEL // N_HEADS      # 8
MLP_HID  = 4 * D_MODEL             # 128
D_INNER  = 2 * D_MODEL             # 64   (mamba2 expansion)
M_HEADS  = 4                       # mamba2 heads
HEADDIM  = D_INNER // M_HEADS      # 16
D_STATE  = 16
D_CONV   = 4
C_CONV   = D_INNER + 2 * D_STATE                   # 96
C_PAD    = 128                                     # conv channels padded lane-dense
D_INPROJ = 2 * D_INNER + 2 * D_STATE + M_HEADS     # 164
LN_EPS   = 1e-5
CONV_CACHE_ROWS = 8                                # 3 real state rows, 8-row aligned


# ------------------------------ in-kernel helpers -----------------------------
def _layernorm(x, g, b, eps):
    mu = jnp.mean(x, axis=-1, keepdims=True)
    xc = x - mu
    var = jnp.mean(xc * xc, axis=-1, keepdims=True)
    return xc * lax.rsqrt(var + eps) * g + b


def _rmsnorm(x, g, eps):
    var = jnp.mean(x * x, axis=-1, keepdims=True)
    return x * lax.rsqrt(var + eps) * g


def _silu(x):
    return x * jax.nn.sigmoid(x)


def _softplus(x):
    # numerically safe softplus (log1p(exp(x)) overflows for x >~ 88)
    return jnp.where(x > 20.0, x, jnp.log1p(jnp.exp(jnp.minimum(x, 20.0))))


# ------------------------------- fused kernel ---------------------------------
def _time_space_kernel(x_ref, ln1g_ref, ln1b_ref, wqkv_ref, bqkv_ref,
                       cos_ref, sin_ref, rot_ref, wo_ref, bo_ref,
                       ln2g_ref, ln2b_ref, wm1_ref, bm1_ref, wm2_ref, bm2_ref,
                       mng_ref, wzdt_ref, bzdt_ref, wxbc_ref, csel_ref,
                       cw_ref, cb_ref, cs_ref, ss_ref, a_ref, drep_ref,
                       expand_ref, gg_ref, wout_ref,
                       y_ref, ncs_ref, nss_ref,
                       attn_sc, y_sc,
                       *, n_heads, head_dim, m_heads, head_p, d_state, d_conv, eps):
    f32 = jnp.float32
    L = x_ref.shape[0]
    d_model = x_ref.shape[1]
    d_inner = m_heads * head_p

    x = x_ref[...].astype(f32)                                            # (L, D)

    # ========================= spatial (attention) block =========================
    xn = _layernorm(x, ln1g_ref[...], ln1b_ref[...], eps)
    qkv = jnp.dot(xn, wqkv_ref[...], preferred_element_type=f32) + bqkv_ref[...]
    q = qkv[:, :d_model]                     # Q columns pre-scaled by 1/sqrt(head_dim)
    k = qkv[:, d_model:2 * d_model]
    v = qkv[:, 2 * d_model:]

    # full-width RoPE: rotate-half expressed as a block-diagonal signed permutation matmul
    cos = cos_ref[...]
    sin = sin_ref[...]
    R = rot_ref[...]
    q = q * cos + jnp.dot(q, R, preferred_element_type=f32) * sin
    k = k * cos + jnp.dot(k, R, preferred_element_type=f32) * sin

    # per-head score matmuls, ONE softmax over the sublane-stacked (n_heads*L, L) scores
    scores = []
    for h in range(n_heads):
        lo = h * head_dim
        scores.append(jnp.dot(q[:, lo:lo + head_dim], k[:, lo:lo + head_dim].T,
                              preferred_element_type=f32))
    s_all = jnp.concatenate(scores, axis=0)                               # (nh*L, L)
    s_max = jnp.max(s_all, axis=-1, keepdims=True)
    p_exp = jnp.exp(s_all - s_max)
    p_all = p_exp / jnp.sum(p_exp, axis=-1, keepdims=True)                # exact division

    for h in range(n_heads):                 # PV matmuls -> scratch at static lane offsets
        lo = h * head_dim
        attn_sc[:, lo:lo + head_dim] = jnp.dot(
            p_all[h * L:(h + 1) * L], v[:, lo:lo + head_dim],
            preferred_element_type=f32)

    attn = jnp.dot(attn_sc[...], wo_ref[...], preferred_element_type=f32) + bo_ref[...]
    x1 = x + attn

    xn2 = _layernorm(x1, ln2g_ref[...], ln2b_ref[...], eps)
    h1 = jax.nn.gelu(jnp.dot(xn2, wm1_ref[...], preferred_element_type=f32)
                     + bm1_ref[...])
    xs_out = x1 + jnp.dot(h1, wm2_ref[...], preferred_element_type=f32) + bm2_ref[...]

    # ============================== mamba2 block =================================
    xm = _rmsnorm(xs_out, mng_ref[...], eps)
    zdt = jnp.dot(xm, wzdt_ref[...], preferred_element_type=f32) + bzdt_ref[...]   # (L,128)
    xbc = jnp.dot(xm, wxbc_ref[...], preferred_element_type=f32)                    # (L,128)
    z = zdt[:, :d_inner]                                                  # (L, d_inner)
    dt = _softplus(zdt[:, d_inner:d_inner + m_heads])                     # (L, nh)  (bias folded)

    # causal depthwise conv: 8-aligned state + ONE selection matmul (also emits new cache rows)
    ext = jnp.concatenate([cs_ref[...].astype(f32), xbc], axis=0)         # (8+L, 128)
    shifted = jnp.dot(csel_ref[...], ext, preferred_element_type=f32)     # (K*L+8, 128)
    cw = cw_ref[...]                                                      # (K, 128)
    conv = cb_ref[...]
    for kk in range(d_conv):
        conv = conv + shifted[kk * L:(kk + 1) * L] * cw[kk:kk + 1, :]
    xbc_c = _silu(conv)                                                   # (L, 128)
    ncs_ref[...] = shifted[d_conv * L:d_conv * L + CONV_CACHE_ROWS].astype(ncs_ref.dtype)

    xs = xbc_c[:, :d_inner]                                               # (L, d_inner)
    Bm = xbc_c[:, d_inner:d_inner + d_state]                              # (L, N)
    Cm = xbc_c[:, d_inner + d_state:d_inner + 2 * d_state]                # (L, N)

    # ---- SSD (quadratic form), exps batched across heads ----
    A_row = a_ref[...]                                                    # (1, nh), negative
    t_idx = lax.broadcasted_iota(jnp.int32, (L, L), 0)
    s_idx = lax.broadcasted_iota(jnp.int32, (L, L), 1)
    causal = s_idx <= t_idx
    causal_f = causal.astype(f32)

    cum = jnp.dot(causal_f, dt, preferred_element_type=f32)               # (L, nh) incl. cumsum
    cumA = cum * A_row                                                    # (L, nh)
    cumA_T = jnp.transpose(cumA)                                          # (nh, L)   once
    dt_T = jnp.transpose(dt)                                              # (nh, L)   once

    diffs = [jnp.where(causal, cumA[:, h:h + 1] - cumA_T[h:h + 1, :], 0.0)
             for h in range(m_heads)]
    decay_all = jnp.exp(jnp.concatenate(diffs, axis=0))                   # (nh*L, L)  ONE exp
    CBc = jnp.dot(Cm, Bm.T, preferred_element_type=f32) * causal_f        # (L, L) shared, masked

    for h in range(m_heads):                 # per-head PV matmul -> scratch at lane offsets
        Mh = decay_all[h * L:(h + 1) * L] * CBc * dt_T[h:h + 1, :]
        y_sc[:, h * head_p:(h + 1) * head_p] = jnp.dot(
            Mh, xs[:, h * head_p:(h + 1) * head_p], preferred_element_type=f32)

    expand = expand_ref[...]                                              # (nh, d_inner) 0/1
    h0T = ss_ref[...].astype(f32)                                         # (N, d_inner): h0^T, heads on lanes
    total = jnp.sum(dt, axis=0, keepdims=True)                            # (1, nh)
    exp_acum = jnp.exp(cumA)                                              # (L, nh)
    decay_end = jnp.exp(A_row * total - cumA)                             # (L, nh)
    exp_atot = jnp.exp(A_row * total)                                     # (1, nh)

    y = (y_sc[...]
         + xs * drep_ref[...]                                                         # D skip
         + jnp.dot(exp_acum, expand, preferred_element_type=f32)                      # init state
           * jnp.dot(Cm, h0T, preferred_element_type=f32))                            # (L, d_inner)

    # final SSM state (all heads at once): h_new^T[n, h*P+p] = sum_t w_h[t] x_h[t,p] B[t,n] + e^{A T} h0^T
    xw = xs * jnp.dot(decay_end * dt, expand, preferred_element_type=f32)
    h_new = (jnp.dot(Bm.T, xw, preferred_element_type=f32)
             + jnp.dot(exp_atot, expand, preferred_element_type=f32) * h0T)
    nss_ref[...] = h_new.astype(nss_ref.dtype)

    # gated RMSNorm + out_proj + residual
    gn = _rmsnorm(y * _silu(z), gg_ref[...], eps)
    out = jnp.dot(gn, wout_ref[...], preferred_element_type=f32)
    y_ref[...] = (xs_out + out).astype(y_ref.dtype)


# ------------------------------ pallas wrapper --------------------------------
def _rep2(shape):
    # weight tile replicated across the batch grid (all 2-D here)
    return pl.BlockSpec(shape, lambda b: (0, 0))


def _make_conv_selection(L, d_conv):
    """Selection matrix: (d_conv*L + 8, 8 + L).

    Rows [k*L + t] pick xpad[t + k] out of ext = concat([state8, xBC]) where the real
    state rows sit at ext rows 0..d_conv-2 and xBC at rows 8..8+L-1.  The last 8 rows
    emit the new conv cache (raw xBC rows L-(d_conv-1)..L-1 at rows 0..d_conv-2).
    """
    n_state = d_conv - 1
    sel = np.zeros((d_conv * L + CONV_CACHE_ROWS, CONV_CACHE_ROWS + L), np.float32)
    for k in range(d_conv):
        for t in range(L):
            m = t + k
            col = m if m < n_state else m + (CONV_CACHE_ROWS - n_state)
            sel[k * L + t, col] = 1.0
    for m in range(n_state):
        sel[d_conv * L + m, CONV_CACHE_ROWS + L - n_state + m] = 1.0
    return jnp.asarray(sel)


def time_space_block(x, p, H, W, rotary_emb=None, cache=None):
    """x: (B, L, D) with L = H*W.  cache: (conv_state (B,8,128), ssm_state (B,16,64))."""
    B, L, Dd = x.shape
    assert L == H * W
    if cache is None:
        cache = (jnp.zeros((B, CONV_CACHE_ROWS, C_PAD), jnp.float32),
                 jnp.zeros((B, D_STATE, D_INNER), jnp.float32))
    conv_state, ssm_state = cache

    # ---- derived, layout-friendly parameter tensors (tiny XLA-level plumbing) ----
    scale = 1.0 / math.sqrt(HEAD_DIM)
    w_qkv = p["w_qkv"].at[:, :D_MODEL].multiply(scale)                 # fold scale into Q
    b_qkv = p["b_qkv"].at[:D_MODEL].multiply(scale).reshape(1, 3 * D_MODEL)

    if rotary_emb is None:
        cos = jnp.ones((L, HEAD_DIM), jnp.float32)
        sin = jnp.zeros((L, HEAD_DIM), jnp.float32)
    else:
        cos, sin = rotary_emb
    cos_f = jnp.tile(cos, (1, N_HEADS))                                # (L, D)
    sin_f = jnp.tile(sin, (1, N_HEADS))

    # rotate-half as a block-diagonal signed permutation: (q @ R) == rotate_half(q)
    half = HEAD_DIM // 2
    r1 = jnp.zeros((HEAD_DIM, HEAD_DIM), jnp.float32)
    r1 = r1.at[half:, :half].set(-jnp.eye(half, dtype=jnp.float32))
    r1 = r1.at[:half, half:].set(jnp.eye(half, dtype=jnp.float32))
    rot_mat = jnp.kron(jnp.eye(N_HEADS, dtype=jnp.float32), r1)        # (D, D)

    # mamba2: in_proj split into (z | dt) and channel-padded xBC pieces; dt_bias folded as bias
    w_zdt = (jnp.zeros((D_MODEL, C_PAD), jnp.float32)
             .at[:, :D_INNER].set(p["w_in_z"])
             .at[:, D_INNER:D_INNER + M_HEADS].set(p["w_in_dt"]))
    b_zdt = jnp.zeros((1, C_PAD), jnp.float32).at[0, D_INNER:D_INNER + M_HEADS].set(p["dt_bias"])
    w_xbc = jnp.zeros((D_MODEL, C_PAD), jnp.float32).at[:, :C_CONV].set(p["w_in_xbc"])
    conv_w = jnp.zeros((D_CONV, C_PAD), jnp.float32).at[:, :C_CONV].set(p["conv_w"])
    conv_b = jnp.zeros((1, C_PAD), jnp.float32).at[0, :C_CONV].set(p["conv_b"])
    conv_sel = _make_conv_selection(L, D_CONV)

    A = (-jnp.exp(p["A_log"])).reshape(1, M_HEADS)                     # (1, nh) VMEM row
    d_rep = jnp.repeat(p["Dp"], HEADDIM).reshape(1, D_INNER)           # lane-expanded D
    expand = jnp.kron(jnp.eye(M_HEADS, dtype=jnp.float32),
                      jnp.ones((1, HEADDIM), jnp.float32))             # (nh, d_inner)

    xspec = pl.BlockSpec((None, L, Dd), lambda b: (b, 0, 0))
    csspec = pl.BlockSpec((None, CONV_CACHE_ROWS, C_PAD), lambda b: (b, 0, 0))
    ssspec = pl.BlockSpec((None, D_STATE, D_INNER), lambda b: (b, 0, 0))

    y, new_conv_state, new_ssm_state = pl.pallas_call(
        functools.partial(_time_space_kernel, n_heads=N_HEADS, head_dim=HEAD_DIM,
                          m_heads=M_HEADS, head_p=HEADDIM, d_state=D_STATE,
                          d_conv=D_CONV, eps=LN_EPS),
        out_shape=(jax.ShapeDtypeStruct((B, L, Dd), x.dtype),
                   jax.ShapeDtypeStruct((B, CONV_CACHE_ROWS, C_PAD), jnp.float32),
                   jax.ShapeDtypeStruct((B, D_STATE, D_INNER), jnp.float32)),
        grid=(B,),
        in_specs=[xspec,
                  _rep2((1, Dd)), _rep2((1, Dd)),
                  _rep2((Dd, 3 * Dd)), _rep2((1, 3 * Dd)),
                  _rep2((L, Dd)), _rep2((L, Dd)),
                  _rep2((Dd, Dd)),
                  _rep2((Dd, Dd)), _rep2((1, Dd)),
                  _rep2((1, Dd)), _rep2((1, Dd)),
                  _rep2((Dd, MLP_HID)), _rep2((1, MLP_HID)),
                  _rep2((MLP_HID, Dd)), _rep2((1, Dd)),
                  _rep2((1, Dd)),
                  _rep2((Dd, C_PAD)), _rep2((1, C_PAD)),
                  _rep2((Dd, C_PAD)),
                  _rep2((D_CONV * L + CONV_CACHE_ROWS, CONV_CACHE_ROWS + L)),
                  _rep2((D_CONV, C_PAD)), _rep2((1, C_PAD)),
                  csspec,
                  ssspec,
                  _rep2((1, M_HEADS)), _rep2((1, D_INNER)),
                  _rep2((M_HEADS, D_INNER)),
                  _rep2((1, D_INNER)), _rep2((D_INNER, Dd))],
        out_specs=(xspec, csspec, ssspec),
        scratch_shapes=[pltpu.VMEM((L, Dd), jnp.float32),
                        pltpu.VMEM((L, D_INNER), jnp.float32)],
        compiler_params=pltpu.CompilerParams(dimension_semantics=("parallel",)),
    )(x,
      p["ln1_g"].reshape(1, Dd), p["ln1_b"].reshape(1, Dd),
      w_qkv, b_qkv,
      cos_f, sin_f, rot_mat,
      p["w_o"], p["b_o"].reshape(1, Dd),
      p["ln2_g"].reshape(1, Dd), p["ln2_b"].reshape(1, Dd),
      p["w_mlp1"], p["b_mlp1"].reshape(1, MLP_HID),
      p["w_mlp2"], p["b_mlp2"].reshape(1, Dd),
      p["m_norm_g"].reshape(1, Dd),
      w_zdt, b_zdt, w_xbc, conv_sel, conv_w, conv_b,
      conv_state, ssm_state,
      A, d_rep, expand,
      p["g_norm_g"].reshape(1, D_INNER), p["w_out"])

    return y, (new_conv_state, new_ssm_state)


# ------------------------------- module glue ----------------------------------
def make_rotary(L, dh):
    half = dh // 2
    inv = 1.0 / (10000.0 ** (jnp.arange(half, dtype=jnp.float32) / half))
    t = jnp.arange(L, dtype=jnp.float32)
    freqs = jnp.outer(t, inv)
    emb = jnp.concatenate([freqs, freqs], axis=-1)
    return jnp.cos(emb), jnp.sin(emb)


def init_params(key):
    ks = jax.random.split(key, 8)
    s = 0.02
    w_in = s * jax.random.normal(ks[4], (D_MODEL, D_INPROJ), jnp.float32)
    p = {
        "ln1_g": jnp.ones((D_MODEL,), jnp.float32),
        "ln1_b": jnp.zeros((D_MODEL,), jnp.float32),
        "w_qkv": s * jax.random.normal(ks[0], (D_MODEL, 3 * D_MODEL), jnp.float32),
        "b_qkv": jnp.zeros((3 * D_MODEL,), jnp.float32),
        "w_o": s * jax.random.normal(ks[1], (D_MODEL, D_MODEL), jnp.float32),
        "b_o": jnp.zeros((D_MODEL,), jnp.float32),
        "ln2_g": jnp.ones((D_MODEL,), jnp.float32),
        "ln2_b": jnp.zeros((D_MODEL,), jnp.float32),
        "w_mlp1": s * jax.random.normal(ks[2], (D_MODEL, MLP_HID), jnp.float32),
        "b_mlp1": jnp.zeros((MLP_HID,), jnp.float32),
        "w_mlp2": s * jax.random.normal(ks[3], (MLP_HID, D_MODEL), jnp.float32),
        "b_mlp2": jnp.zeros((D_MODEL,), jnp.float32),
        # mamba2 (in_proj split into z / xBC / dt pieces of the original layout)
        "m_norm_g": jnp.ones((D_MODEL,), jnp.float32),
        "w_in_z": w_in[:, :D_INNER],
        "w_in_xbc": w_in[:, D_INNER:D_INNER + C_CONV],
        "w_in_dt": w_in[:, D_INNER + C_CONV:],
        "conv_w": s * jax.random.normal(ks[5], (D_CONV, C_CONV), jnp.float32),
        "conv_b": jnp.zeros((C_CONV,), jnp.float32),
        "dt_bias": jnp.log(jnp.expm1(jnp.linspace(0.01, 0.1, M_HEADS, dtype=jnp.float32))),
        "A_log": jnp.log(jnp.arange(1, M_HEADS + 1, dtype=jnp.float32)),
        "Dp": jnp.ones((M_HEADS,), jnp.float32),
        "g_norm_g": jnp.ones((D_INNER,), jnp.float32),
        "w_out": s * jax.random.normal(ks[6], (D_INNER, D_MODEL), jnp.float32),
    }
    return p


# ----------------------------------- main --------------------------------------
if __name__ == "__main__":
    key = jax.random.PRNGKey(0)
    kx, kp = jax.random.split(key)
    B, H, W = 2, 4, 4
    L = H * W

    x = jax.random.normal(kx, (B, L, D_MODEL), jnp.float32)
    params = init_params(kp)
    rotary = make_rotary(L, HEAD_DIM)

    fn = jax.jit(lambda xx, pp, rr: time_space_block(xx, pp, H, W, rr))
    y, cache = fn(x, params, rotary)
    y = jax.block_until_ready(y)
    cache = jax.block_until_ready(cache)

    assert y.shape == (B, L, D_MODEL)
    assert cache[0].shape == (B, CONV_CACHE_ROWS, C_PAD)
    assert cache[1].shape == (B, D_STATE, D_INNER)
    assert bool(jnp.isfinite(y).all())
    assert bool(jnp.isfinite(cache[0]).all()) and bool(jnp.isfinite(cache[1]).all())
    print("KERNEL_OK")
</pallas_src>

<mosaic_0001>
module attributes {stable_mosaic.version = 11 : i64} {
  func.func @_time_space_kernel(%arg0: i32, %arg1: memref<1x16x32xf32, #tpu.memory_space<vmem>>, %arg2: memref<1x32xf32, #tpu.memory_space<vmem>>, %arg3: memref<1x32xf32, #tpu.memory_space<vmem>>, %arg4: memref<32x96xf32, #tpu.memory_space<vmem>>, %arg5: memref<1x96xf32, #tpu.memory_space<vmem>>, %arg6: memref<16x32xf32, #tpu.memory_space<vmem>>, %arg7: memref<16x32xf32, #tpu.memory_space<vmem>>, %arg8: memref<32x32xf32, #tpu.memory_space<vmem>>, %arg9: memref<32x32xf32, #tpu.memory_space<vmem>>, %arg10: memref<1x32xf32, #tpu.memory_space<vmem>>, %arg11: memref<1x32xf32, #tpu.memory_space<vmem>>, %arg12: memref<1x32xf32, #tpu.memory_space<vmem>>, %arg13: memref<32x128xf32, #tpu.memory_space<vmem>>, %arg14: memref<1x128xf32, #tpu.memory_space<vmem>>, %arg15: memref<128x32xf32, #tpu.memory_space<vmem>>, %arg16: memref<1x32xf32, #tpu.memory_space<vmem>>, %arg17: memref<1x32xf32, #tpu.memory_space<vmem>>, %arg18: memref<32x128xf32, #tpu.memory_space<vmem>>, %arg19: memref<1x128xf32, #tpu.memory_space<vmem>>, %arg20: memref<32x128xf32, #tpu.memory_space<vmem>>, %arg21: memref<72x24xf32, #tpu.memory_space<vmem>>, %arg22: memref<4x128xf32, #tpu.memory_space<vmem>>, %arg23: memref<1x128xf32, #tpu.memory_space<vmem>>, %arg24: memref<1x8x128xf32, #tpu.memory_space<vmem>>, %arg25: memref<1x16x64xf32, #tpu.memory_space<vmem>>, %arg26: memref<1x4xf32, #tpu.memory_space<vmem>>, %arg27: memref<1x64xf32, #tpu.memory_space<vmem>>, %arg28: memref<4x64xf32, #tpu.memory_space<vmem>>, %arg29: memref<1x64xf32, #tpu.memory_space<vmem>>, %arg30: memref<64x32xf32, #tpu.memory_space<vmem>>, %arg31: memref<1x16x32xf32, #tpu.memory_space<vmem>>, %arg32: memref<1x8x128xf32, #tpu.memory_space<vmem>>, %arg33: memref<1x16x64xf32, #tpu.memory_space<vmem>>, %arg34: memref<16x32xf32, #tpu.memory_space<vmem>>, %arg35: memref<16x64xf32, #tpu.memory_space<vmem>>) attributes {dimension_semantics = [#tpu.dimension_semantics<parallel>], iteration_bounds = array<i64: 2>, scalar_prefetch = 0 : i64, scratch_operands = 2 : i64, tpu.core_type = #tpu.core_type<tc>, window_params = [{transform_indices = @transform_0, window_bounds = array<i64: 1, 16, 32>}, {pipeline_mode = #tpu.pipeline_mode<synchronous>, transform_indices = @transform_1, window_bounds = array<i64: 1, 32>}, {pipeline_mode = #tpu.pipeline_mode<synchronous>, transform_indices = @transform_2, window_bounds = array<i64: 1, 32>}, {pipeline_mode = #tpu.pipeline_mode<synchronous>, transform_indices = @transform_3, window_bounds = array<i64: 32, 96>}, {pipeline_mode = #tpu.pipeline_mode<synchronous>, transform_indices = @transform_4, window_bounds = array<i64: 1, 96>}, {pipeline_mode = #tpu.pipeline_mode<synchronous>, transform_indices = @transform_5, window_bounds = array<i64: 16, 32>}, {pipeline_mode = #tpu.pipeline_mode<synchronous>, transform_indices = @transform_6, window_bounds = array<i64: 16, 32>}, {pipeline_mode = #tpu.pipeline_mode<synchronous>, transform_indices = @transform_7, window_bounds = array<i64: 32, 32>}, {pipeline_mode = #tpu.pipeline_mode<synchronous>, transform_indices = @transform_8, window_bounds = array<i64: 32, 32>}, {pipeline_mode = #tpu.pipeline_mode<synchronous>, transform_indices = @transform_9, window_bounds = array<i64: 1, 32>}, {pipeline_mode = #tpu.pipeline_mode<synchronous>, transform_indices = @transform_10, window_bounds = array<i64: 1, 32>}, {pipeline_mode = #tpu.pipeline_mode<synchronous>, transform_indices = @transform_11, window_bounds = array<i64: 1, 32>}, {pipeline_mode = #tpu.pipeline_mode<synchronous>, transform_indices = @transform_12, window_bounds = array<i64: 32, 128>}, {pipeline_mode = #tpu.pipeline_mode<synchronous>, transform_indices = @transform_13, window_bounds = array<i64: 1, 128>}, {pipeline_mode = #tpu.pipeline_mode<synchronous>, transform_indices = @transform_14, window_bounds = array<i64: 128, 32>}, {pipeline_mode = #tpu.pipeline_mode<synchronous>, transform_indices = @transform_15, window_bounds = array<i64: 1, 32>}, {pipeline_mode = #tpu.pipeline_mode<synchronous>, transform_indices = @transform_16, window_bounds = array<i64: 1, 32>}, {pipeline_mode = #tpu.pipeline_mode<synchronous>, transform_indices = @transform_17, window_bounds = array<i64: 32, 128>}, {pipeline_mode = #tpu.pipeline_mode<synchronous>, transform_indices = @transform_18, window_bounds = array<i64: 1, 128>}, {pipeline_mode = #tpu.pipeline_mode<synchronous>, transform_indices = @transform_19, window_bounds = array<i64: 32, 128>}, {pipeline_mode = #tpu.pipeline_mode<synchronous>, transform_indices = @transform_20, window_bounds = array<i64: 72, 24>}, {pipeline_mode = #tpu.pipeline_mode<synchronous>, transform_indices = @transform_21, window_bounds = array<i64: 4, 128>}, {pipeline_mode = #tpu.pipeline_mode<synchronous>, transform_indices = @transform_22, window_bounds = array<i64: 1, 128>}, {transform_indices = @transform_23, window_bounds = array<i64: 1, 8, 128>}, {transform_indices = @transform_24, window_bounds = array<i64: 1, 16, 64>}, {pipeline_mode = #tpu.pipeline_mode<synchronous>, transform_indices = @transform_25, window_bounds = array<i64: 1, 4>}, {pipeline_mode = #tpu.pipeline_mode<synchronous>, transform_indices = @transform_26, window_bounds = array<i64: 1, 64>}, {pipeline_mode = #tpu.pipeline_mode<synchronous>, transform_indices = @transform_27, window_bounds = array<i64: 4, 64>}, {pipeline_mode = #tpu.pipeline_mode<synchronous>, transform_indices = @transform_28, window_bounds = array<i64: 1, 64>}, {pipeline_mode = #tpu.pipeline_mode<synchronous>, transform_indices = @transform_29, window_bounds = array<i64: 64, 32>}, {transform_indices = @transform_30, window_bounds = array<i64: 1, 16, 32>}, {transform_indices = @transform_31, window_bounds = array<i64: 1, 8, 128>}, {transform_indices = @transform_32, window_bounds = array<i64: 1, 16, 64>}]} {
    %c0 = arith.constant 0 : index
    %c0_0 = arith.constant 0 : index
    %c0_1 = arith.constant 0 : index
    %0 = vector.load %arg1[%c0, %c0_0, %c0_1] : memref<1x16x32xf32, #tpu.memory_space<vmem>>, vector<1x16x32xf32>
    %1 = vector.shape_cast %0 : vector<1x16x32xf32> to vector<16x32xf32>
    %c0_2 = arith.constant 0 : index
    %c0_3 = arith.constant 0 : index
    %2 = vector.load %arg2[%c0_2, %c0_3] : memref<1x32xf32, #tpu.memory_space<vmem>>, vector<1x32xf32>
    %c0_4 = arith.constant 0 : index
    %c0_5 = arith.constant 0 : index
    %3 = vector.load %arg3[%c0_4, %c0_5] : memref<1x32xf32, #tpu.memory_space<vmem>>, vector<1x32xf32>
    %cst = arith.constant dense<0.000000e+00> : vector<16xf32>
    %4 = vector.multi_reduction <add>, %1, %cst [1] : vector<16x32xf32> to vector<16xf32>
    %5 = vector.shape_cast %4 : vector<16xf32> to vector<16x1xf32>
    %cst_6 = arith.constant 3.200000e+01 : f32
    %6 = vector.broadcast %cst_6 : f32 to vector<16x1xf32>
    %7 = arith.divf %5, %6 : vector<16x1xf32>
    %8 = vector.broadcast %7 : vector<16x1xf32> to vector<16x32xf32>
    %9 = arith.subf %1, %8 : vector<16x32xf32>
    %10 = arith.mulf %9, %9 : vector<16x32xf32>
    %cst_7 = arith.constant dense<0.000000e+00> : vector<16xf32>
    %11 = vector.multi_reduction <add>, %10, %cst_7 [1] : vector<16x32xf32> to vector<16xf32>
    %12 = vector.shape_cast %11 : vector<16xf32> to vector<16x1xf32>
    %cst_8 = arith.constant 3.200000e+01 : f32
    %13 = vector.broadcast %cst_8 : f32 to vector<16x1xf32>
    %14 = arith.divf %12, %13 : vector<16x1xf32>
    %cst_9 = arith.constant 9.99999974E-6 : f32
    %15 = vector.broadcast %cst_9 : f32 to vector<16x1xf32>
    %16 = arith.addf %14, %15 : vector<16x1xf32>
    %17 = math.rsqrt %16 : vector<16x1xf32>
    %18 = vector.broadcast %17 : vector<16x1xf32> to vector<16x32xf32>
    %19 = arith.mulf %9, %18 : vector<16x32xf32>
    %20 = vector.broadcast %2 : vector<1x32xf32> to vector<16x32xf32>
    %21 = arith.mulf %19, %20 : vector<16x32xf32>
    %22 = vector.broadcast %3 : vector<1x32xf32> to vector<16x32xf32>
    %23 = arith.addf %21, %22 : vector<16x32xf32>
    %c0_10 = arith.constant 0 : index
    %c0_11 = arith.constant 0 : index
    %24 = vector.load %arg4[%c0_10, %c0_11] : memref<32x96xf32, #tpu.memory_space<vmem>>, vector<32x96xf32>
    %cst_12 = arith.constant dense<0.000000e+00> : vector<16x96xf32>
    %25 = tpu.matmul %23, %24, %cst_12 {dimension_numbers = #tpu.dot_dimension_numbers<[1], [0], [0], [1], [0, 0, 1, 1], [], []>} : vector<16x32xf32>, vector<32x96xf32>, vector<16x96xf32> -> vector<16x96xf32>
    %c0_13 = arith.constant 0 : index
    %c0_14 = arith.constant 0 : index
    %26 = vector.load %arg5[%c0_13, %c0_14] : memref<1x96xf32, #tpu.memory_space<vmem>>, vector<1x96xf32>
    %27 = vector.broadcast %26 : vector<1x96xf32> to vector<16x96xf32>
    %28 = arith.addf %25, %27 : vector<16x96xf32>
    %29 = vector.extract_strided_slice %28 {offsets = [0, 0], sizes = [16, 32], strides = [1, 1]} : vector<16x96xf32> to vector<16x32xf32>
    %30 = vector.extract_strided_slice %28 {offsets = [0, 32], sizes = [16, 32], strides = [1, 1]} : vector<16x96xf32> to vector<16x32xf32>
    %31 = vector.extract_strided_slice %28 {offsets = [0, 64], sizes = [16, 32], strides = [1, 1]} : vector<16x96xf32> to vector<16x32xf32>
    %c0_15 = arith.constant 0 : index
    %c0_16 = arith.constant 0 : index
    %32 = vector.load %arg6[%c0_15, %c0_16] : memref<16x32xf32, #tpu.memory_space<vmem>>, vector<16x32xf32>
    %c0_17 = arith.constant 0 : index
    %c0_18 = arith.constant 0 : index
    %33 = vector.load %arg7[%c0_17, %c0_18] : memref<16x32xf32, #tpu.memory_space<vmem>>, vector<16x32xf32>
    %c0_19 = arith.constant 0 : index
    %c0_20 = arith.constant 0 : index
    %34 = vector.load %arg8[%c0_19, %c0_20] : memref<32x32xf32, #tpu.memory_space<vmem>>, vector<32x32xf32>
    %35 = arith.mulf %29, %32 : vector<16x32xf32>
    %cst_21 = arith.constant dense<0.000000e+00> : vector<16x32xf32>
    %36 = tpu.matmul %29, %34, %cst_21 {dimension_numbers = #tpu.dot_dimension_numbers<[1], [0], [0], [1], [0, 0, 1, 1], [], []>} : vector<16x32xf32>, vector<32x32xf32>, vector<16x32xf32> -> vector<16x32xf32>
    %37 = arith.mulf %36, %33 : vector<16x32xf32>
    %38 = arith.addf %35, %37 : vector<16x32xf32>
    %39 = arith.mulf %30, %32 : vector<16x32xf32>
    %cst_22 = arith.constant dense<0.000000e+00> : vector<16x32xf32>
    %40 = tpu.matmul %30, %34, %cst_22 {dimension_numbers = #tpu.dot_dimension_numbers<[1], [0], [0], [1], [0, 0, 1, 1], [], []>} : vector<16x32xf32>, vector<32x32xf32>, vector<16x32xf32> -> vector<16x32xf32>
    %41 = arith.mulf %40, %33 : vector<16x32xf32>
    %42 = arith.addf %39, %41 : vector<16x32xf32>
    %43 = vector.extract_strided_slice %38 {offsets = [0, 0], sizes = [16, 8], strides = [1, 1]} : vector<16x32xf32> to vector<16x8xf32>
    %44 = vector.extract_strided_slice %42 {offsets = [0, 0], sizes = [16, 8], strides = [1, 1]} : vector<16x32xf32> to vector<16x8xf32>
    %45 = tpu.transpose %44, [1, 0] : vector<16x8xf32> -> vector<8x16xf32>
    %cst_23 = arith.constant dense<0.000000e+00> : vector<16x16xf32>
    %46 = tpu.matmul %43, %45, %cst_23 {dimension_numbers = #tpu.dot_dimension_numbers<[1], [0], [0], [1], [0, 0, 1, 1], [], []>} : vector<16x8xf32>, vector<8x16xf32>, vector<16x16xf32> -> vector<16x16xf32>
    %47 = vector.extract_strided_slice %38 {offsets = [0, 8], sizes = [16, 8], strides = [1, 1]} : vector<16x32xf32> to vector<16x8xf32>
    %48 = vector.extract_strided_slice %42 {offsets = [0, 8], sizes = [16, 8], strides = [1, 1]} : vector<16x32xf32> to vector<16x8xf32>
    %49 = tpu.transpose %48, [1, 0] : vector<16x8xf32> -> vector<8x16xf32>
    %cst_24 = arith.constant dense<0.000000e+00> : vector<16x16xf32>
    %50 = tpu.matmul %47, %49, %cst_24 {dimension_numbers = #tpu.dot_dimension_numbers<[1], [0], [0], [1], [0, 0, 1, 1], [], []>} : vector<16x8xf32>, vector<8x16xf32>, vector<16x16xf32> -> vector<16x16xf32>
    %51 = vector.extract_strided_slice %38 {offsets = [0, 16], sizes = [16, 8], strides = [1, 1]} : vector<16x32xf32> to vector<16x8xf32>
    %52 = vector.extract_strided_slice %42 {offsets = [0, 16], sizes = [16, 8], strides = [1, 1]} : vector<16x32xf32> to vector<16x8xf32>
    %53 = tpu.transpose %52, [1, 0] : vector<16x8xf32> -> vector<8x16xf32>
    %cst_25 = arith.constant dense<0.000000e+00> : vector<16x16xf32>
    %54 = tpu.matmul %51, %53, %cst_25 {dimension_numbers = #tpu.dot_dimension_numbers<[1], [0], [0], [1], [0, 0, 1, 1], [], []>} : vector<16x8xf32>, vector<8x16xf32>, vector<16x16xf32> -> vector<16x16xf32>
    %55 = vector.extract_strided_slice %38 {offsets = [0, 24], sizes = [16, 8], strides = [1, 1]} : vector<16x32xf32> to vector<16x8xf32>
    %56 = vector.extract_strided_slice %42 {offsets = [0, 24], sizes = [16, 8], strides = [1, 1]} : vector<16x32xf32> to vector<16x8xf32>
    %57 = tpu.transpose %56, [1, 0] : vector<16x8xf32> -> vector<8x16xf32>
    %cst_26 = arith.constant dense<0.000000e+00> : vector<16x16xf32>
    %58 = tpu.matmul %55, %57, %cst_26 {dimension_numbers = #tpu.dot_dimension_numbers<[1], [0], [0], [1], [0, 0, 1, 1], [], []>} : vector<16x8xf32>, vector<8x16xf32>, vector<16x16xf32> -> vector<16x16xf32>
    %59 = tpu.concatenate %46, %50, %54, %58 in 0 : vector<16x16xf32>, vector<16x16xf32>, vector<16x16xf32>, vector<16x16xf32> -> vector<64x16xf32>
    %cst_27 = arith.constant dense<0xFF800000> : vector<64xf32>
    %60 = vector.multi_reduction <maximumf>, %59, %cst_27 [1] : vector<64x16xf32> to vector<64xf32>
    %61 = vector.shape_cast %60 : vector<64xf32> to vector<64x1xf32>
    %62 = vector.broadcast %61 : vector<64x1xf32> to vector<64x16xf32>
    %63 = arith.subf %59, %62 : vector<64x16xf32>
    %64 = math.exp %63 : vector<64x16xf32>
    %cst_28 = arith.constant dense<0.000000e+00> : vector<64xf32>
    %65 = vector.multi_reduction <add>, %64, %cst_28 [1] : vector<64x16xf32> to vector<64xf32>
    %66 = vector.shape_cast %65 : vector<64xf32> to vector<64x1xf32>
    %67 = vector.broadcast %66 : vector<64x1xf32> to vector<64x16xf32>
    %68 = arith.divf %64, %67 : vector<64x16xf32>
    %69 = vector.extract_strided_slice %68 {offsets = [0, 0], sizes = [16, 16], strides = [1, 1]} : vector<64x16xf32> to vector<16x16xf32>
    %70 = vector.extract_strided_slice %31 {offsets = [0, 0], sizes = [16, 8], strides = [1, 1]} : vector<16x32xf32> to vector<16x8xf32>
    %cst_29 = arith.constant dense<0.000000e+00> : vector<16x8xf32>
    %71 = tpu.matmul %69, %70, %cst_29 {dimension_numbers = #tpu.dot_dimension_numbers<[1], [0], [0], [1], [0, 0, 1, 1], [], []>} : vector<16x16xf32>, vector<16x8xf32>, vector<16x8xf32> -> vector<16x8xf32>
    %c0_30 = arith.constant 0 : index
    %c0_31 = arith.constant 0 : index
    %72 = vector.load %arg34[%c0_30, %c0_31] : memref<16x32xf32, #tpu.memory_space<vmem>>, vector<16x8xf32>
    tpu.vector_store %arg34[%c0_30, %c0_31], %71 {strides = array<i32>} : memref<16x32xf32, #tpu.memory_space<vmem>>, vector<16x8xf32>,
    %73 = vector.extract_strided_slice %68 {offsets = [16, 0], sizes = [16, 16], strides = [1, 1]} : vector<64x16xf32> to vector<16x16xf32>
    %74 = vector.extract_strided_slice %31 {offsets = [0, 8], sizes = [16, 8], strides = [1, 1]} : vector<16x32xf32> to vector<16x8xf32>
    %cst_32 = arith.constant dense<0.000000e+00> : vector<16x8xf32>
    %75 = tpu.matmul %73, %74, %cst_32 {dimension_numbers = #tpu.dot_dimension_numbers<[1], [0], [0], [1], [0, 0, 1, 1], [], []>} : vector<16x16xf32>, vector<16x8xf32>, vector<16x8xf32> -> vector<16x8xf32>
    %c0_33 = arith.constant 0 : index
    %c8 = arith.constant 8 : index
    %76 = vector.load %arg34[%c0_33, %c8] : memref<16x32xf32, #tpu.memory_space<vmem>>, vector<16x8xf32>
    tpu.vector_store %arg34[%c0_33, %c8], %75 {strides = array<i32>} : memref<16x32xf32, #tpu.memory_space<vmem>>, vector<16x8xf32>,
    %77 = vector.extract_strided_slice %68 {offsets = [32, 0], sizes = [16, 16], strides = [1, 1]} : vector<64x16xf32> to vector<16x16xf32>
    %78 = vector.extract_strided_slice %31 {offsets = [0, 16], sizes = [16, 8], strides = [1, 1]} : vector<16x32xf32> to vector<16x8xf32>
    %cst_34 = arith.constant dense<0.000000e+00> : vector<16x8xf32>
    %79 = tpu.matmul %77, %78, %cst_34 {dimension_numbers = #tpu.dot_dimension_numbers<[1], [0], [0], [1], [0, 0, 1, 1], [], []>} : vector<16x16xf32>, vector<16x8xf32>, vector<16x8xf32> -> vector<16x8xf32>
    %c0_35 = arith.constant 0 : index
    %c16 = arith.constant 16 : index
    %80 = vector.load %arg34[%c0_35, %c16] : memref<16x32xf32, #tpu.memory_space<vmem>>, vector<16x8xf32>
    tpu.vector_store %arg34[%c0_35, %c16], %79 {strides = array<i32>} : memref<16x32xf32, #tpu.memory_space<vmem>>, vector<16x8xf32>,
    %81 = vector.extract_strided_slice %68 {offsets = [48, 0], sizes = [16, 16], strides = [1, 1]} : vector<64x16xf32> to vector<16x16xf32>
    %82 = vector.extract_strided_slice %31 {offsets = [0, 24], sizes = [16, 8], strides = [1, 1]} : vector<16x32xf32> to vector<16x8xf32>
    %cst_36 = arith.constant dense<0.000000e+00> : vector<16x8xf32>
    %83 = tpu.matmul %81, %82, %cst_36 {dimension_numbers = #tpu.dot_dimension_numbers<[1], [0], [0], [1], [0, 0, 1, 1], [], []>} : vector<16x16xf32>, vector<16x8xf32>, vector<16x8xf32> -> vector<16x8xf32>
    %c0_37 = arith.constant 0 : index
    %c24 = arith.constant 24 : index
    %84 = vector.load %arg34[%c0_37, %c24] : memref<16x32xf32, #tpu.memory_space<vmem>>, vector<16x8xf32>
    tpu.vector_store %arg34[%c0_37, %c24], %83 {strides = array<i32>} : memref<16x32xf32, #tpu.memory_space<vmem>>, vector<16x8xf32>,
    %c0_38 = arith.constant 0 : index
    %c0_39 = arith.constant 0 : index
    %85 = vector.load %arg34[%c0_38, %c0_39] : memref<16x32xf32, #tpu.memory_space<vmem>>, vector<16x32xf32>
    %c0_40 = arith.constant 0 : index
    %c0_41 = arith.constant 0 : index
    %86 = vector.load %arg9[%c0_40, %c0_41] : memref<32x32xf32, #tpu.memory_space<vmem>>, vector<32x32xf32>
    %cst_42 = arith.constant dense<0.000000e+00> : vector<16x32xf32>
    %87 = tpu.matmul %85, %86, %cst_42 {dimension_numbers = #tpu.dot_dimension_numbers<[1], [0], [0], [1], [0, 0, 1, 1], [], []>} : vector<16x32xf32>, vector<32x32xf32>, vector<16x32xf32> -> vector<16x32xf32>
    %c0_43 = arith.constant 0 : index
    %c0_44 = arith.constant 0 : index
    %88 = vector.load %arg10[%c0_43, %c0_44] : memref<1x32xf32, #tpu.memory_space<vmem>>, vector<1x32xf32>
    %89 = vector.broadcast %88 : vector<1x32xf32> to vector<16x32xf32>
    %90 = arith.addf %87, %89 : vector<16x32xf32>
    %91 = arith.addf %1, %90 : vector<16x32xf32>
    %c0_45 = arith.constant 0 : index
    %c0_46 = arith.constant 0 : index
    %92 = vector.load %arg11[%c0_45, %c0_46] : memref<1x32xf32, #tpu.memory_space<vmem>>, vector<1x32xf32>
    %c0_47 = arith.constant 0 : index
    %c0_48 = arith.constant 0 : index
    %93 = vector.load %arg12[%c0_47, %c0_48] : memref<1x32xf32, #tpu.memory_space<vmem>>, vector<1x32xf32>
    %cst_49 = arith.constant dense<0.000000e+00> : vector<16xf32>
    %94 = vector.multi_reduction <add>, %91, %cst_49 [1] : vector<16x32xf32> to vector<16xf32>
    %95 = vector.shape_cast %94 : vector<16xf32> to vector<16x1xf32>
    %cst_50 = arith.constant 3.200000e+01 : f32
    %96 = vector.broadcast %cst_50 : f32 to vector<16x1xf32>
    %97 = arith.divf %95, %96 : vector<16x1xf32>
    %98 = vector.broadcast %97 : vector<16x1xf32> to vector<16x32xf32>
    %99 = arith.subf %91, %98 : vector<16x32xf32>
    %100 = arith.mulf %99, %99 : vector<16x32xf32>
    %cst_51 = arith.constant dense<0.000000e+00> : vector<16xf32>
    %101 = vector.multi_reduction <add>, %100, %cst_51 [1] : vector<16x32xf32> to vector<16xf32>
    %102 = vector.shape_cast %101 : vector<16xf32> to vector<16x1xf32>
    %cst_52 = arith.constant 3.200000e+01 : f32
    %103 = vector.broadcast %cst_52 : f32 to vector<16x1xf32>
    %104 = arith.divf %102, %103 : vector<16x1xf32>
    %cst_53 = arith.constant 9.99999974E-6 : f32
    %105 = vector.broadcast %cst_53 : f32 to vector<16x1xf32>
    %106 = arith.addf %104, %105 : vector<16x1xf32>
    %107 = math.rsqrt %106 : vector<16x1xf32>
    %108 = vector.broadcast %107 : vector<16x1xf32> to vector<16x32xf32>
    %109 = arith.mulf %99, %108 : vector<16x32xf32>
    %110 = vector.broadcast %92 : vector<1x32xf32> to vector<16x32xf32>
    %111 = arith.mulf %109, %110 : vector<16x32xf32>
    %112 = vector.broadcast %93 : vector<1x32xf32> to vector<16x32xf32>
    %113 = arith.addf %111, %112 : vector<16x32xf32>
    %c0_54 = arith.constant 0 : index
    %c0_55 = arith.constant 0 : index
    %114 = vector.load %arg13[%c0_54, %c0_55] : memref<32x128xf32, #tpu.memory_space<vmem>>, vector<32x128xf32>
    %cst_56 = arith.constant dense<0.000000e+00> : vector<16x128xf32>
    %115 = tpu.matmul %113, %114, %cst_56 {dimension_numbers = #tpu.dot_dimension_numbers<[1], [0], [0], [1], [0, 0, 1, 1], [], []>} : vector<16x32xf32>, vector<32x128xf32>, vector<16x128xf32> -> vector<16x128xf32>
    %c0_57 = arith.constant 0 : index
    %c0_58 = arith.constant 0 : index
    %116 = vector.load %arg14[%c0_57, %c0_58] : memref<1x128xf32, #tpu.memory_space<vmem>>, vector<1x128xf32>
    %117 = vector.broadcast %116 : vector<1x128xf32> to vector<16x128xf32>
    %118 = arith.addf %115, %117 : vector<16x128xf32>
    %119 = arith.mulf %118, %118 : vector<16x128xf32>
    %120 = arith.mulf %118, %119 : vector<16x128xf32>
    %cst_59 = arith.constant 4.471500e-02 : f32
    %121 = vector.broadcast %cst_59 : f32 to vector<16x128xf32>
    %122 = arith.mulf %121, %120 : vector<16x128xf32>
    %123 = arith.addf %118, %122 : vector<16x128xf32>
    %cst_60 = arith.constant 0.797884583 : f32
    %124 = vector.broadcast %cst_60 : f32 to vector<16x128xf32>
    %125 = arith.mulf %124, %123 : vector<16x128xf32>
    %126 = math.tanh %125 : vector<16x128xf32>
    %cst_61 = arith.constant 1.000000e+00 : f32
    %127 = vector.broadcast %cst_61 : f32 to vector<16x128xf32>
    %128 = arith.addf %127, %126 : vector<16x128xf32>
    %cst_62 = arith.constant 5.000000e-01 : f32
    %129 = vector.broadcast %cst_62 : f32 to vector<16x128xf32>
    %130 = arith.mulf %129, %128 : vector<16x128xf32>
    %131 = arith.mulf %118, %130 : vector<16x128xf32>
    %c0_63 = arith.constant 0 : index
    %c0_64 = arith.constant 0 : index
    %132 = vector.load %arg15[%c0_63, %c0_64] : memref<128x32xf32, #tpu.memory_space<vmem>>, vector<128x32xf32>
    %cst_65 = arith.constant dense<0.000000e+00> : vector<16x32xf32>
    %133 = tpu.matmul %131, %132, %cst_65 {dimension_numbers = #tpu.dot_dimension_numbers<[1], [0], [0], [1], [0, 0, 1, 1], [], []>} : vector<16x128xf32>, vector<128x32xf32>, vector<16x32xf32> -> vector<16x32xf32>
    %134 = arith.addf %91, %133 : vector<16x32xf32>
    %c0_66 = arith.constant 0 : index
    %c0_67 = arith.constant 0 : index
    %135 = vector.load %arg16[%c0_66, %c0_67] : memref<1x32xf32, #tpu.memory_space<vmem>>, vector<1x32xf32>
    %136 = vector.broadcast %135 : vector<1x32xf32> to vector<16x32xf32>
    %137 = arith.addf %134, %136 : vector<16x32xf32>
    %c0_68 = arith.constant 0 : index
    %c0_69 = arith.constant 0 : index
    %138 = vector.load %arg17[%c0_68, %c0_69] : memref<1x32xf32, #tpu.memory_space<vmem>>, vector<1x32xf32>
    %139 = arith.mulf %137, %137 : vector<16x32xf32>
    %cst_70 = arith.constant dense<0.000000e+00> : vector<16xf32>
    %140 = vector.multi_reduction <add>, %139, %cst_70 [1] : vector<16x32xf32> to vector<16xf32>
    %141 = vector.shape_cast %140 : vector<16xf32> to vector<16x1xf32>
    %cst_71 = arith.constant 3.200000e+01 : f32
    %142 = vector.broadcast %cst_71 : f32 to vector<16x1xf32>
    %143 = arith.divf %141, %142 : vector<16x1xf32>
    %cst_72 = arith.constant 9.99999974E-6 : f32
    %144 = vector.broadcast %cst_72 : f32 to vector<16x1xf32>
    %145 = arith.addf %143, %144 : vector<16x1xf32>
    %146 = math.rsqrt %145 : vector<16x1xf32>
    %147 = vector.broadcast %146 : vector<16x1xf32> to vector<16x32xf32>
    %148 = arith.mulf %137, %147 : vector<16x32xf32>
    %149 = vector.broadcast %138 : vector<1x32xf32> to vector<16x32xf32>
    %150 = arith.mulf %148, %149 : vector<16x32xf32>
    %c0_73 = arith.constant 0 : index
    %c0_74 = arith.constant 0 : index
    %151 = vector.load %arg18[%c0_73, %c0_74] : memref<32x128xf32, #tpu.memory_space<vmem>>, vector<32x128xf32>
    %cst_75 = arith.constant dense<0.000000e+00> : vector<16x128xf32>
    %152 = tpu.matmul %150, %151, %cst_75 {dimension_numbers = #tpu.dot_dimension_numbers<[1], [0], [0], [1], [0, 0, 1, 1], [], []>} : vector<16x32xf32>, vector<32x128xf32>, vector<16x128xf32> -> vector<16x128xf32>
    %c0_76 = arith.constant 0 : index
    %c0_77 = arith.constant 0 : index
    %153 = vector.load %arg19[%c0_76, %c0_77] : memref<1x128xf32, #tpu.memory_space<vmem>>, vector<1x128xf32>
    %154 = vector.broadcast %153 : vector<1x128xf32> to vector<16x128xf32>
    %155 = arith.addf %152, %154 : vector<16x128xf32>
    %c0_78 = arith.constant 0 : index
    %c0_79 = arith.constant 0 : index
    %156 = vector.load %arg20[%c0_78, %c0_79] : memref<32x128xf32, #tpu.memory_space<vmem>>, vector<32x128xf32>
    %cst_80 = arith.constant dense<0.000000e+00> : vector<16x128xf32>
    %157 = tpu.matmul %150, %156, %cst_80 {dimension_numbers = #tpu.dot_dimension_numbers<[1], [0], [0], [1], [0, 0, 1, 1], [], []>} : vector<16x32xf32>, vector<32x128xf32>, vector<16x128xf32> -> vector<16x128xf32>
    %158 = vector.extract_strided_slice %155 {offsets = [0, 0], sizes = [16, 64], strides = [1, 1]} : vector<16x128xf32> to vector<16x64xf32>
    %159 = vector.extract_strided_slice %155 {offsets = [0, 64], sizes = [16, 4], strides = [1, 1]} : vector<16x128xf32> to vector<16x4xf32>
    %cst_81 = arith.constant 2.000000e+01 : f32
    %160 = vector.broadcast %cst_81 : f32 to vector<16x4xf32>
    %161 = arith.cmpf ogt, %159, %160 : vector<16x4xf32>
    %cst_82 = arith.constant 2.000000e+01 : f32
    %162 = vector.broadcast %cst_82 : f32 to vector<16x4xf32>
    %163 = arith.minimumf %159, %162 : vector<16x4xf32>
    %164 = math.exp %163 : vector<16x4xf32>
    %165 = math.log1p %164 : vector<16x4xf32>
    %166 = arith.select %161, %159, %165 : vector<16x4xi1>, vector<16x4xf32>
    %c0_83 = arith.constant 0 : index
    %c0_84 = arith.constant 0 : index
    %c0_85 = arith.constant 0 : index
    %167 = vector.load %arg24[%c0_83, %c0_84, %c0_85] : memref<1x8x128xf32, #tpu.memory_space<vmem>>, vector<1x8x128xf32>
    %168 = vector.shape_cast %167 : vector<1x8x128xf32> to vector<8x128xf32>
    %169 = tpu.concatenate %168, %157 in 0 : vector<8x128xf32>, vector<16x128xf32> -> vector<24x128xf32>
    %c0_86 = arith.constant 0 : index
    %c0_87 = arith.constant 0 : index
    %170 = vector.load %arg21[%c0_86, %c0_87] : memref<72x24xf32, #tpu.memory_space<vmem>>, vector<72x24xf32>
    %cst_88 = arith.constant dense<0.000000e+00> : vector<72x128xf32>
    %171 = tpu.matmul %170, %169, %cst_88 {dimension_numbers = #tpu.dot_dimension_numbers<[1], [0], [0], [1], [0, 0, 1, 1], [], []>} : vector<72x24xf32>, vector<24x128xf32>, vector<72x128xf32> -> vector<72x128xf32>
    %c0_89 = arith.constant 0 : index
    %c0_90 = arith.constant 0 : index
    %172 = vector.load %arg22[%c0_89, %c0_90] : memref<4x128xf32, #tpu.memory_space<vmem>>, vector<4x128xf32>
    %c0_91 = arith.constant 0 : index
    %c0_92 = arith.constant 0 : index
    %173 = vector.load %arg23[%c0_91, %c0_92] : memref<1x128xf32, #tpu.memory_space<vmem>>, vector<1x128xf32>
    %174 = vector.extract_strided_slice %171 {offsets = [0, 0], sizes = [16, 128], strides = [1, 1]} : vector<72x128xf32> to vector<16x128xf32>
    %175 = vector.extract_strided_slice %172 {offsets = [0, 0], sizes = [1, 128], strides = [1, 1]} : vector<4x128xf32> to vector<1x128xf32>
    %176 = vector.broadcast %175 : vector<1x128xf32> to vector<16x128xf32>
    %177 = arith.mulf %174, %176 : vector<16x128xf32>
    %178 = vector.broadcast %173 : vector<1x128xf32> to vector<16x128xf32>
    %179 = arith.addf %178, %177 : vector<16x128xf32>
    %180 = vector.extract_strided_slice %171 {offsets = [16, 0], sizes = [16, 128], strides = [1, 1]} : vector<72x128xf32> to vector<16x128xf32>
    %181 = vector.extract_strided_slice %172 {offsets = [1, 0], sizes = [1, 128], strides = [1, 1]} : vector<4x128xf32> to vector<1x128xf32>
    %182 = vector.broadcast %181 : vector<1x128xf32> to vector<16x128xf32>
    %183 = arith.mulf %180, %182 : vector<16x128xf32>
    %184 = arith.addf %179, %183 : vector<16x128xf32>
    %185 = vector.extract_strided_slice %171 {offsets = [32, 0], sizes = [16, 128], strides = [1, 1]} : vector<72x128xf32> to vector<16x128xf32>
    %186 = vector.extract_strided_slice %172 {offsets = [2, 0], sizes = [1, 128], strides = [1, 1]} : vector<4x128xf32> to vector<1x128xf32>
    %187 = vector.broadcast %186 : vector<1x128xf32> to vector<16x128xf32>
    %188 = arith.mulf %185, %187 : vector<16x128xf32>
    %189 = arith.addf %184, %188 : vector<16x128xf32>
    %190 = vector.extract_strided_slice %171 {offsets = [48, 0], sizes = [16, 128], strides = [1, 1]} : vector<72x128xf32> to vector<16x128xf32>
    %191 = vector.extract_strided_slice %172 {offsets = [3, 0], sizes = [1, 128], strides = [1, 1]} : vector<4x128xf32> to vector<1x128xf32>
    %192 = vector.broadcast %191 : vector<1x128xf32> to vector<16x128xf32>
    %193 = arith.mulf %190, %192 : vector<16x128xf32>
    %194 = arith.addf %189, %193 : vector<16x128xf32>
    %195 = arith.negf %194 : vector<16x128xf32>
    %196 = math.exp %195 : vector<16x128xf32>
    %cst_93 = arith.constant 1.000000e+00 : f32
    %197 = vector.broadcast %cst_93 : f32 to vector<16x128xf32>
    %198 = arith.addf %197, %196 : vector<16x128xf32>
    %199 = arith.divf %197, %198 : vector<16x128xf32>
    %200 = arith.mulf %194, %199 : vector<16x128xf32>
    %201 = vector.extract_strided_slice %171 {offsets = [64, 0], sizes = [8, 128], strides = [1, 1]} : vector<72x128xf32> to vector<8x128xf32>
    %c0_94 = arith.constant 0 : index
    %c0_95 = arith.constant 0 : index
    %c0_96 = arith.constant 0 : index
    %202 = vector.load %arg32[%c0_94, %c0_95, %c0_96] : memref<1x8x128xf32, #tpu.memory_space<vmem>>, vector<1x8x128xf32>
    %203 = vector.shape_cast %202 : vector<1x8x128xf32> to vector<8x128xf32>
    %204 = vector.shape_cast %201 : vector<8x128xf32> to vector<1x8x128xf32>
    tpu.vector_store %arg32[%c0_94, %c0_95, %c0_96], %204 {strides = array<i32>} : memref<1x8x128xf32, #tpu.memory_space<vmem>>, vector<1x8x128xf32>,
    %205 = vector.extract_strided_slice %200 {offsets = [0, 0], sizes = [16, 64], strides = [1, 1]} : vector<16x128xf32> to vector<16x64xf32>
    %206 = vector.extract_strided_slice %200 {offsets = [0, 64], sizes = [16, 16], strides = [1, 1]} : vector<16x128xf32> to vector<16x16xf32>
    %207 = vector.extract_strided_slice %200 {offsets = [0, 80], sizes = [16, 16], strides = [1, 1]} : vector<16x128xf32> to vector<16x16xf32>
    %c0_97 = arith.constant 0 : index
    %c0_98 = arith.constant 0 : index
    %208 = vector.load %arg26[%c0_97, %c0_98] : memref<1x4xf32, #tpu.memory_space<vmem>>, vector<1x4xf32>
    %209 = tpu.iota {dimensions = array<i32: 0>} : vector<16x16xi32>
    %210 = tpu.iota {dimensions = array<i32: 1>} : vector<16x16xi32>
    %211 = arith.cmpi sle, %210, %209 : vector<16x16xi32>
    %212 = arith.extui %211 : vector<16x16xi1> to vector<16x16xi32>
    %213 = arith.sitofp %212 : vector<16x16xi32> to vector<16x16xf32>
    %cst_99 = arith.constant dense<0.000000e+00> : vector<16x4xf32>
    %214 = tpu.matmul %213, %166, %cst_99 {dimension_numbers = #tpu.dot_dimension_numbers<[1], [0], [0], [1], [0, 0, 1, 1], [], []>} : vector<16x16xf32>, vector<16x4xf32>, vector<16x4xf32> -> vector<16x4xf32>
    %215 = vector.broadcast %208 : vector<1x4xf32> to vector<16x4xf32>
    %216 = arith.mulf %214, %215 : vector<16x4xf32>
    %217 = tpu.transpose %216, [1, 0] : vector<16x4xf32> -> vector<4x16xf32>
    %218 = tpu.transpose %166, [1, 0] : vector<16x4xf32> -> vector<4x16xf32>
    %219 = vector.extract_strided_slice %216 {offsets = [0, 0], sizes = [16, 1], strides = [1, 1]} : vector<16x4xf32> to vector<16x1xf32>
    %220 = vector.extract_strided_slice %217 {offsets = [0, 0], sizes = [1, 16], strides = [1, 1]} : vector<4x16xf32> to vector<1x16xf32>
    %221 = vector.broadcast %219 : vector<16x1xf32> to vector<16x16xf32>
    %222 = vector.broadcast %220 : vector<1x16xf32> to vector<16x16xf32>
    %223 = arith.subf %221, %222 : vector<16x16xf32>
    %cst_100 = arith.constant 0.000000e+00 : f32
    %224 = vector.broadcast %cst_100 : f32 to vector<16x16xf32>
    %225 = arith.select %211, %223, %224 : vector<16x16xi1>, vector<16x16xf32>
    %226 = vector.extract_strided_slice %216 {offsets = [0, 1], sizes = [16, 1], strides = [1, 1]} : vector<16x4xf32> to vector<16x1xf32>
    %227 = vector.extract_strided_slice %217 {offsets = [1, 0], sizes = [1, 16], strides = [1, 1]} : vector<4x16xf32> to vector<1x16xf32>
    %228 = vector.broadcast %226 : vector<16x1xf32> to vector<16x16xf32>
    %229 = vector.broadcast %227 : vector<1x16xf32> to vector<16x16xf32>
    %230 = arith.subf %228, %229 : vector<16x16xf32>
    %cst_101 = arith.constant 0.000000e+00 : f32
    %231 = vector.broadcast %cst_101 : f32 to vector<16x16xf32>
    %232 = arith.select %211, %230, %231 : vector<16x16xi1>, vector<16x16xf32>
    %233 = vector.extract_strided_slice %216 {offsets = [0, 2], sizes = [16, 1], strides = [1, 1]} : vector<16x4xf32> to vector<16x1xf32>
    %234 = vector.extract_strided_slice %217 {offsets = [2, 0], sizes = [1, 16], strides = [1, 1]} : vector<4x16xf32> to vector<1x16xf32>
    %235 = vector.broadcast %233 : vector<16x1xf32> to vector<16x16xf32>
    %236 = vector.broadcast %234 : vector<1x16xf32> to vector<16x16xf32>
    %237 = arith.subf %235, %236 : vector<16x16xf32>
    %cst_102 = arith.constant 0.000000e+00 : f32
    %238 = vector.broadcast %cst_102 : f32 to vector<16x16xf32>
    %239 = arith.select %211, %237, %238 : vector<16x16xi1>, vector<16x16xf32>
    %240 = vector.extract_strided_slice %216 {offsets = [0, 3], sizes = [16, 1], strides = [1, 1]} : vector<16x4xf32> to vector<16x1xf32>
    %241 = vector.extract_strided_slice %217 {offsets = [3, 0], sizes = [1, 16], strides = [1, 1]} : vector<4x16xf32> to vector<1x16xf32>
    %242 = vector.broadcast %240 : vector<16x1xf32> to vector<16x16xf32>
    %243 = vector.broadcast %241 : vector<1x16xf32> to vector<16x16xf32>
    %244 = arith.subf %242, %243 : vector<16x16xf32>
    %cst_103 = arith.constant 0.000000e+00 : f32
    %245 = vector.broadcast %cst_103 : f32 to vector<16x16xf32>
    %246 = arith.select %211, %244, %245 : vector<16x16xi1>, vector<16x16xf32>
    %247 = tpu.concatenate %225, %232, %239, %246 in 0 : vector<16x16xf32>, vector<16x16xf32>, vector<16x16xf32>, vector<16x16xf32> -> vector<64x16xf32>
    %248 = math.exp %247 : vector<64x16xf32>
    %249 = tpu.transpose %206, [1, 0] : vector<16x16xf32> -> vector<16x16xf32>
    %cst_104 = arith.constant dense<0.000000e+00> : vector<16x16xf32>
    %250 = tpu.matmul %207, %249, %cst_104 {dimension_numbers = #tpu.dot_dimension_numbers<[1], [0], [0], [1], [0, 0, 1, 1], [], []>} : vector<16x16xf32>, vector<16x16xf32>, vector<16x16xf32> -> vector<16x16xf32>
    %251 = arith.mulf %250, %213 : vector<16x16xf32>
    %252 = vector.extract_strided_slice %248 {offsets = [0, 0], sizes = [16, 16], strides = [1, 1]} : vector<64x16xf32> to vector<16x16xf32>
    %253 = arith.mulf %252, %251 : vector<16x16xf32>
    %254 = vector.extract_strided_slice %218 {offsets = [0, 0], sizes = [1, 16], strides = [1, 1]} : vector<4x16xf32> to vector<1x16xf32>
    %255 = vector.broadcast %254 : vector<1x16xf32> to vector<16x16xf32>
    %256 = arith.mulf %253, %255 : vector<16x16xf32>
    %257 = vector.extract_strided_slice %205 {offsets = [0, 0], sizes = [16, 16], strides = [1, 1]} : vector<16x64xf32> to vector<16x16xf32>
    %cst_105 = arith.constant dense<0.000000e+00> : vector<16x16xf32>
    %258 = tpu.matmul %256, %257, %cst_105 {dimension_numbers = #tpu.dot_dimension_numbers<[1], [0], [0], [1], [0, 0, 1, 1], [], []>} : vector<16x16xf32>, vector<16x16xf32>, vector<16x16xf32> -> vector<16x16xf32>
    %c0_106 = arith.constant 0 : index
    %c0_107 = arith.constant 0 : index
    %259 = vector.load %arg35[%c0_106, %c0_107] : memref<16x64xf32, #tpu.memory_space<vmem>>, vector<16x16xf32>
    tpu.vector_store %arg35[%c0_106, %c0_107], %258 {strides = array<i32>} : memref<16x64xf32, #tpu.memory_space<vmem>>, vector<16x16xf32>,
    %260 = vector.extract_strided_slice %248 {offsets = [16, 0], sizes = [16, 16], strides = [1, 1]} : vector<64x16xf32> to vector<16x16xf32>
    %261 = arith.mulf %260, %251 : vector<16x16xf32>
    %262 = vector.extract_strided_slice %218 {offsets = [1, 0], sizes = [1, 16], strides = [1, 1]} : vector<4x16xf32> to vector<1x16xf32>
    %263 = vector.broadcast %262 : vector<1x16xf32> to vector<16x16xf32>
    %264 = arith.mulf %261, %263 : vector<16x16xf32>
    %265 = vector.extract_strided_slice %205 {offsets = [0, 16], sizes = [16, 16], strides = [1, 1]} : vector<16x64xf32> to vector<16x16xf32>
    %cst_108 = arith.constant dense<0.000000e+00> : vector<16x16xf32>
    %266 = tpu.matmul %264, %265, %cst_108 {dimension_numbers = #tpu.dot_dimension_numbers<[1], [0], [0], [1], [0, 0, 1, 1], [], []>} : vector<16x16xf32>, vector<16x16xf32>, vector<16x16xf32> -> vector<16x16xf32>
    %c0_109 = arith.constant 0 : index
    %c16_110 = arith.constant 16 : index
    %267 = vector.load %arg35[%c0_109, %c16_110] : memref<16x64xf32, #tpu.memory_space<vmem>>, vector<16x16xf32>
    tpu.vector_store %arg35[%c0_109, %c16_110], %266 {strides = array<i32>} : memref<16x64xf32, #tpu.memory_space<vmem>>, vector<16x16xf32>,
    %268 = vector.extract_strided_slice %248 {offsets = [32, 0], sizes = [16, 16], strides = [1, 1]} : vector<64x16xf32> to vector<16x16xf32>
    %269 = arith.mulf %268, %251 : vector<16x16xf32>
    %270 = vector.extract_strided_slice %218 {offsets = [2, 0], sizes = [1, 16], strides = [1, 1]} : vector<4x16xf32> to vector<1x16xf32>
    %271 = vector.broadcast %270 : vector<1x16xf32> to vector<16x16xf32>
    %272 = arith.mulf %269, %271 : vector<16x16xf32>
    %273 = vector.extract_strided_slice %205 {offsets = [0, 32], sizes = [16, 16], strides = [1, 1]} : vector<16x64xf32> to vector<16x16xf32>
    %cst_111 = arith.constant dense<0.000000e+00> : vector<16x16xf32>
    %274 = tpu.matmul %272, %273, %cst_111 {dimension_numbers = #tpu.dot_dimension_numbers<[1], [0], [0], [1], [0, 0, 1, 1], [], []>} : vector<16x16xf32>, vector<16x16xf32>, vector<16x16xf32> -> vector<16x16xf32>
    %c0_112 = arith.constant 0 : index
    %c32 = arith.constant 32 : index
    %275 = vector.load %arg35[%c0_112, %c32] : memref<16x64xf32, #tpu.memory_space<vmem>>, vector<16x16xf32>
    tpu.vector_store %arg35[%c0_112, %c32], %274 {strides = array<i32>} : memref<16x64xf32, #tpu.memory_space<vmem>>, vector<16x16xf32>,
    %276 = vector.extract_strided_slice %248 {offsets = [48, 0], sizes = [16, 16], strides = [1, 1]} : vector<64x16xf32> to vector<16x16xf32>
    %277 = arith.mulf %276, %251 : vector<16x16xf32>
    %278 = vector.extract_strided_slice %218 {offsets = [3, 0], sizes = [1, 16], strides = [1, 1]} : vector<4x16xf32> to vector<1x16xf32>
    %279 = vector.broadcast %278 : vector<1x16xf32> to vector<16x16xf32>
    %280 = arith.mulf %277, %279 : vector<16x16xf32>
    %281 = vector.extract_strided_slice %205 {offsets = [0, 48], sizes = [16, 16], strides = [1, 1]} : vector<16x64xf32> to vector<16x16xf32>
    %cst_113 = arith.constant dense<0.000000e+00> : vector<16x16xf32>
    %282 = tpu.matmul %280, %281, %cst_113 {dimension_numbers = #tpu.dot_dimension_numbers<[1], [0], [0], [1], [0, 0, 1, 1], [], []>} : vector<16x16xf32>, vector<16x16xf32>, vector<16x16xf32> -> vector<16x16xf32>
    %c0_114 = arith.constant 0 : index
    %c48 = arith.constant 48 : index
    %283 = vector.load %arg35[%c0_114, %c48] : memref<16x64xf32, #tpu.memory_space<vmem>>, vector<16x16xf32>
    tpu.vector_store %arg35[%c0_114, %c48], %282 {strides = array<i32>} : memref<16x64xf32, #tpu.memory_space<vmem>>, vector<16x16xf32>,
    %c0_115 = arith.constant 0 : index
    %c0_116 = arith.constant 0 : index
    %284 = vector.load %arg28[%c0_115, %c0_116] : memref<4x64xf32, #tpu.memory_space<vmem>>, vector<4x64xf32>
    %c0_117 = arith.constant 0 : index
    %c0_118 = arith.constant 0 : index
    %c0_119 = arith.constant 0 : index
    %285 = vector.load %arg25[%c0_117, %c0_118, %c0_119] : memref<1x16x64xf32, #tpu.memory_space<vmem>>, vector<1x16x64xf32>
    %286 = vector.shape_cast %285 : vector<1x16x64xf32> to vector<16x64xf32>
    %cst_120 = arith.constant dense<0.000000e+00> : vector<4xf32>
    %287 = vector.multi_reduction <add>, %166, %cst_120 [0] : vector<16x4xf32> to vector<4xf32>
    %288 = vector.shape_cast %287 : vector<4xf32> to vector<1x4xf32>
    %289 = math.exp %216 : vector<16x4xf32>
    %290 = arith.mulf %208, %288 : vector<1x4xf32>
    %291 = vector.broadcast %290 : vector<1x4xf32> to vector<16x4xf32>
    %292 = arith.subf %291, %216 : vector<16x4xf32>
    %293 = math.exp %292 : vector<16x4xf32>
    %294 = arith.mulf %208, %288 : vector<1x4xf32>
    %295 = math.exp %294 : vector<1x4xf32>
    %c0_121 = arith.constant 0 : index
    %c0_122 = arith.constant 0 : index
    %296 = vector.load %arg35[%c0_121, %c0_122] : memref<16x64xf32, #tpu.memory_space<vmem>>, vector<16x64xf32>
    %c0_123 = arith.constant 0 : index
    %c0_124 = arith.constant 0 : index
    %297 = vector.load %arg27[%c0_123, %c0_124] : memref<1x64xf32, #tpu.memory_space<vmem>>, vector<1x64xf32>
    %298 = vector.broadcast %297 : vector<1x64xf32> to vector<16x64xf32>
    %299 = arith.mulf %205, %298 : vector<16x64xf32>
    %300 = arith.addf %296, %299 : vector<16x64xf32>
    %cst_125 = arith.constant dense<0.000000e+00> : vector<16x64xf32>
    %301 = tpu.matmul %289, %284, %cst_125 {dimension_numbers = #tpu.dot_dimension_numbers<[1], [0], [0], [1], [0, 0, 1, 1], [], []>} : vector<16x4xf32>, vector<4x64xf32>, vector<16x64xf32> -> vector<16x64xf32>
    %cst_126 = arith.constant dense<0.000000e+00> : vector<16x64xf32>
    %302 = tpu.matmul %207, %286, %cst_126 {dimension_numbers = #tpu.dot_dimension_numbers<[1], [0], [0], [1], [0, 0, 1, 1], [], []>} : vector<16x16xf32>, vector<16x64xf32>, vector<16x64xf32> -> vector<16x64xf32>
    %303 = arith.mulf %301, %302 : vector<16x64xf32>
    %304 = arith.addf %300, %303 : vector<16x64xf32>
    %305 = arith.mulf %293, %166 : vector<16x4xf32>
    %cst_127 = arith.constant dense<0.000000e+00> : vector<16x64xf32>
    %306 = tpu.matmul %305, %284, %cst_127 {dimension_numbers = #tpu.dot_dimension_numbers<[1], [0], [0], [1], [0, 0, 1, 1], [], []>} : vector<16x4xf32>, vector<4x64xf32>, vector<16x64xf32> -> vector<16x64xf32>
    %307 = arith.mulf %205, %306 : vector<16x64xf32>
    %308 = tpu.transpose %206, [1, 0] : vector<16x16xf32> -> vector<16x16xf32>
    %cst_128 = arith.constant dense<0.000000e+00> : vector<16x64xf32>
    %309 = tpu.matmul %308, %307, %cst_128 {dimension_numbers = #tpu.dot_dimension_numbers<[1], [0], [0], [1], [0, 0, 1, 1], [], []>} : vector<16x16xf32>, vector<16x64xf32>, vector<16x64xf32> -> vector<16x64xf32>
    %cst_129 = arith.constant dense<0.000000e+00> : vector<1x64xf32>
    %310 = tpu.matmul %295, %284, %cst_129 {dimension_numbers = #tpu.dot_dimension_numbers<[1], [0], [0], [1], [0, 0, 1, 1], [], []>} : vector<1x4xf32>, vector<4x64xf32>, vector<1x64xf32> -> vector<1x64xf32>
    %311 = vector.broadcast %310 : vector<1x64xf32> to vector<16x64xf32>
    %312 = arith.mulf %311, %286 : vector<16x64xf32>
    %313 = arith.addf %309, %312 : vector<16x64xf32>
    %c0_130 = arith.constant 0 : index
    %c0_131 = arith.constant 0 : index
    %c0_132 = arith.constant 0 : index
    %314 = vector.load %arg33[%c0_130, %c0_131, %c0_132] : memref<1x16x64xf32, #tpu.memory_space<vmem>>, vector<1x16x64xf32>
    %315 = vector.shape_cast %314 : vector<1x16x64xf32> to vector<16x64xf32>
    %316 = vector.shape_cast %313 : vector<16x64xf32> to vector<1x16x64xf32>
    tpu.vector_store %arg33[%c0_130, %c0_131, %c0_132], %316 {strides = array<i32>} : memref<1x16x64xf32, #tpu.memory_space<vmem>>, vector<1x16x64xf32>,
    %317 = arith.negf %158 : vector<16x64xf32>
    %318 = math.exp %317 : vector<16x64xf32>
    %cst_133 = arith.constant 1.000000e+00 : f32
    %319 = vector.broadcast %cst_133 : f32 to vector<16x64xf32>
    %320 = arith.addf %319, %318 : vector<16x64xf32>
    %321 = arith.divf %319, %320 : vector<16x64xf32>
    %322 = arith.mulf %158, %321 : vector<16x64xf32>
    %323 = arith.mulf %304, %322 : vector<16x64xf32>
    %c0_134 = arith.constant 0 : index
    %c0_135 = arith.constant 0 : index
    %324 = vector.load %arg29[%c0_134, %c0_135] : memref<1x64xf32, #tpu.memory_space<vmem>>, vector<1x64xf32>
    %325 = arith.mulf %323, %323 : vector<16x64xf32>
    %cst_136 = arith.constant dense<0.000000e+00> : vector<16xf32>
    %326 = vector.multi_reduction <add>, %325, %cst_136 [1] : vector<16x64xf32> to vector<16xf32>
    %327 = vector.shape_cast %326 : vector<16xf32> to vector<16x1xf32>
    %cst_137 = arith.constant 6.400000e+01 : f32
    %328 = vector.broadcast %cst_137 : f32 to vector<16x1xf32>
    %329 = arith.divf %327, %328 : vector<16x1xf32>
    %cst_138 = arith.constant 9.99999974E-6 : f32
    %330 = vector.broadcast %cst_138 : f32 to vector<16x1xf32>
    %331 = arith.addf %329, %330 : vector<16x1xf32>
    %332 = math.rsqrt %331 : vector<16x1xf32>
    %333 = vector.broadcast %332 : vector<16x1xf32> to vector<16x64xf32>
    %334 = arith.mulf %323, %333 : vector<16x64xf32>
    %335 = vector.broadcast %324 : vector<1x64xf32> to vector<16x64xf32>
    %336 = arith.mulf %334, %335 : vector<16x64xf32>
    %c0_139 = arith.constant 0 : index
    %c0_140 = arith.constant 0 : index
    %337 = vector.load %arg30[%c0_139, %c0_140] : memref<64x32xf32, #tpu.memory_space<vmem>>, vector<64x32xf32>
    %cst_141 = arith.constant dense<0.000000e+00> : vector<16x32xf32>
    %338 = tpu.matmul %336, %337, %cst_141 {dimension_numbers = #tpu.dot_dimension_numbers<[1], [0], [0], [1], [0, 0, 1, 1], [], []>} : vector<16x64xf32>, vector<64x32xf32>, vector<16x32xf32> -> vector<16x32xf32>
    %339 = arith.addf %137, %338 : vector<16x32xf32>
    %c0_142 = arith.constant 0 : index
    %c0_143 = arith.constant 0 : index
    %c0_144 = arith.constant 0 : index
    %340 = vector.load %arg31[%c0_142, %c0_143, %c0_144] : memref<1x16x32xf32, #tpu.memory_space<vmem>>, vector<1x16x32xf32>
    %341 = vector.shape_cast %340 : vector<1x16x32xf32> to vector<16x32xf32>
    %342 = vector.shape_cast %339 : vector<16x32xf32> to vector<1x16x32xf32>
    tpu.vector_store %arg31[%c0_142, %c0_143, %c0_144], %342 {strides = array<i32>} : memref<1x16x32xf32, #tpu.memory_space<vmem>>, vector<1x16x32xf32>,
    return
  }
  func.func @transform_0(%arg0: i32) -> (i32, i32, i32) {
    %c0_i32 = arith.constant 0 : i32
    %c0_i32_0 = arith.constant 0 : i32
    %c0_i32_1 = arith.constant 0 : i32
    return %arg0, %c0_i32, %c0_i32_0 : i32, i32, i32
  }
  func.func @transform_1(%arg0: i32) -> (i32, i32) {
    %c0_i32 = arith.constant 0 : i32
    %c0_i32_0 = arith.constant 0 : i32
    %c0_i32_1 = arith.constant 0 : i32
    return %c0_i32, %c0_i32_0 : i32, i32
  }
  func.func @transform_2(%arg0: i32) -> (i32, i32) {
    %c0_i32 = arith.constant 0 : i32
    %c0_i32_0 = arith.constant 0 : i32
    %c0_i32_1 = arith.constant 0 : i32
    return %c0_i32, %c0_i32_0 : i32, i32
  }
  func.func @transform_3(%arg0: i32) -> (i32, i32) {
    %c0_i32 = arith.constant 0 : i32
    %c0_i32_0 = arith.constant 0 : i32
    %c0_i32_1 = arith.constant 0 : i32
    return %c0_i32, %c0_i32_0 : i32, i32
  }
  func.func @transform_4(%arg0: i32) -> (i32, i32) {
    %c0_i32 = arith.constant 0 : i32
    %c0_i32_0 = arith.constant 0 : i32
    %c0_i32_1 = arith.constant 0 : i32
    return %c0_i32, %c0_i32_0 : i32, i32
  }
  func.func @transform_5(%arg0: i32) -> (i32, i32) {
    %c0_i32 = arith.constant 0 : i32
    %c0_i32_0 = arith.constant 0 : i32
    %c0_i32_1 = arith.constant 0 : i32
    return %c0_i32, %c0_i32_0 : i32, i32
  }
  func.func @transform_6(%arg0: i32) -> (i32, i32) {
    %c0_i32 = arith.constant 0 : i32
    %c0_i32_0 = arith.constant 0 : i32
    %c0_i32_1 = arith.constant 0 : i32
    return %c0_i32, %c0_i32_0 : i32, i32
  }
  func.func @transform_7(%arg0: i32) -> (i32, i32) {
    %c0_i32 = arith.constant 0 : i32
    %c0_i32_0 = arith.constant 0 : i32
    %c0_i32_1 = arith.constant 0 : i32
    return %c0_i32, %c0_i32_0 : i32, i32
  }
  func.func @transform_8(%arg0: i32) -> (i32, i32) {
    %c0_i32 = arith.constant 0 : i32
    %c0_i32_0 = arith.constant 0 : i32
    %c0_i32_1 = arith.constant 0 : i32
    return %c0_i32, %c0_i32_0 : i32, i32
  }
  func.func @transform_9(%arg0: i32) -> (i32, i32) {
    %c0_i32 = arith.constant 0 : i32
    %c0_i32_0 = arith.constant 0 : i32
    %c0_i32_1 = arith.constant 0 : i32
    return %c0_i32, %c0_i32_0 : i32, i32
  }
  func.func @transform_10(%arg0: i32) -> (i32, i32) {
    %c0_i32 = arith.constant 0 : i32
    %c0_i32_0 = arith.constant 0 : i32
    %c0_i32_1 = arith.constant 0 : i32
    return %c0_i32, %c0_i32_0 : i32, i32
  }
  func.func @transform_11(%arg0: i32) -> (i32, i32) {
    %c0_i32 = arith.constant 0 : i32
    %c0_i32_0 = arith.constant 0 : i32
    %c0_i32_1 = arith.constant 0 : i32
    return %c0_i32, %c0_i32_0 : i32, i32
  }
  func.func @transform_12(%arg0: i32) -> (i32, i32) {
    %c0_i32 = arith.constant 0 : i32
    %c0_i32_0 = arith.constant 0 : i32
    %c0_i32_1 = arith.constant 0 : i32
    return %c0_i32, %c0_i32_0 : i32, i32
  }
  func.func @transform_13(%arg0: i32) -> (i32, i32) {
    %c0_i32 = arith.constant 0 : i32
    %c0_i32_0 = arith.constant 0 : i32
    %c0_i32_1 = arith.constant 0 : i32
    return %c0_i32, %c0_i32_0 : i32, i32
  }
  func.func @transform_14(%arg0: i32) -> (i32, i32) {
    %c0_i32 = arith.constant 0 : i32
    %c0_i32_0 = arith.constant 0 : i32
    %c0_i32_1 = arith.constant 0 : i32
    return %c0_i32, %c0_i32_0 : i32, i32
  }
  func.func @transform_15(%arg0: i32) -> (i32, i32) {
    %c0_i32 = arith.constant 0 : i32
    %c0_i32_0 = arith.constant 0 : i32
    %c0_i32_1 = arith.constant 0 : i32
    return %c0_i32, %c0_i32_0 : i32, i32
  }
  func.func @transform_16(%arg0: i32) -> (i32, i32) {
    %c0_i32 = arith.constant 0 : i32
    %c0_i32_0 = arith.constant 0 : i32
    %c0_i32_1 = arith.constant 0 : i32
    return %c0_i32, %c0_i32_0 : i32, i32
  }
  func.func @transform_17(%arg0: i32) -> (i32, i32) {
    %c0_i32 = arith.constant 0 : i32
    %c0_i32_0 = arith.constant 0 : i32
    %c0_i32_1 = arith.constant 0 : i32
    return %c0_i32, %c0_i32_0 : i32, i32
  }
  func.func @transform_18(%arg0: i32) -> (i32, i32) {
    %c0_i32 = arith.constant 0 : i32
    %c0_i32_0 = arith.constant 0 : i32
    %c0_i32_1 = arith.constant 0 : i32
    return %c0_i32, %c0_i32_0 : i32, i32
  }
  func.func @transform_19(%arg0: i32) -> (i32, i32) {
    %c0_i32 = arith.constant 0 : i32
    %c0_i32_0 = arith.constant 0 : i32
    %c0_i32_1 = arith.constant 0 : i32
    return %c0_i32, %c0_i32_0 : i32, i32
  }
  func.func @transform_20(%arg0: i32) -> (i32, i32) {
    %c0_i32 = arith.constant 0 : i32
    %c0_i32_0 = arith.constant 0 : i32
    %c0_i32_1 = arith.constant 0 : i32
    return %c0_i32, %c0_i32_0 : i32, i32
  }
  func.func @transform_21(%arg0: i32) -> (i32, i32) {
    %c0_i32 = arith.constant 0 : i32
    %c0_i32_0 = arith.constant 0 : i32
    %c0_i32_1 = arith.constant 0 : i32
    return %c0_i32, %c0_i32_0 : i32, i32
  }
  func.func @transform_22(%arg0: i32) -> (i32, i32) {
    %c0_i32 = arith.constant 0 : i32
    %c0_i32_0 = arith.constant 0 : i32
    %c0_i32_1 = arith.constant 0 : i32
    return %c0_i32, %c0_i32_0 : i32, i32
  }
  func.func @transform_23(%arg0: i32) -> (i32, i32, i32) {
    %c0_i32 = arith.constant 0 : i32
    %c0_i32_0 = arith.constant 0 : i32
    %c0_i32_1 = arith.constant 0 : i32
    return %arg0, %c0_i32, %c0_i32_0 : i32, i32, i32
  }
  func.func @transform_24(%arg0: i32) -> (i32, i32, i32) {
    %c0_i32 = arith.constant 0 : i32
    %c0_i32_0 = arith.constant 0 : i32
    %c0_i32_1 = arith.constant 0 : i32
    return %arg0, %c0_i32, %c0_i32_0 : i32, i32, i32
  }
  func.func @transform_25(%arg0: i32) -> (i32, i32) {
    %c0_i32 = arith.constant 0 : i32
    %c0_i32_0 = arith.constant 0 : i32
    %c0_i32_1 = arith.constant 0 : i32
    return %c0_i32, %c0_i32_0 : i32, i32
  }
  func.func @transform_26(%arg0: i32) -> (i32, i32) {
    %c0_i32 = arith.constant 0 : i32
    %c0_i32_0 = arith.constant 0 : i32
    %c0_i32_1 = arith.constant 0 : i32
    return %c0_i32, %c0_i32_0 : i32, i32
  }
  func.func @transform_27(%arg0: i32) -> (i32, i32) {
    %c0_i32 = arith.constant 0 : i32
    %c0_i32_0 = arith.constant 0 : i32
    %c0_i32_1 = arith.constant 0 : i32
    return %c0_i32, %c0_i32_0 : i32, i32
  }
  func.func @transform_28(%arg0: i32) -> (i32, i32) {
    %c0_i32 = arith.constant 0 : i32
    %c0_i32_0 = arith.constant 0 : i32
    %c0_i32_1 = arith.constant 0 : i32
    return %c0_i32, %c0_i32_0 : i32, i32
  }
  func.func @transform_29(%arg0: i32) -> (i32, i32) {
    %c0_i32 = arith.constant 0 : i32
    %c0_i32_0 = arith.constant 0 : i32
    %c0_i32_1 = arith.constant 0 : i32
    return %c0_i32, %c0_i32_0 : i32, i32
  }
  func.func @transform_30(%arg0: i32) -> (i32, i32, i32) {
    %c0_i32 = arith.constant 0 : i32
    %c0_i32_0 = arith.constant 0 : i32
    %c0_i32_1 = arith.constant 0 : i32
    return %arg0, %c0_i32, %c0_i32_0 : i32, i32, i32
  }
  func.func @transform_31(%arg0: i32) -> (i32, i32, i32) {
    %c0_i32 = arith.constant 0 : i32
    %c0_i32_0 = arith.constant 0 : i32
    %c0_i32_1 = arith.constant 0 : i32
    return %arg0, %c0_i32, %c0_i32_0 : i32, i32, i32
  }
  func.func @transform_32(%arg0: i32) -> (i32, i32, i32) {
    %c0_i32 = arith.constant 0 : i32
    %c0_i32_0 = arith.constant 0 : i32
    %c0_i32_1 = arith.constant 0 : i32
    return %arg0, %c0_i32, %c0_i32_0 : i32, i32, i32
  }
}

</mosaic_0001>

<bundles_post_ra>
// kernel: _lambda_.1
= control target key start
LH: loop header
LB: loop body
LE: loop exit
PB: predicated region body
PF: predicated region fallthrough
CT: control target
= control target key end

     0   :  { %s3751_s6 = smov 1   ;;  %s3752_s10 = smov 2   ;;  %s4651_s0 = inlined_call_operand.smem [shape: u32[33], index: -1, kind: input, shape index: {}] }
   0x1   :  { %s3814_s5 = sld [smem:[%s4651_s0]]   ;;  %s3753_s14 = smov 3  }
   0x2   :  { %s3819_s9 = sld [smem:[%s4651_s0 + %s3751_s6]]   ;;  %s3754_s18 = smov 4  }
   0x3   :  { %s3824_s13 = sld [smem:[%s4651_s0 + %s3752_s10]]   ;;  %s3755_s22 = smov 5  }
   0x4   :  { %s3829_s17 = sld [smem:[%s4651_s0 + %s3753_s14]]   ;;  %s3756_s26 = smov 6  }
   0x5   :  { %s3834_s21 = sld [smem:[%s4651_s0 + %s3754_s18]]   ;;  %s3757_s30 = smov 7  }
   0x6   :  { %s3839_s25 = sld [smem:[%s4651_s0 + %s3755_s22]]   ;;  %s3758_s4 = smov 8  }
   0x7   :  { %4683 = sst [smem:[#allocation11_spill]] %s3814_s5  ;;  %s3759_s10 = smov 9  }
   0x8   :  { %4684 = sst [smem:[#allocation12_spill]] %s3819_s9  ;;  %s3760_s15 = smov 10  }
   0x9   :  { %4685 = sst [smem:[#allocation13_spill]] %s3824_s13  ;;  %s3761_s20 = smov 11  }
   0xa   :  { %4686 = sst [smem:[#allocation14_spill]] %s3829_s17  ;;  %s3763_s1 = smov 13  }
   0xb   :  { %s3844_s29 = sld [smem:[%s4651_s0 + %s3756_s26]]   ;;  %s3762_s26 = smov 12  }
   0xc   :  { %s3849_s3 = sld [smem:[%s4651_s0 + %s3757_s30]]   ;;  %s3764_s7 = smov 14  }
   0xd   :  { %s3854_s8 = sld [smem:[%s4651_s0 + %s3758_s4]]   ;;  %s3766_s22 = smov 16  }
   0xe   :  { %s3859_s14 = sld [smem:[%s4651_s0 + %s3759_s10]]   ;;  %s3767_s28 = smov 17  }
   0xf   :  { %s3864_s19 = sld [smem:[%s4651_s0 + %s3760_s15]]   ;;  %s3765_s15 = smov 15  }
  0x10   :  { %s3869_s24 = sld [smem:[%s4651_s0 + %s3761_s20]]  }
  0x11   :  { %s3874_s30 = sld [smem:[%s4651_s0 + %s3762_s26]]  }
  0x12   :  { %4687 = sst [smem:[#allocation15_spill]] %s3849_s3 }
  0x13   :  { %4688 = sst [smem:[#allocation16_spill]] %s3854_s8 }
  0x14   :  { %4689 = sst [smem:[#allocation17_spill]] %s3859_s14 }
  0x15   :  { %s3879_s6 = sld [smem:[%s4651_s0 + %s3763_s1]]  }
  0x16   :  { %s3884_s12 = sld [smem:[%s4651_s0 + %s3764_s7]]   ;;  %s3768_s7 = smov 18  }
  0x17   :  { %s3889_s20 = sld [smem:[%s4651_s0 + %s3765_s15]]   ;;  %s3769_s15 = smov 19  }
  0x18   :  { %s3894_s27 = sld [smem:[%s4651_s0 + %s3766_s22]]   ;;  %s3770_s22 = smov 20  }
  0x19   :  { %s3899_s4 = sld [smem:[%s4651_s0 + %s3767_s28]]   ;;  %s3771_s28 = smov 21  }
  0x1b   :  { %4690 = sst [smem:[#allocation18_spill]] %s3879_s6 }
  0x1c   :  { %4691 = sst [smem:[#allocation19_spill]] %s3884_s12 }
  0x1d   :  { %4692 = sst [smem:[#allocation20_spill]] %s3889_s20 }
  0x1e   :  { %4693 = sst [smem:[#allocation21_spill]] %s3894_s27 }
  0x1f   :  { %4694 = sst [smem:[#allocation22_spill]] %s3899_s4 }
  0x20   :  { %s3904_s6 = sld [smem:[%s4651_s0 + %s3768_s7]]   ;;  %s3772_s7 = smov 22  }
  0x21   :  { %s3909_s20 = sld [smem:[%s4651_s0 + %s3769_s15]]   ;;  %s3773_s15 = smov 23  }
  0x22   :  { %s3914_s27 = sld [smem:[%s4651_s0 + %s3770_s22]]   ;;  %s3774_s22 = smov 24  }
  0x23   :  { %s3919_s4 = sld [smem:[%s4651_s0 + %s3771_s28]]   ;;  %s3775_s28 = smov 25  }
  0x26   :  { %4695 = sst [smem:[#allocation23_spill]] %s3904_s6 }
  0x27   :  { %4696 = sst [smem:[#allocation24_spill]] %s3909_s20 }
  0x28   :  { %4697 = sst [smem:[#allocation25_spill]] %s3914_s27 }
  0x29   :  { %4698 = sst [smem:[#allocation26_spill]] %s3919_s4 }
  0x2a   :  { %s3924_s6 = sld [smem:[%s4651_s0 + %s3772_s7]]   ;;  %s3776_s7 = smov 26  }
  0x2b   :  { %s3929_s20 = sld [smem:[%s4651_s0 + %s3773_s15]]   ;;  %s3777_s15 = smov 27  }
  0x2c   :  { %s3934_s27 = sld [smem:[%s4651_s0 + %s3774_s22]]   ;;  %s3778_s22 = smov 28  }
  0x2d   :  { %s3939_s4 = sld [smem:[%s4651_s0 + %s3775_s28]]   ;;  %s3779_s28 = smov 29  }
  0x30   :  { %4699 = sst [smem:[#allocation27_spill]] %s3924_s6 }
  0x31   :  { %4700 = sst [smem:[#allocation28_spill]] %s3929_s20 }
  0x32   :  { %4701 = sst [smem:[#allocation29_spill]] %s3934_s27 }
  0x33   :  { %4702 = sst [smem:[#allocation30_spill]] %s3939_s4 }
  0x34   :  { %s3944_s6 = sld [smem:[%s4651_s0 + %s3776_s7]]   ;;  %s3780_s7 = smov 30  }
  0x35   :  { %s3949_s20 = sld [smem:[%s4651_s0 + %s3777_s15]]   ;;  %s3781_s15 = smov 31  }
  0x36   :  { %s3954_s27 = sld [smem:[%s4651_s0 + %s3778_s22]]   ;;  %s3782_s22 = smov 32  }
  0x37   :  { %s3959_s4 = sld [smem:[%s4651_s0 + %s3779_s28]]  }
  0x3a   :  { %4703 = sst [smem:[#allocation31_spill]] %s3944_s6 }
  0x3b   :  { %4704 = sst [smem:[#allocation32_spill]] %s3949_s20 }
  0x3c   :  { %4705 = sst [smem:[#allocation33_spill]] %s3954_s27 }
  0x3d   :  { %4706 = sst [smem:[#allocation34_spill]] %s3959_s4 }
  0x3e   :  { %s3964_s6 = sld [smem:[%s4651_s0 + %s3780_s7]]  }
  0x3f   :  { %s3969_s20 = sld [smem:[%s4651_s0 + %s3781_s15]]  }
  0x40   :  { %s3974_s27 = sld [smem:[%s4651_s0 + %s3782_s22]]  }
  0x41   :  { %71 = vsyncpa [#allocation5], 0 }
  0x42   :  { %73 = vsyncpa [#allocation5 + $0x1], 0 }
  0x43   :  { %74 = vsyncpa [#allocation7], 0 }
  0x44   :  { %76 = vsyncpa [#allocation7 + $0x1], 0  ;;  %s3976_s28 = smov 0   ;;  %s3978_s1 = smov 0  }
  0x45   :  { %s3980_s2 = smov 0   ;;  %s3982_s7 = smov 0  }
  0x46 LB: > { %s4707_s17 = sld [smem:[#allocation14_spill]]  ;;  %s3997_s0 = sadd.s32 4294967295, %s3749_s7   ;;  %s3737_s28 = sphi %s3976_s28, %s4753_s28   ;;  %s3749_s7 = sphi %s3982_s7, %s4756_s7   ;;  %s3745_s2 = sphi %s3980_s2, %s4755_s2   ;;  %s3741_s1 = sphi %s3978_s1, %s4754_s1  }
  0x47   : > { %s4708_s12 = sld [smem:[#allocation19_spill]]  ;;  %s4656_s10 = sadd.s32 4294967294, %s3749_s7  }
  0x48   : > { %s4709_s4 = sld [smem:[#allocation34_spill]]  ;;  %s4001_s11 = sadd.s32 1, %s3749_s7  }
  0x49   : > { %s4710_s8 = sld [smem:[#allocation16_spill]]  ;;  %s734_s15 = sadd.s32 1, %s3745_s2 }
  0x4a   : > { %s4711_s3 = sld [smem:[#allocation15_spill]]  ;;  %s731_s16 = ssub.s32 %s3749_s7, %s4001_s11 }
  0x4b   : > { %p744_p0 = scmp.ne.s32.totalorder %s3745_s2, %s3741_s1  ;;  %p732_p1 = scmp.eq.s32.totalorder %s731_s16, 0 }
  0x4c   : > { %p745_p2 = scmp.eq.s32.totalorder %s3997_s0, 1  ;;  %p750_p3 = scmp.ne.s32.totalorder %s3741_s1, %s3737_s28 }
  0x4d   : > { %p751_p4 = scmp.eq.s32.totalorder %s4656_s10, 1  ;;  %p3259_p7 = scmp.ge.s32.totalorder %s3749_s7, 1 }
  0x4e   : > { %s4014_s18 = scalar_select %p732_p1, %s3745_s2, %s734_s15  }
  0x4f   : > { %p4016_p5 = por %p745_p2, %p744_p0  ;;  %p4020_p6 = por %p751_p4, %p750_p3 }
  0x50   : > { %p925_p8 = scmp.lt.s32.totalorder %s3749_s7, 3 }
  0x52   : > { %p926_p9 = pnand %p3259_p7, %p925_p8 }
  0x53   : > { %s4714_s5 = sld [smem:[#allocation11_spill]] (!%p926_p9)  ;;  %p1026_p10 = scmp.lt.s32.totalorder (!%p926_p9), %s3997_s0, 1 }
  0x54   : > { %929 = sbr.rel (%p926_p9) target bundleno = 3805 (0xedd), region = 140  ;;  %s4715_s9 = sld [smem:[#allocation12_spill]] (!%p926_p9) }
  0x55   : > { %s4716_s13 = sld [smem:[#allocation13_spill]] (!%p926_p9)  ;;  %s4658_s10 = smov (!%p926_p9), 96  }
  0x56   : > { %s4722_s14 = sld [smem:[#allocation17_spill]] (!%p926_p9) }
  0x59   : > { %s4028_s26 = scalar_select %p1026_p10, %s3997_s0, 1  ;;  %vm1044_vm0 = vcmask 261120   ;;  %v3783_v4 = vmov 32.0   ;;  %v1109_v21 = vld [vmem:[%s4707_s17 + $0x18] sm:$0xff]  ;;  %v1108_v22 = vld [vmem:[%s4707_s17 + $0x10] sm:$0xff]  ;;  %v1107_v23 = vld [vmem:[%s4707_s17 + $0x8] sm:$0xff] }
  0x5a   : > { %3521 = vrcp.f32 %v3783_v4  ;;  %1132 = vmatpush.msra.mxu0 %v1109_v21  ;;  %v1106_v24 = vld [vmem:[%s4707_s17] sm:$0xff]  ;;  %v4056_v28 = vld [vmem:[%s3839_s25 + $0x8] sm:$0xff]  ;;  %v1150_v29 = vld [vmem:[%s4711_s3 + $0x18] sm:$0xff]  ;;  %vm1245_vm8 = vcmask 64512   ;;  %vm1396_vm9 = vcmask 130048  }
  0x5b   : > { %s4657_s15 = sshll.u32 %s4028_s26, 4  ;;  %v1149_v30 = vld [vmem:[%s4711_s3 + $0x10] sm:$0xff]  ;;  %1171 = vmatpush.msra.mxu2 %v1150_v29  ;;  %v3507_v42 = vld [vmem:[%s4715_s9] ss:$0 sm:$0xff]  ;;  %v1148_v56 = vld [vmem:[%s4711_s3 + $0x8] sm:$0xff]  ;;  %s3791_s9 = smov 120  }
  0x5c   : > { %s1030_s16 = scalar_lea.vmem %s4714_s5, %s4657_s15  ;;  %1133 = vmatpush.msra.mxu0 %v1108_v22  ;;  %v3508_v46 = vld [vmem:[%s4716_s13] ss:$0 sm:$0xff]  ;;  %s3786_s15 = smov 72  }
  0x5d   : > { %v4034_v0 = vld [vmem:[%s1030_s16] sm:$0xff]  ;;  %v4038_v2 = vld [vmem:[%s1030_s16 + $0x8] sm:$0xff]  ;;  %s4661_s16 = smov 32   ;;  %1172 = vmatpush.msra.mxu2 %v1149_v30  ;;  %s4668_s5 = smov 112  }
  0x5e   : > { %v1045_v1 = vsel %vm1044_vm0, %v4034_v0, 0.0  ;;  %v1048_v3 = vsel %vm1044_vm0, %v4038_v2, 0.0  ;;  %1134 = vmatpush.msra.mxu0 %v1107_v23  ;;  %v1147_v57 = vld [vmem:[%s4711_s3] sm:$0xff]  ;;  %s3788_s3 = smov 88   ;;  %s4717_s13 = smov 96  }
  0x5f   : > { %1046 = vadd.xlane.f32.xlu0 %v1045_v1  ;;  %1173 = vmatpush.msra.mxu2 %v1148_v56  ;;  %v3509_v58 = vld [vmem:[%s3834_s21] ss:$0 sm:$0xff] }
  0x60   : > { %v3522_v5 = vpop.eup %3521  ;;  %1135 = vmatpush.msra.mxu0 %v1106_v24  ;;  %v1143_v63 = vld [vmem:[%s3839_s25] sm:$0xff] }
  0x61   : > { %v1052_v6 = vmul.f32 32.0, %v3522_v5  ;;  %vm1056_vm1 = vweird.f32 %v3522_v5  ;;  %1174 = vmatpush.msra.mxu2 %v1147_v57  ;;  %v1145_v4 = vld [vmem:[%s3844_s29] sm:$0xff] }
  0x63   : > { %v1053_v7 = vsub.f32 1.0, %v1052_v6  ;;  %1216 = vmatpush.msrb.mxu2 %v1150_v29 }
  0x65   : > { %v1054_v8 = vmul.f32 %v3522_v5, %v1053_v7  ;;  %1217 = vmatpush.msrb.mxu2 %v1149_v30 }
  0x67   : > { %1049 = vadd.xlane.f32.xlu0 %v1048_v3  ;;  %v1055_v9 = vadd.f32 %v3522_v5, %v1054_v8  ;;  %1218 = vmatpush.msrb.mxu2 %v1148_v56 }
  0x69   : > { %v4042_v10 = vsel %vm1056_vm1, %v3522_v5, %v1055_v9  ;;  %1219 = vmatpush.msrb.mxu2 %v1147_v57 }
  0x7b   : > { %1190 = vrot.lane.b32.xlu0 %v4056_v28, %s4661_s16 }
  0xd2   : > { %v1047_v11 = vpop.xlane.xlu0 %1046 }
  0xd3   : > { %v1058_v12 = vmul.f32 %v4042_v10, %v1047_v11 }
  0xd5   : > { %v1060_v13 = vsub.f32 %v4034_v0, %v1058_v12 }
  0xd7   : > { %v1062_v14 = vmul.f32 %v1060_v13, %v1060_v13 }
  0xd9   : > { %v1064_v15 = vsel %vm1044_vm0, %v1062_v14, 0.0 }
  0xda   : > { %1065 = vadd.xlane.f32.xlu1 %v1064_v15  ;;  %v1050_v16 = vpop.xlane.xlu0 %1049 }
  0xdb   : > { %v1059_v17 = vmul.f32 %v4042_v10, %v1050_v16 }
  0xdd   : > { %v1061_v18 = vsub.f32 %v4038_v2, %v1059_v17 }
  0xdf   : > { %v1063_v19 = vmul.f32 %v1061_v18, %v1061_v18 }
  0xe1   : > { %v1067_v20 = vsel %vm1044_vm0, %v1063_v19, 0.0 }
  0xe2   : > { %1068 = vadd.xlane.f32.xlu1 %v1067_v20 }
  0xed   : > { %v1191_v20 = vpop.permute.xlu0 %1190 }
 0x14d   : > { %v1066_v25 = vpop.xlane.xlu1 %1065 }
 0x14e   : > { %v1070_v26 = vmul.f32 %v1066_v25, %v4042_v10 }
 0x150   : > { %v1072_v27 = vadd.f32 1e-05, %v1070_v26 }
 0x152   : > { %3523 = vrsqrt.f32 %v1072_v27  ;;  %vm1080_vm3 = vweird.f32 %v1072_v27 }
 0x155   : > { %v1069_v31 = vpop.xlane.xlu1 %1068 }
 0x156   : > { %v1071_v32 = vmul.f32 %v1069_v31, %v4042_v10 }
 0x158   : > { %v3524_v33 = vpop.eup %3523  ;;  %v1073_v34 = vadd.f32 1e-05, %v1071_v32 }
 0x159   : > { %v1075_v35 = vmul.f32 %v3524_v33, %v1072_v27  ;;  %vm1081_vm2 = vweird.f32 %v3524_v33 }
 0x15a   : > { %3525 = vrsqrt.f32 %v1073_v34  ;;  %vm1082_vm4 = vmor %vm1080_vm3, %vm1081_vm2  ;;  %vm1090_vm6 = vweird.f32 %v1073_v34 }
 0x15b   : > { %v1076_v36 = vmul.f32 %v3524_v33, %v1075_v35 }
 0x15d   : > { %v1077_v37 = vmul.f32 0.5, %v1076_v36 }
 0x15f   : > { %v1078_v38 = vsub.f32 1.5, %v1077_v37 }
 0x160   : > { %v3526_v39 = vpop.eup %3525 }
 0x161   : > { %v1079_v40 = vmul.f32 %v3524_v33, %v1078_v38  ;;  %v1085_v41 = vmul.f32 %v3526_v39, %v1073_v34  ;;  %vm1091_vm5 = vweird.f32 %v3526_v39 }
 0x162   : > { %vm1092_vm7 = vmor %vm1090_vm6, %vm1091_vm5 }
 0x163   : > { %v1083_v43 = vsel %vm1082_vm4, %v3524_v33, %v1079_v40  ;;  %v1086_v44 = vmul.f32 %v3526_v39, %v1085_v41 }
 0x164   : > { %v1094_v45 = vmul.f32 %v1083_v43, %v1060_v13  ;;  %v1146_v13 = vld [vmem:[%s3844_s29 + $0x8] sm:$0xff] }
 0x165   : > { %v1087_v47 = vmul.f32 0.5, %v1086_v44 }
 0x166   : > { %v1099_v48 = vmul.f32 %v3507_v42, %v1094_v45 }
 0x167   : > { %v1088_v49 = vsub.f32 1.5, %v1087_v47 }
 0x168   : > { %v1104_v50 = vadd.f32 %v3508_v46, %v1099_v48 }
 0x169   : > { %v1089_v51 = vmul.f32 %v3526_v39, %v1088_v49 }
 0x16a   : > { %3268 = vmatmul.msk.f32.vlgmr.msra.gmra.mxu0 %vm1044_vm0, %v1104_v50 }
 0x16b   : > { %v1093_v52 = vsel %vm1092_vm7, %v3526_v39, %v1089_v51 }
 0x16c   : > { %v1095_v53 = vmul.f32 %v1093_v52, %v1061_v18 }
 0x16e   : > { %v1100_v54 = vmul.f32 %v3507_v42, %v1095_v53 }
 0x170   : > { %v1105_v55 = vadd.f32 %v3508_v46, %v1100_v54 }
 0x172   : > { %3269 = vmatmul.msk.f32.gmra.mxu0 %vm1044_vm0, %v1105_v55 }
 0x1e7   : > { %v1137_v59 = vpop.f32.mrf.mxu0 }
 0x1e8   : > { %v4070_v60 = vadd.f32 %v3509_v58, %v1137_v59 }
 0x1ea   : > { %1196 = vrot.lane.b32.xlu2 %v4070_v60, %s4658_s10  ;;  %3270 = vmatmul.msk.f32.vlgmr.msra.gmra.mxu2 %vm1044_vm0, %v4070_v60  ;;  %v1151_v6 = vmul.f32 %v1143_v63, %v4070_v60 }
 0x1ef   : > { %v1140_v61 = vpop.f32.mrf.mxu0 }
 0x1f0   : > { %v4076_v62 = vadd.f32 %v3509_v58, %v1140_v61 }
 0x1f2   : > { %1198 = vrot.lane.b32.xlu2 %v4076_v62, %s4658_s10  ;;  %3271 = vmatmul.msk.f32.gmra.mxu2 %vm1044_vm0, %v4076_v62  ;;  %s4663_s10 = smov 80   ;;  %v1195_v21 = vmul.f32 %v1191_v20, %v4076_v62  ;;  %v1152_v25 = vmul.f32 %v4056_v28, %v4076_v62 }
 0x1fa   : > { %1188 = vrot.lane.b32.xlu2 %v1143_v63, %s4661_s16 }
 0x244   : > { %v1197_v1 = vpop.permute.xlu2 %1196 }
 0x245   : > { %3272 = vmatmul.msk.f32.vlgmr.msrb.gmra.mxu2 %vm1044_vm0, %v1197_v1 }
 0x24c   : > { %v1199_v3 = vpop.permute.xlu2 %1198 }
 0x24d   : > { %3273 = vmatmul.msk.f32.gmra.mxu2 %vm1044_vm0, %v1199_v3 }
 0x254   : > { %v1189_v16 = vpop.permute.xlu2 %1188 }
 0x255   : > { %v1194_v17 = vmul.f32 %v1189_v16, %v4070_v60 }
 0x26d   : > { %v1176_v5 = vpop.f32.mrf.mxu2 }
 0x26e   : > { %v1182_v7 = vmul.f32 %v1176_v5, %v1145_v4 }
 0x270   : > { %v4088_v8 = vadd.f32 %v1182_v7, %v1151_v6 }
 0x275   : > { %v1179_v9 = vpop.f32.mrf.mxu2 }
 0x276   : > { %v1183_v24 = vmul.f32 %v1179_v9, %v1146_v13 }
 0x278   : > { %v1185_v26 = vadd.f32 %v1183_v24, %v1152_v25 }
 0x2c8   : > { %v1221_v11 = vpop.f32.mrf.mxu2 }
 0x2c9   : > { %v1227_v12 = vmul.f32 %v1221_v11, %v1145_v4 }
 0x2cb   : > { %1231 = vrot.lane.b32.xlu2 %v1227_v12, %s4661_s16 }
 0x2d0   : > { %v1224_v14 = vpop.f32.mrf.mxu2 }
 0x2d1   : > { %v1228_v15 = vmul.f32 %v1224_v14, %v1146_v13 }
 0x2d3   : > { %1233 = vrot.lane.b32.xlu1 %v1228_v15, %s4661_s16  ;;  %s3789_s16 = smov 104  }
 0x325   : > { %v1232_v18 = vpop.permute.xlu2 %1231 }
 0x326   : > { %v1237_v19 = vadd.f32 %v1232_v18, %v1194_v17 }
 0x328   : > { %1361 = vrot.lane.b32.xlu0 %v1237_v19, %s3786_s15  ;;  %1322 = vrot.lane.b32.xlu1 %v1237_v19, %s4663_s10 }
 0x345   : > { %v1234_v22 = vpop.permute.xlu1 %1233 }
 0x346   : > { %v1238_v23 = vadd.f32 %v1234_v22, %v1195_v21 }
 0x348   : > { %1324 = vrot.lane.b32.xlu0 %v1238_v23, %s4663_s10  ;;  %1285 = vrot.lane.b32.xlu1 %v1238_v23, %s3788_s3  ;;  %s3798_s10 = smov 24  }
 0x349   : > { %1363 = vrot.lane.b32.xlu2 %v1238_v23, %s3786_s15  ;;  %s4669_s15 = smov 48  }
 0x350   : > { %1359 = vrot.lane.b32.xlu0 %v1185_v26, %s3789_s16  ;;  %1318 = vrot.lane.b32.xlu1 %v4088_v8, %s4668_s5 }
 0x351   : > { %1357 = vrot.lane.b32.xlu2 %v4088_v8, %s3789_s16  ;;  %s4671_s16 = smov 64  }
 0x358   : > { %1281 = vrot.lane.b32.xlu0 %v1185_v26, %s3791_s9  ;;  %1243 = vrot.lane.b32.xlu1 %v1238_v23, %s4717_s13 }
 0x359   : > { %1283 = vrot.lane.b32.xlu2 %v1237_v19, %s3788_s3  ;;  %s3793_s3 = smov 56  }
 0x360   : > { %1241 = vrot.lane.b32.xlu0 %v1237_v19, %s4717_s13 }
 0x361   : > { %1279 = vrot.lane.b32.xlu2 %v4088_v8, %s3791_s9  ;;  %s3792_s9 = smov 40  }
 0x369   : > { %1320 = vrot.lane.b32.xlu2 %v1185_v26, %s4668_s5  ;;  %s4728_s5 = sld [smem:[#allocation23_spill]] }
 0x39a   : > { %v1362_v28 = vpop.permute.xlu0 %1361  ;;  %v1323_v30 = vpop.permute.xlu1 %1322 }
 0x3a3   : > { %v1364_v27 = vpop.permute.xlu2 %1363 }
 0x3a4   : > { %3286 = vmatpush.xpose.msk.msra.mxu2 %vm1245_vm8, %v1364_v27 }
 0x3a8   : > { %3287 = vmatpush.xpose.msk.msra.mxu2 %vm1245_vm8, %v1362_v28  ;;  %v3465_v28 = vpack.i.bf16 %v4070_v60, %v4076_v62 }
 0x3ab   : > { %v1358_v29 = vpop.permute.xlu2 %1357 }
 0x3ac   : > { %3288 = vmatmul.msk.f32.vlgmr.msra.gmra.mxu2 %vm1245_vm8, %v1358_v29 }
 0x3b3   : > { %v1284_v31 = vpop.permute.xlu2 %1283 }
 0x3ba   : > { %v1286_v32 = vpop.permute.xlu1 %1285  ;;  %v1325_v33 = vpop.permute.xlu0 %1324 }
 0x3bb   : > { %3278 = vmatpush.xpose.msk.msrb.mxu0 %vm1245_vm8, %v1286_v32  ;;  %3282 = vmatpush.xpose.msk.msra.mxu1 %vm1245_vm8, %v1325_v33  ;;  %v1280_v34 = vpop.permute.xlu2 %1279 }
 0x3bf   : > { %3279 = vmatpush.xpose.msk.msrb.mxu0 %vm1245_vm8, %v1284_v31  ;;  %3283 = vmatpush.xpose.msk.msra.mxu1 %vm1245_vm8, %v1323_v30 }
 0x3c2   : > { %v1319_v35 = vpop.permute.xlu1 %1318  ;;  %3280 = vmatmul.msk.f32.vlgmr.msrb.gmra.mxu0 %vm1245_vm8, %v1280_v34  ;;  %v1360_v36 = vpop.permute.xlu0 %1359 }
 0x3c3   : > { %3284 = vmatmul.msk.f32.vlgmr.msra.gmra.mxu1 %vm1245_vm8, %v1319_v35  ;;  %3289 = vmatmul.msk.f32.gmra.mxu2 %vm1245_vm8, %v1360_v36  ;;  %v1321_v39 = vpop.permute.xlu2 %1320 }
 0x3ca   : > { %v1244_v37 = vpop.permute.xlu1 %1243  ;;  %v1282_v38 = vpop.permute.xlu0 %1281 }
 0x3cb   : > { %3274 = vmatpush.xpose.msk.msra.mxu3 %vm1245_vm8, %v1244_v37  ;;  %3281 = vmatmul.msk.f32.gmra.mxu0 %vm1245_vm8, %v1282_v38 }
 0x3cc   : > { %3285 = vmatmul.msk.f32.gmra.mxu1 %vm1245_vm8, %v1321_v39 }
 0x3d2   : > { %v1242_v40 = vpop.permute.xlu0 %1241 }
 0x3d3   : > { %3275 = vmatpush.xpose.msk.msra.mxu3 %vm1245_vm8, %v1242_v40 }
 0x3d6   : > { %3276 = vmatmul.msk.f32.vlgmr.msra.gmra.mxu3 %vm1245_vm8, %v4088_v8 }
 0x3de   : > { %3277 = vmatmul.msk.f32.gmra.mxu3 %vm1245_vm8, %v1185_v26 }
 0x42f   : > { %v1390_v41 = vpop.f32.mrf.mxu2 }
 0x430   : > { %v1415_v42 = vsel %vm1396_vm9, %v1390_v41, -inf }
 0x431   : > { %1416 = vmax.xlane.f32.xlu2 %v1415_v42 }
 0x43f   : > { %v1312_v43 = vpop.f32.mrf.mxu0 }
 0x440   : > { %v1351_v44 = vpop.f32.mrf.mxu1  ;;  %v1403_v45 = vsel %vm1396_vm9, %v1312_v43, -inf }
 0x441   : > { %1404 = vmax.xlane.f32.xlu1 %v1403_v45  ;;  %v1409_v46 = vsel %vm1396_vm9, %v1351_v44, -inf }
 0x442   : > { %1410 = vmax.xlane.f32.xlu0 %v1409_v46 }
 0x446   : > { %v1393_v47 = vpop.f32.mrf.mxu2 }
 0x447   : > { %v1418_v48 = vsel %vm1396_vm9, %v1393_v47, -inf }
 0x448   : > { %1419 = vmax.xlane.f32.xlu2 %v1418_v48  ;;  %v1315_v49 = vpop.f32.mrf.mxu0 }
 0x449   : > { %v1354_v50 = vpop.f32.mrf.mxu1  ;;  %v1406_v51 = vsel %vm1396_vm9, %v1315_v49, -inf }
 0x44a   : > { %v1412_v52 = vsel %vm1396_vm9, %v1354_v50, -inf  ;;  %1407 = vmax.xlane.f32.xlu1 %v1406_v51 }
 0x44b   : > { %1413 = vmax.xlane.f32.xlu0 %v1412_v52 }
 0x459   : > { %v1273_v53 = vpop.f32.mrf.mxu3 }
 0x45a   : > { %v1397_v54 = vsel %vm1396_vm9, %v1273_v53, -inf }
 0x45b   : > { %1398 = vmax.xlane.f32.xlu2 %v1397_v54 }
 0x461   : > { %v1276_v55 = vpop.f32.mrf.mxu3 }
 0x462   : > { %v1400_v56 = vsel %vm1396_vm9, %v1276_v55, -inf }
 0x463   : > { %1401 = vmax.xlane.f32.xlu1 %v1400_v56 }
 0x4a4   : > { %v1417_v57 = vpop.xlane.xlu2 %1416 }
 0x4a5   : > { %v1427_v58 = vsub.f32 %v1390_v41, %v1417_v57 }
 0x4a7   : > { %v1441_v59 = vmul.f32 1.442695, %v1427_v58 }
 0x4a9   : > { %3527 = vpow2.f32 %v1441_v59 }
 0x4af   : > { %v4131_v61 = vpop.eup %3527 }
 0x4b0   : > { %v1463_v63 = vsel %vm1396_vm9, %v4131_v61, 0.0 }
 0x4b1   : > { %1464 = vadd.xlane.f32.xlu0 %v1463_v63 }
 0x4b4   : > { %v1405_v1 = vpop.xlane.xlu1 %1404 }
 0x4b5   : > { %v1423_v3 = vsub.f32 %v1312_v43, %v1405_v1  ;;  %v1411_v4 = vpop.xlane.xlu0 %1410 }
 0x4b6   : > { %v1425_v5 = vsub.f32 %v1351_v44, %v1411_v4 }
 0x4b7   : > { %v1433_v6 = vmul.f32 1.442695, %v1423_v3 }
 0x4b8   : > { %v1437_v7 = vmul.f32 1.442695, %v1425_v5 }
 0x4b9   : > { %3529 = vpow2.f32 %v1433_v6 }
 0x4ba   : > { %3531 = vpow2.f32 %v1437_v7 }
 0x4bb   : > { %v1420_v8 = vpop.xlane.xlu2 %1419 }
 0x4bc   : > { %v1428_v9 = vsub.f32 %v1393_v47, %v1420_v8 }
 0x4bd   : > { %v1408_v11 = vpop.xlane.xlu1 %1407 }
 0x4be   : > { %v1443_v12 = vmul.f32 1.442695, %v1428_v9  ;;  %v1424_v13 = vsub.f32 %v1315_v49, %v1408_v11  ;;  %v1414_v14 = vpop.xlane.xlu0 %1413 }
 0x4bf   : > { %v4135_v15 = vpop.eup %3529  ;;  %v1426_v16 = vsub.f32 %v1354_v50, %v1414_v14 }
 0x4c0   : > { %v4137_v17 = vpop.eup %3531  ;;  %3533 = vpow2.f32 %v1443_v12  ;;  %v1435_v18 = vmul.f32 1.442695, %v1424_v13  ;;  %v1451_v19 = vsel %vm1396_vm9, %v4135_v15, 0.0 }
 0x4c1   : > { %v1439_v20 = vmul.f32 1.442695, %v1426_v16  ;;  %1452 = vadd.xlane.f32.xlu2 %v1451_v19  ;;  %v1457_v21 = vsel %vm1396_vm9, %v4137_v17, 0.0 }
 0x4c2   : > { %3535 = vpow2.f32 %v1435_v18  ;;  %1458 = vadd.xlane.f32.xlu1 %v1457_v21 }
 0x4c3   : > { %3537 = vpow2.f32 %v1439_v20 }
 0x4c6   : > { %v4143_v22 = vpop.eup %3533 }
 0x4c7   : > { %v1466_v23 = vsel %vm1396_vm9, %v4143_v22, 0.0 }
 0x4c8   : > { %v4147_v24 = vpop.eup %3535  ;;  %1467 = vadd.xlane.f32.xlu0 %v1466_v23 }
 0x4c9   : > { %v4149_v25 = vpop.eup %3537  ;;  %v1454_v26 = vsel %vm1396_vm9, %v4147_v24, 0.0 }
 0x4ca   : > { %1455 = vadd.xlane.f32.xlu2 %v1454_v26  ;;  %v1460_v27 = vsel %vm1396_vm9, %v4149_v25, 0.0 }
 0x4cb   : > { %1461 = vadd.xlane.f32.xlu1 %v1460_v27 }
 0x4ce   : > { %v1399_v29 = vpop.xlane.xlu2 %1398 }
 0x4cf   : > { %v1421_v30 = vsub.f32 %v1273_v53, %v1399_v29 }
 0x4d1   : > { %v1429_v32 = vmul.f32 1.442695, %v1421_v30 }
 0x4d3   : > { %3539 = vpow2.f32 %v1429_v32 }
 0x4d6   : > { %v1402_v31 = vpop.xlane.xlu1 %1401 }
 0x4d7   : > { %v1422_v33 = vsub.f32 %v1276_v55, %v1402_v31 }
 0x4d9   : > { %v1431_v34 = vmul.f32 1.442695, %v1422_v33  ;;  %v4159_v35 = vpop.eup %3539 }
 0x4da   : > { %v1445_v60 = vsel %vm1396_vm9, %v4159_v35, 0.0 }
 0x4db   : > { %3541 = vpow2.f32 %v1431_v34 }
 0x4dc   : > { %3466 = vrot.lane.b32.xlu0 %v3465_v28, %s3792_s9  ;;  %s4664_s9 = smov 8  }
 0x4e1   : > { %v4163_v62 = vpop.eup %3541 }
 0x4e2   : > { %3471 = vrot.lane.b32.xlu2 %v3465_v28, %s3793_s3  ;;  %v1448_v36 = vsel %vm1396_vm9, %v4163_v62, 0.0  ;;  %s4666_s3 = smov 16  }
 0x4e4   : > { %3476 = vrot.lane.b32.xlu1 %v3465_v28, %s4669_s15  ;;  %s4729_s15 = sld [smem:[#allocation28_spill]] }
 0x4ec   : > { %3481 = vrot.lane.b32.xlu1 %v3465_v28, %s4671_s16  ;;  %s3265_s16 = sshll.u32 %s4028_s26, 3 }
 0x506   : > { %1446 = vadd.xlane.f32.xlu0 %v1445_v60 }
 0x50b   : > { %1449 = vadd.xlane.f32.xlu2 %v1448_v36 }
 0x524   : > { %v4167_v37 = vpop.xlane.xlu0 %1464 }
 0x525   : > { %3543 = vrcp.f32 %v4167_v37  ;;  %vm1564_vm14 = vweird.f32 %v4167_v37  ;;  %v1570_v7 = vand.u32 2147483648, %v4167_v37  ;;  %v1568_v21 = vand.u32 2147483647, %v4167_v37 }
 0x527   : > { %v1571_v30 = vor.u32 1.1754944e-38, %v1570_v7  ;;  %vm1569_vm6 = vcmp.eq.f32.partialorder %v1568_v21, 8.507059e+37 }
 0x52b   : > { %v4172_v40 = vpop.eup %3543 }
 0x52c   : > { %v1560_v42 = vmul.f32 %v4172_v40, %v4167_v37  ;;  %vm1565_vm15 = vweird.f32 %v4172_v40 }
 0x52d   : > { %vm4201_vm2 = vmor %vm1564_vm14, %vm1565_vm15 }
 0x52e   : > { %v1561_v47 = vsub.f32 1.0, %v1560_v42 }
 0x530   : > { %v1562_v55 = vmul.f32 %v4172_v40, %v1561_v47 }
 0x532   : > { %v1563_v6 = vadd.f32 %v4172_v40, %v1562_v55 }
 0x534   : > { %v1453_v38 = vpop.xlane.xlu2 %1452  ;;  %v1567_v23 = vsel %vm4201_vm2, %v4172_v40, %v1563_v6 }
 0x535   : > { %3545 = vrcp.f32 %v1453_v38  ;;  %v4170_v39 = vpop.xlane.xlu1 %1458  ;;  %v1510_v49 = vand.u32 2147483648, %v1453_v38  ;;  %v1508_v52 = vand.u32 2147483647, %v1453_v38  ;;  %vm1504_vm11 = vweird.f32 %v1453_v38 }
 0x536   : > { %3547 = vrcp.f32 %v4170_v39  ;;  %v1572_v34 = vsel %vm1569_vm6, %v1571_v30, %v1567_v23  ;;  %vm1534_vm7 = vweird.f32 %v4170_v39  ;;  %v1540_v40 = vand.u32 2147483648, %v4170_v39 }
 0x537   : > { %v1511_v58 = vor.u32 1.1754944e-38, %v1510_v49  ;;  %vm1509_vm13 = vcmp.eq.f32.partialorder %v1508_v52, 8.507059e+37  ;;  %v1573_v47 = vmul.f32 %v4131_v61, %v1572_v34 }
 0x538   : > { %v1541_v52 = vor.u32 1.1754944e-38, %v1540_v40 }
 0x53b   : > { %v3546_v41 = vpop.eup %3545  ;;  %v4177_v43 = vpop.xlane.xlu0 %1467 }
 0x53c   : > { %v1500_v44 = vmul.f32 %v3546_v41, %v1453_v38  ;;  %3549 = vrcp.f32 %v4177_v43  ;;  %vm1505_vm10 = vweird.f32 %v3546_v41  ;;  %v4182_v51 = vpop.eup %3547 }
 0x53d   : > { %v1456_v45 = vpop.xlane.xlu2 %1455  ;;  %vm1506_vm12 = vmor %vm1504_vm11, %vm1505_vm10  ;;  %v1530_v59 = vmul.f32 %v4182_v51, %v4170_v39  ;;  %vm1535_vm10 = vweird.f32 %v4182_v51 }
 0x53e   : > { %v1501_v46 = vsub.f32 1.0, %v1500_v44  ;;  %3551 = vrcp.f32 %v1456_v45  ;;  %v4180_v50 = vpop.xlane.xlu1 %1461  ;;  %v1525_v12 = vand.u32 2147483648, %v1456_v45  ;;  %v1523_v19 = vand.u32 2147483647, %v1456_v45 }
 0x53f   : > { %3553 = vrcp.f32 %v4180_v50  ;;  %v1531_v9 = vsub.f32 1.0, %v1530_v59  ;;  %vm1519_vm3 = vweird.f32 %v1456_v45 }
 0x540   : > { %v1502_v48 = vmul.f32 %v3546_v41, %v1501_v46  ;;  %v1526_v28 = vor.u32 1.1754944e-38, %v1525_v12  ;;  %vm1524_vm5 = vcmp.eq.f32.partialorder %v1523_v19, 8.507059e+37  ;;  %v1538_v46 = vand.u32 2147483647, %v4170_v39 }
 0x542   : > { %v4184_v53 = vpop.eup %3549  ;;  %v1503_v54 = vadd.f32 %v3546_v41, %v1502_v48  ;;  %v1583_v48 = vand.u32 2147483647, %v4177_v43  ;;  %vm1539_vm15 = vcmp.eq.f32.partialorder %v1538_v46, 8.507059e+37 }
 0x543   : > { %v1575_v63 = vmul.f32 %v4184_v53, %v4177_v43  ;;  %vm1580_vm11 = vweird.f32 %v4184_v53 }
 0x544   : > { %v3552_v56 = vpop.eup %3551  ;;  %v1507_v57 = vsel %vm1506_vm12, %v3546_v41, %v1503_v54  ;;  %v1585_v41 = vand.u32 2147483648, %v4177_v43  ;;  %vm4222_vm12 = vmor %vm1534_vm7, %vm1535_vm10 }
 0x545   : > { %v1515_v1 = vmul.f32 %v3552_v56, %v1456_v45  ;;  %v3472_v3 = vpop.permute.xlu2 %3471  ;;  %v1512_v4 = vsel %vm1509_vm13, %v1511_v58, %v1507_v57  ;;  %v1576_v11 = vsub.f32 1.0, %v1575_v63  ;;  %v4196_v14 = vpop.eup %3553  ;;  %vm1520_vm1 = vweird.f32 %v3552_v56  ;;  %v1766_v45 = vld [vmem:[%s4710_s8] sm:$0xff] }
 0x546   : > { %v3473_v5 = vunpack.i.l.bf16 %v3472_v3  ;;  %v3474_v13 = vunpack.i.h.bf16 %v3472_v3  ;;  %v1513_v18 = vmul.f32 %v4135_v15, %v1512_v4  ;;  %v1532_v15 = vmul.f32 %v4182_v51, %v1531_v9  ;;  %vm1521_vm4 = vmor %vm1519_vm3, %vm1520_vm1 }
 0x547   : > { %v1516_v8 = vsub.f32 1.0, %v1515_v1  ;;  %v1577_v27 = vmul.f32 %v4184_v53, %v1576_v11  ;;  %v1545_v29 = vmul.f32 %v4196_v14, %v4180_v50  ;;  %vm1579_vm13 = vweird.f32 %v4177_v43 }
 0x548   : > { %1652 = vmatpush.msra.mxu0 %v3473_v5  ;;  %v1533_v36 = vadd.f32 %v4182_v51, %v1532_v15  ;;  %vm1581_vm14 = vmor %vm1579_vm13, %vm1580_vm11  ;;  %v1586_v54 = vor.u32 1.1754944e-38, %v1585_v41  ;;  %vm1584_vm1 = vcmp.eq.f32.partialorder %v1583_v48, 8.507059e+37  ;;  %vm1550_vm2 = vweird.f32 %v4196_v14  ;;  %v1769_v41 = vld [vmem:[%s4710_s8 + $0x18] sm:$0xff] }
 0x549   : > { %v1517_v16 = vmul.f32 %v3552_v56, %v1516_v8  ;;  %v1546_v37 = vsub.f32 1.0, %v1545_v29  ;;  %v1578_v38 = vadd.f32 %v4184_v53, %v1577_v27  ;;  %v1555_v58 = vand.u32 2147483648, %v4180_v50 }
 0x54a   : > { %1653 = vmatpush.msra.mxu0 %v3474_v13  ;;  %vm1549_vm3 = vweird.f32 %v4180_v50  ;;  %v1553_v63 = vand.u32 2147483647, %v4180_v50 }
 0x54b   : > { %3292 = vmatmul.msk.f32.vlgmr.msra.gmra.mxu0 %vm1396_vm9, %v1513_v18  ;;  %v1518_v26 = vadd.f32 %v3552_v56, %v1517_v16  ;;  %v1547_v49 = vmul.f32 %v4196_v14, %v1546_v37  ;;  %v1582_v39 = vsel %vm1581_vm14, %v4184_v53, %v1578_v38  ;;  %v1556_v3 = vor.u32 1.1754944e-38, %v1555_v58 }
 0x54d   : > { %v1522_v31 = vsel %vm1521_vm4, %v3552_v56, %v1518_v26  ;;  %v1587_v56 = vsel %vm1584_vm1, %v1586_v54, %v1582_v39  ;;  %v1548_v57 = vadd.f32 %v4196_v14, %v1547_v49  ;;  %vm1551_vm4 = vmor %vm1549_vm3, %vm1550_vm2  ;;  %vm1669_vm1 = vcmask 130112  }
 0x54e   : > { %v3467_v32 = vpop.permute.xlu0 %3466  ;;  %v1527_v33 = vsel %vm1524_vm5, %v1526_v28, %v1522_v31  ;;  %v1588_v53 = vmul.f32 %v4143_v22, %v1587_v56  ;;  %vm1554_vm5 = vcmp.eq.f32.partialorder %v1553_v63, 8.507059e+37  ;;  %vm1715_vm2 = vcmask 195712  }
 0x54f   : > { %v3468_v60 = vunpack.i.l.bf16 %v3467_v32  ;;  %v3469_v42 = vunpack.i.h.bf16 %v3467_v32  ;;  %v1528_v44 = vmul.f32 %v4147_v24, %v1527_v33  ;;  %v1537_v24 = vsel %vm4222_vm12, %v4182_v51, %v1533_v36 }
 0x550   : > { %v1542_v55 = vsel %vm1539_vm15, %v1541_v52, %v1537_v24  ;;  %v1552_v1 = vsel %vm1551_vm4, %v4196_v14, %v1548_v57  ;;  %vm1761_vm3 = vcmask 261312  }
 0x551   : > { %1744 = vmatpush.msrb.mxu2 %v3468_v60  ;;  %v1543_v51 = vmul.f32 %v4137_v17, %v1542_v55  ;;  %v1557_v6 = vsel %vm1554_vm5, %v1556_v3, %v1552_v1 }
 0x552   : > { %v1558_v17 = vmul.f32 %v4149_v25, %v1557_v6 }
 0x553   : > { %3293 = vmatmul.msk.f32.gmra.mxu0 %vm1396_vm9, %v1528_v44  ;;  %1745 = vmatpush.msrb.mxu2 %v3469_v42  ;;  %v1768_v42 = vld [vmem:[%s4710_s8 + $0x10] sm:$0xff]  ;;  %v1767_v44 = vld [vmem:[%s4710_s8 + $0x8] sm:$0xff]  ;;  %s4741_s8 = smov 80  }
 0x554   : > { %3296 = vmatmul.msk.f32.vlgmr.msrb.gmra.mxu2 %vm1396_vm9, %v1573_v47 }
 0x556   : > { %v3477_v61 = vpop.permute.xlu1 %3476 }
 0x557   : > { %v3478_v43 = vunpack.i.l.bf16 %v3477_v61  ;;  %v3479_v59 = vunpack.i.h.bf16 %v3477_v61  ;;  %v3510_v61 = vld [vmem:[%s4722_s14] ss:$0 sm:$0xff]  ;;  %s3023_s14 = sand.u32 1, %s3997_s0  }
 0x559   : > { %1698 = vmatpush.msrb.mxu1 %v3478_v43 }
 0x55b   : > { %1699 = vmatpush.msrb.mxu1 %v3479_v59 }
 0x55c   : > { %3294 = vmatmul.msk.f32.vlgmr.msrb.gmra.mxu1 %vm1396_vm9, %v1543_v51  ;;  %3297 = vmatmul.msk.f32.gmra.mxu2 %vm1396_vm9, %v1588_v53 }
 0x55e   : > { %v3482_v4 = vpop.permute.xlu1 %3481 }
 0x55f   : > { %v3483_v5 = vunpack.i.l.bf16 %v3482_v4  ;;  %v3484_v7 = vunpack.i.h.bf16 %v3482_v4 }
 0x561   : > { %1615 = vmatpush.msrb.mxu3 %v3483_v5 }
 0x563   : > { %1616 = vmatpush.msrb.mxu3 %v3484_v7 }
 0x564   : > { %3295 = vmatmul.msk.f32.gmra.mxu1 %vm1396_vm9, %v1558_v17 }
 0x565   : > { %1792 = vmatpush.msra.mxu3 %v1769_v41 }
 0x567   : > { %1793 = vmatpush.msra.mxu3 %v1768_v42 }
 0x569   : > { %1794 = vmatpush.msra.mxu3 %v1767_v44 }
 0x56b   : > { %1795 = vmatpush.msra.mxu3 %v1766_v45  ;;  %v1928_v45 = vld [vmem:[%s4708_s12 + $0x60] sm:$0xff] }
 0x579   : > { %v1447_v22 = vpop.xlane.xlu0 %1446 }
 0x57a   : > { %3555 = vrcp.f32 %v1447_v22  ;;  %v1480_v12 = vand.u32 2147483648, %v1447_v22  ;;  %v1478_v16 = vand.u32 2147483647, %v1447_v22  ;;  %vm1474_vm7 = vweird.f32 %v1447_v22 }
 0x57c   : > { %v1481_v25 = vor.u32 1.1754944e-38, %v1480_v12  ;;  %vm1479_vm11 = vcmp.eq.f32.partialorder %v1478_v16, 8.507059e+37  ;;  %v1930_v16 = vld [vmem:[%s4708_s12 + $0x70] sm:$0xff] }
 0x57e   : > { %v1450_v50 = vpop.xlane.xlu2 %1449 }
 0x57f   : > { %3557 = vrcp.f32 %v1450_v50  ;;  %v1495_v26 = vand.u32 2147483648, %v1450_v50  ;;  %v1493_v28 = vand.u32 2147483647, %v1450_v50  ;;  %vm1489_vm13 = vweird.f32 %v1450_v50 }
 0x580   : > { %v3556_v8 = vpop.eup %3555 }
 0x581   : > { %v1470_v9 = vmul.f32 %v3556_v8, %v1447_v22  ;;  %vm1475_vm6 = vweird.f32 %v3556_v8  ;;  %v1496_v30 = vor.u32 1.1754944e-38, %v1495_v26  ;;  %vm1494_vm15 = vcmp.eq.f32.partialorder %v1493_v28, 8.507059e+37  ;;  %v1864_v22 = vld [vmem:[%s3874_s30 + $0x18] sm:$0xff] }
 0x582   : > { %vm1476_vm10 = vmor %vm1474_vm7, %vm1475_vm6  ;;  %1887 = vmatpush.msrb.mxu0 %v1864_v22 }
 0x583   : > { %v1471_v11 = vsub.f32 1.0, %v1470_v9  ;;  %v1861_v9 = vld [vmem:[%s3874_s30] sm:$0xff] }
 0x585   : > { %v3558_v13 = vpop.eup %3557  ;;  %v1472_v14 = vmul.f32 %v3556_v8, %v1471_v11 }
 0x586   : > { %v1485_v18 = vmul.f32 %v3558_v13, %v1450_v50  ;;  %vm1490_vm12 = vweird.f32 %v3558_v13  ;;  %v1863_v50 = vld [vmem:[%s3874_s30 + $0x10] sm:$0xff] }
 0x587   : > { %v1473_v19 = vadd.f32 %v3556_v8, %v1472_v14  ;;  %vm1491_vm14 = vmor %vm1489_vm13, %vm1490_vm12  ;;  %1888 = vmatpush.msrb.mxu0 %v1863_v50  ;;  %v1931_v14 = vld [vmem:[%s4708_s12 + $0x78] sm:$0xff] }
 0x588   : > { %v1486_v20 = vsub.f32 1.0, %v1485_v18  ;;  %1932 = vmatpush.msra.mxu1 %v1931_v14  ;;  %v1929_v18 = vld [vmem:[%s4708_s12 + $0x68] sm:$0xff] }
 0x589   : > { %v1477_v21 = vsel %vm1476_vm10, %v3556_v8, %v1473_v19  ;;  %v1862_v8 = vld [vmem:[%s3874_s30 + $0x8] sm:$0xff] }
 0x58a   : > { %v1487_v23 = vmul.f32 %v3558_v13, %v1486_v20  ;;  %v1482_v15 = vsel %vm1479_vm11, %v1481_v25, %v1477_v21  ;;  %1889 = vmatpush.msrb.mxu0 %v1862_v8  ;;  %1933 = vmatpush.msra.mxu1 %v1930_v16 }
 0x58b   : > { %v1483_v27 = vmul.f32 %v4159_v35, %v1482_v15 }
 0x58c   : > { %v1488_v29 = vadd.f32 %v3558_v13, %v1487_v23  ;;  %1890 = vmatpush.msrb.mxu0 %v1861_v9  ;;  %1934 = vmatpush.msra.mxu1 %v1929_v18 }
 0x58d   : > { %3290 = vmatmul.msk.f32.vlgmr.msrb.gmra.mxu3 %vm1396_vm9, %v1483_v27 }
 0x58e   : > { %v1492_v31 = vsel %vm1491_vm14, %v3558_v13, %v1488_v29  ;;  %1935 = vmatpush.msra.mxu1 %v1928_v45 }
 0x58f   : > { %v1497_v32 = vsel %vm1494_vm15, %v1496_v30, %v1492_v31  ;;  %v3511_v30 = vld [vmem:[%s3864_s19] ss:$0 sm:$0xff] }
 0x590   : > { %v1498_v33 = vmul.f32 %v4163_v62, %v1497_v32 }
 0x595   : > { %3291 = vmatmul.msk.f32.gmra.mxu3 %vm1396_vm9, %v1498_v33 }
 0x5c8   : > { %v1655_v34 = vpop.f32.mrf.mxu0 }
 0x5c9   : > { %1663 = vrot.lane.b32.xlu1 %v1655_v34, %s4664_s9 }
 0x5d0   : > { %v1658_v60 = vpop.f32.mrf.mxu0 }
 0x5d1   : > { %1665 = vrot.lane.b32.xlu0 %v1658_v60, %s4664_s9  ;;  %v3512_v60 = vld [vmem:[%s3869_s24] ss:$0 sm:$0xff]  ;;  %s4724_s9 = sld [smem:[#allocation20_spill]] }
 0x5d7   : > { %v1747_v35 = vpop.f32.mrf.mxu2 }
 0x5d9   : > { %v1701_v36 = vpop.f32.mrf.mxu1 }
 0x5da   : > { %1709 = vrot.lane.b32.xlu1 %v1701_v36, %s4666_s3 }
 0x5df   : > { %v1750_v37 = vpop.f32.mrf.mxu2 }
 0x5e0   : > { %1757 = vrot.lane.b32.xlu2 %v1750_v37, %s3798_s10 }
 0x5e1   : > { %v1704_v62 = vpop.f32.mrf.mxu1 }
 0x5e2   : > { %1755 = vrot.lane.b32.xlu1 %v1747_v35, %s3798_s10  ;;  %s4723_s10 = sld [smem:[#allocation18_spill]] }
 0x5ea   : > { %1711 = vrot.lane.b32.xlu1 %v1704_v62, %s4666_s3  ;;  %s4726_s3 = sld [smem:[#allocation24_spill]] }
 0x610   : > { %v1618_v38 = vpop.f32.mrf.mxu3 }
 0x611   : > { %1624 = vst.msk [vmem:[#allocation2] sm:$0xff] %vm1245_vm8, %v1618_v38 }
 0x618   : > { %v1621_v40 = vpop.f32.mrf.mxu3 }
 0x619   : > { %1625 = vst.msk [vmem:[#allocation2 + $0x8] sm:$0xff] %vm1245_vm8, %v1621_v40 }
 0x63a   : > { %v1758_v52 = vpop.permute.xlu2 %1757 }
 0x63b   : > { %v1664_v46 = vpop.permute.xlu1 %1663 }
 0x63c   : > { %1670 = vst.msk [vmem:[#allocation2] sm:$0xff] %vm1669_vm1, %v1664_v46  ;;  %v1927_v46 = vld [vmem:[%s4708_s12 + $0x58] sm:$0xff] }
 0x63d   : > { %1936 = vmatpush.msra.mxu1 %v1927_v46 }
 0x643   : > { %v1666_v47 = vpop.permute.xlu0 %1665 }
 0x644   : > { %1671 = vst.msk [vmem:[#allocation2 + $0x8] sm:$0xff] %vm1669_vm1, %v1666_v47  ;;  %v1926_v47 = vld [vmem:[%s4708_s12 + $0x50] sm:$0xff] }
 0x645   : > { %1937 = vmatpush.msra.mxu1 %v1926_v47 }
 0x64c   : > { %v1710_v48 = vpop.permute.xlu1 %1709 }
 0x64d   : > { %1716 = vst.msk [vmem:[#allocation2] sm:$0xff] %vm1715_vm2, %v1710_v48  ;;  %v1925_v48 = vld [vmem:[%s4708_s12 + $0x48] sm:$0xff] }
 0x64e   : > { %1938 = vmatpush.msra.mxu1 %v1925_v48 }
 0x654   : > { %v1756_v49 = vpop.permute.xlu1 %1755 }
 0x655   : > { %1762 = vst.msk [vmem:[#allocation2] sm:$0xff] %vm1761_vm3, %v1756_v49  ;;  %v1924_v49 = vld [vmem:[%s4708_s12 + $0x40] sm:$0xff] }
 0x656   : > { %1939 = vmatpush.msra.mxu1 %v1924_v49 }
 0x65c   : > { %v1712_v24 = vpop.permute.xlu1 %1711  ;;  %v1764_v39 = vld [vmem:[#allocation2] sm:$0xff] }
 0x65d   : > { %1717 = vst.msk [vmem:[#allocation2 + $0x8] sm:$0xff] %vm1715_vm2, %v1712_v24  ;;  %3298 = vmatmul.msk.f32.vlgmr.msra.gmra.mxu3 %vm1044_vm0, %v1764_v39  ;;  %v1923_v24 = vld [vmem:[%s4708_s12 + $0x38] sm:$0xff]  ;;  %v1922_v39 = vld [vmem:[%s4708_s12 + $0x30] sm:$0xff]  ;;  %vm2105_vm2 = vcmask 195584  }
 0x65e   : > { %1763 = vst.msk [vmem:[#allocation2 + $0x8] sm:$0xff] %vm1761_vm3, %v1758_v52  ;;  %1940 = vmatpush.msra.mxu1 %v1923_v24  ;;  %v1921_v52 = vld [vmem:[%s4708_s12 + $0x28] sm:$0xff] }
 0x660   : > { %1941 = vmatpush.msra.mxu1 %v1922_v39 }
 0x662   : > { %1942 = vmatpush.msra.mxu1 %v1921_v52 }
 0x665   : > { %v1765_v54 = vld [vmem:[#allocation2 + $0x8] sm:$0xff] }
 0x666   : > { %3299 = vmatmul.msk.f32.gmra.mxu3 %vm1044_vm0, %v1765_v54  ;;  %v1920_v54 = vld [vmem:[%s4708_s12 + $0x20] sm:$0xff] }
 0x667   : > { %1943 = vmatpush.msra.mxu1 %v1920_v54 }
 0x6e0   : > { %v1797_v43 = vpop.f32.mrf.mxu3 }
 0x6e1   : > { %v1798_v55 = vadd.f32 %v3510_v61, %v1797_v43  ;;  %v1918_v43 = vld [vmem:[%s4708_s12 + $0x10] sm:$0xff] }
 0x6e3   : > { %v4267_v56 = vadd.f32 %v1798_v55, %v4034_v0  ;;  %v1917_v55 = vld [vmem:[%s4708_s12 + $0x8] sm:$0xff] }
 0x6e5   : > { %v1807_v57 = vsel %vm1044_vm0, %v4267_v56, 0.0 }
 0x6e6   : > { %1808 = vadd.xlane.f32.xlu1 %v1807_v57  ;;  %v1916_v57 = vld [vmem:[%s4708_s12] sm:$0xff] }
 0x6e9   : > { %v1800_v58 = vpop.f32.mrf.mxu3 }
 0x6ea   : > { %v1801_v59 = vadd.f32 %v3510_v61, %v1800_v58  ;;  %v1919_v61 = vld [vmem:[%s4708_s12 + $0x18] sm:$0xff]  ;;  %v3513_v58 = vld [vmem:[%s4723_s10] ss:$0 sm:$0xff]  ;;  %s4725_s10 = sld [smem:[#allocation22_spill]] }
 0x6eb   : > { %1944 = vmatpush.msra.mxu1 %v1919_v61 }
 0x6ec   : > { %v4272_v51 = vadd.f32 %v1801_v59, %v4038_v2 }
 0x6ed   : > { %1945 = vmatpush.msra.mxu1 %v1918_v43 }
 0x6ee   : > { %v1810_v53 = vsel %vm1044_vm0, %v4272_v51, 0.0 }
 0x6ef   : > { %1811 = vadd.xlane.f32.xlu0 %v1810_v53  ;;  %1946 = vmatpush.msra.mxu1 %v1917_v55 }
 0x6f1   : > { %1947 = vmatpush.msra.mxu1 %v1916_v57 }
 0x759   : > { %v1809_v63 = vpop.xlane.xlu1 %1808 }
 0x75a   : > { %v1813_v0 = vmul.f32 %v1809_v63, %v4042_v10 }
 0x75c   : > { %v1815_v1 = vsub.f32 %v4267_v56, %v1813_v0 }
 0x75e   : > { %v1817_v3 = vmul.f32 %v1815_v1, %v1815_v1 }
 0x760   : > { %v1819_v4 = vsel %vm1044_vm0, %v1817_v3, 0.0 }
 0x761   : > { %1820 = vadd.xlane.f32.xlu2 %v1819_v4 }
 0x762   : > { %v1812_v5 = vpop.xlane.xlu0 %1811 }
 0x763   : > { %v1814_v2 = vmul.f32 %v1812_v5, %v4042_v10 }
 0x765   : > { %v1816_v6 = vsub.f32 %v4272_v51, %v1814_v2 }
 0x767   : > { %v1818_v7 = vmul.f32 %v1816_v6, %v1816_v6 }
 0x769   : > { %v1822_v17 = vsel %vm1044_vm0, %v1818_v7, 0.0 }
 0x76a   : > { %1823 = vadd.xlane.f32.xlu1 %v1822_v17 }
 0x7d4   : > { %v1821_v11 = vpop.xlane.xlu2 %1820 }
 0x7d5   : > { %v1825_v12 = vmul.f32 %v1821_v11, %v4042_v10 }
 0x7d7   : > { %v1827_v13 = vadd.f32 1e-05, %v1825_v12 }
 0x7d9   : > { %3559 = vrsqrt.f32 %v1827_v13  ;;  %vm1835_vm4 = vweird.f32 %v1827_v13 }
 0x7dd   : > { %v1824_v19 = vpop.xlane.xlu1 %1823 }
 0x7de   : > { %v1826_v25 = vmul.f32 %v1824_v19, %v4042_v10  ;;  %v3514_v19 = vld [vmem:[%s4724_s9] ss:$0 sm:$0xff]  ;;  %s4727_s9 = sld [smem:[#allocation21_spill]] }
 0x7df   : > { %v3560_v20 = vpop.eup %3559 }
 0x7e0   : > { %v1830_v21 = vmul.f32 %v3560_v20, %v1827_v13  ;;  %v1828_v23 = vadd.f32 1e-05, %v1826_v25  ;;  %vm1836_vm8 = vweird.f32 %v3560_v20 }
 0x7e1   : > { %vm1837_vm5 = vmor %vm1835_vm4, %vm1836_vm8  ;;  %vm2696_vm4 = vcmask 556544  }
 0x7e2   : > { %v1831_v26 = vmul.f32 %v3560_v20, %v1830_v21  ;;  %3561 = vrsqrt.f32 %v1828_v23  ;;  %vm1845_vm7 = vweird.f32 %v1828_v23 }
 0x7e4   : > { %v1832_v15 = vmul.f32 0.5, %v1831_v26  ;;  %v3515_v24 = vld [vmem:[%s4727_s9] ss:$0 sm:$0xff]  ;;  %s4730_s9 = sld [smem:[#allocation25_spill]] }
 0x7e6   : > { %v1833_v27 = vsub.f32 1.5, %v1832_v15 }
 0x7e8   : > { %v3562_v28 = vpop.eup %3561  ;;  %v1834_v29 = vmul.f32 %v3560_v20, %v1833_v27 }
 0x7e9   : > { %v1840_v31 = vmul.f32 %v3562_v28, %v1828_v23  ;;  %vm1846_vm6 = vweird.f32 %v3562_v28 }
 0x7ea   : > { %v1838_v32 = vsel %vm1837_vm5, %v3560_v20, %v1834_v29  ;;  %vm1847_vm10 = vmor %vm1845_vm7, %vm1846_vm6 }
 0x7eb   : > { %v1849_v33 = vmul.f32 %v1838_v32, %v1815_v1  ;;  %v1841_v34 = vmul.f32 %v3562_v28, %v1840_v31  ;;  %v2043_v31 = vld [vmem:[%s4726_s3 + $0x18] sm:$0xff]  ;;  %v2005_v32 = vld [vmem:[%s4725_s10 + $0x10] sm:$0xff] }
 0x7ec   : > { %2056 = vmatpush.msrb.mxu3 %v2043_v31 }
 0x7ed   : > { %v1854_v35 = vmul.f32 %v3511_v30, %v1849_v33  ;;  %v1842_v36 = vmul.f32 0.5, %v1841_v34  ;;  %v2042_v33 = vld [vmem:[%s4726_s3 + $0x10] sm:$0xff]  ;;  %v2004_v34 = vld [vmem:[%s4725_s10 + $0x8] sm:$0xff] }
 0x7ee   : > { %2057 = vmatpush.msrb.mxu3 %v2042_v33 }
 0x7ef   : > { %v1843_v37 = vsub.f32 1.5, %v1842_v36  ;;  %v1859_v62 = vadd.f32 %v3512_v60, %v1854_v35  ;;  %v2040_v35 = vld [vmem:[%s4726_s3] sm:$0xff] }
 0x7f1   : > { %v1844_v38 = vmul.f32 %v3562_v28, %v1843_v37  ;;  %3300 = vmatmul.msk.f32.vlgmr.msrb.gmra.mxu0 %vm1044_vm0, %v1859_v62 }
 0x7f3   : > { %v1848_v40 = vsel %vm1847_vm10, %v3562_v28, %v1844_v38 }
 0x7f4   : > { %v1850_v41 = vmul.f32 %v1848_v40, %v1816_v6 }
 0x7f6   : > { %v1855_v42 = vmul.f32 %v3511_v30, %v1850_v41  ;;  %v2006_v30 = vld [vmem:[%s4725_s10 + $0x18] sm:$0xff] }
 0x7f7   : > { %2029 = vmatpush.msra.mxu2 %v2006_v30 }
 0x7f8   : > { %v1860_v44 = vadd.f32 %v3512_v60, %v1855_v42  ;;  %v2003_v60 = vld [vmem:[%s4725_s10] sm:$0xff] }
 0x7f9   : > { %2030 = vmatpush.msra.mxu2 %v2005_v32 }
 0x7fa   : > { %3301 = vmatmul.msk.f32.gmra.mxu0 %vm1044_vm0, %v1860_v44 }
 0x7fb   : > { %2031 = vmatpush.msra.mxu2 %v2004_v34 }
 0x7fd   : > { %2032 = vmatpush.msra.mxu2 %v2003_v60 }
 0x86e   : > { %v1892_v59 = vpop.f32.mrf.mxu0 }
 0x86f   : > { %v1893_v53 = vadd.f32 %v3513_v58, %v1892_v59 }
 0x871   : > { %v1898_v63 = vmul.f32 %v1893_v53, %v1893_v53 }
 0x873   : > { %v1900_v0 = vmul.f32 %v1898_v63, %v1893_v53  ;;  %v3516_v63 = vld [vmem:[%s4728_s5] ss:$0 sm:$0xff]  ;;  %s4731_s5 = smov 64  }
 0x875   : > { %v1902_v1 = vmul.f32 0.044715, %v1900_v0 }
 0x877   : > { %v1904_v3 = vadd.f32 %v1902_v1, %v1893_v53  ;;  %v1895_v4 = vpop.f32.mrf.mxu0 }
 0x878   : > { %v1896_v5 = vadd.f32 %v3513_v58, %v1895_v4 }
 0x879   : > { %v1906_v2 = vmul.f32 0.7978846, %v1904_v3 }
 0x87a   : > { %v1899_v6 = vmul.f32 %v1896_v5, %v1896_v5 }
 0x87b   : > { %3563 = vtanh.f32 %v1906_v2 }
 0x87c   : > { %v1901_v7 = vmul.f32 %v1899_v6, %v1896_v5 }
 0x87e   : > { %v1903_v17 = vmul.f32 0.044715, %v1901_v7 }
 0x880   : > { %v1905_v22 = vadd.f32 %v1903_v17, %v1896_v5 }
 0x881   : > { %v3564_v50 = vpop.eup %3563 }
 0x882   : > { %v1910_v8 = vadd.f32 1.0, %v3564_v50  ;;  %v1907_v9 = vmul.f32 0.7978846, %v1905_v22  ;;  %v2096_v50 = vld [vmem:[%s4730_s9] sm:$0xff] }
 0x884   : > { %v1912_v11 = vmul.f32 0.5, %v1910_v8  ;;  %3565 = vtanh.f32 %v1907_v9 }
 0x886   : > { %v1914_v12 = vmul.f32 %v1912_v11, %v1893_v53 }
 0x888   : > { %1948 = vmatmul.f32.vlgmr.msra.gmra.mxu1 %v1914_v12 }
 0x88a   : > { %v3566_v13 = vpop.eup %3565 }
 0x88b   : > { %v1911_v14 = vadd.f32 1.0, %v3566_v13  ;;  %v2097_v13 = vld [vmem:[%s4730_s9 + $0x8] sm:$0xff] }
 0x88d   : > { %v1913_v16 = vmul.f32 0.5, %v1911_v14 }
 0x88f   : > { %v1915_v18 = vmul.f32 %v1913_v16, %v1896_v5 }
 0x891   : > { %1951 = vmatmul.f32.gmra.mxu1 %v1915_v18 }
 0x905   : > { %v1949_v25 = vpop.f32.mrf.mxu1 }
 0x906   : > { %v1955_v20 = vadd.f32 %v1949_v25, %v4267_v56 }
 0x908   : > { %v4311_v21 = vadd.f32 %v3514_v19, %v1955_v20 }
 0x90a   : > { %v1964_v23 = vmul.f32 %v4311_v21, %v4311_v21 }
 0x90c   : > { %v1966_v26 = vsel %vm1044_vm0, %v1964_v23, 0.0 }
 0x90d   : > { %1967 = vadd.xlane.f32.xlu1 %v1966_v26 }
 0x90e   : > { %v1952_v15 = vpop.f32.mrf.mxu1 }
 0x90f   : > { %v1956_v27 = vadd.f32 %v1952_v15, %v4272_v51  ;;  %v2041_v51 = vld [vmem:[%s4726_s3 + $0x8] sm:$0xff]  ;;  %s1034_s3 = scalar_lea.vmem %s4729_s15, %s3265_s16  ;;  %s4732_s15 = sld [smem:[#allocation26_spill]] }
 0x910   : > { %2058 = vmatpush.msrb.mxu3 %v2041_v51  ;;  %v2095_v17 = vld [vmem:[%s1034_s3] sm:$0xff]  ;;  %s4735_s16 = sld [smem:[#allocation27_spill]]  ;;  %s4738_s3 = smov 48  }
 0x911   : > { %v4317_v28 = vadd.f32 %v3514_v19, %v1956_v27 }
 0x912   : > { %2059 = vmatpush.msrb.mxu3 %v2040_v35 }
 0x913   : > { %v1965_v56 = vmul.f32 %v4317_v28, %v4317_v28 }
 0x915   : > { %v1969_v29 = vsel %vm1044_vm0, %v1965_v56, 0.0  ;;  %v2098_v56 = vld [vmem:[%s4730_s9 + $0x10] sm:$0xff] }
 0x916   : > { %1970 = vadd.xlane.f32.xlu0 %v1969_v29 }
 0x980   : > { %v1968_v36 = vpop.xlane.xlu1 %1967 }
 0x981   : > { %v1972_v37 = vmul.f32 %v1968_v36, %v4042_v10  ;;  %v2099_v36 = vld [vmem:[%s4730_s9 + $0x18] sm:$0xff] }
 0x983   : > { %v1974_v62 = vadd.f32 1e-05, %v1972_v37 }
 0x985   : > { %3567 = vrsqrt.f32 %v1974_v62  ;;  %vm1982_vm12 = vweird.f32 %v1974_v62 }
 0x989   : > { %v1971_v38 = vpop.xlane.xlu0 %1970 }
 0x98a   : > { %v1973_v40 = vmul.f32 %v1971_v38, %v4042_v10  ;;  %v2101_v38 = vld [vmem:[%s4730_s9 + $0x28] sm:$0xff] }
 0x98b   : > { %v3568_v41 = vpop.eup %3567 }
 0x98c   : > { %v1977_v42 = vmul.f32 %v3568_v41, %v1974_v62  ;;  %v1975_v44 = vadd.f32 1e-05, %v1973_v40  ;;  %vm1983_vm11 = vweird.f32 %v3568_v41  ;;  %v2100_v62 = vld [vmem:[%s4730_s9 + $0x20] sm:$0xff]  ;;  %v2102_v40 = vld [vmem:[%s4730_s9 + $0x30] sm:$0xff] }
 0x98d   : > { %vm1984_vm13 = vmor %vm1982_vm12, %vm1983_vm11 }
 0x98e   : > { %v1978_v45 = vmul.f32 %v3568_v41, %v1977_v42  ;;  %3569 = vrsqrt.f32 %v1975_v44  ;;  %vm1992_vm15 = vweird.f32 %v1975_v44 }
 0x990   : > { %v1979_v46 = vmul.f32 0.5, %v1978_v45 }
 0x992   : > { %v1980_v47 = vsub.f32 1.5, %v1979_v46 }
 0x994   : > { %v3570_v48 = vpop.eup %3569  ;;  %v1981_v49 = vmul.f32 %v3568_v41, %v1980_v47 }
 0x995   : > { %v1987_v39 = vmul.f32 %v3570_v48, %v1975_v44  ;;  %vm1993_vm14 = vweird.f32 %v3570_v48  ;;  %v2244_v44 = vlaneseq }
 0x996   : > { %v1985_v52 = vsel %vm1984_vm13, %v3568_v41, %v1981_v49  ;;  %vm1994_vm1 = vmor %vm1992_vm15, %vm1993_vm14  ;;  %v2103_v41 = vld [vmem:[%s4730_s9 + $0x38] sm:$0xff] }
 0x997   : > { %v1996_v54 = vmul.f32 %v1985_v52, %v4311_v21  ;;  %v1988_v61 = vmul.f32 %v3570_v48, %v1987_v39  ;;  %v2245_v45 = vshrl.u32 %v2244_v44, 7  ;;  %v2248_v46 = vand.u32 127, %v2244_v44 }
 0x999   : > { %v2001_v10 = vmul.f32 %v3515_v24, %v1996_v54  ;;  %v1989_v43 = vmul.f32 0.5, %v1988_v61  ;;  %vm4372_vm7 = vcmp.le.s32.totalorder %v2248_v46, %v2245_v45  ;;  %v2246_v54 = vadd.s32 8, %v2245_v45 }
 0x99b   : > { %v1990_v55 = vsub.f32 1.5, %v1989_v43  ;;  %3302 = vmatmul.msk.f32.vlgmr.msra.gmra.mxu2 %vm1044_vm0, %v2001_v10  ;;  %3304 = vmatmul.msk.f32.vlgmr.msrb.gmra.mxu3 %vm1044_vm0, %v2001_v10  ;;  %vm4388_vm10 = vcmp.le.s32.totalorder %v2248_v46, %v2246_v54 }
 0x99d   : > { %v1991_v57 = vmul.f32 %v3570_v48, %v1990_v55 }
 0x99f   : > { %v1995_v58 = vsel %vm1994_vm1, %v3570_v48, %v1991_v57 }
 0x9a0   : > { %v1997_v59 = vmul.f32 %v1995_v58, %v4317_v28  ;;  %v2177_v58 = vld [vmem:[%s4732_s15] sm:$0xf]  ;;  %s4739_s15 = sld [smem:[#allocation30_spill]] }
 0x9a2   : > { %v2002_v53 = vmul.f32 %v3515_v24, %v1997_v59  ;;  %v3799_v24 = vmov 0.0   ;;  %v2179_v59 = vperm.slane %v2177_v58, 0 }
 0x9a3   : > { %v4381_v39 = vsel %vm4372_vm7, 1.0, %v3799_v24  ;;  %v4394_v43 = vsel %vm4388_vm10, 1.0, %v3799_v24 }
 0x9a4   : > { %3303 = vmatmul.msk.f32.gmra.mxu2 %vm1044_vm0, %v2002_v53  ;;  %3305 = vmatmul.msk.f32.gmra.mxu3 %vm1044_vm0, %v2002_v53  ;;  %v2187_v53 = vperm.slane %v2177_v58, 1 }
 0xa1e   : > { %v2034_v0 = vpop.f32.mrf.mxu2  ;;  %v2061_v1 = vpop.f32.mrf.mxu3 }
 0xa1f   : > { %v4340_v3 = vadd.f32 %v3516_v63, %v2034_v0 }
 0xa21   : > { %v2069_v4 = vmin.f32 %v4340_v3, 20.0  ;;  %vm2067_vm8 = vcmp.gt.f32.partialorder %v4340_v3, 20.0 }
 0xa23   : > { %v2071_v5 = vmul.f32 1.442695, %v2069_v4  ;;  %v2192_v4 = vperm.slane %v2177_v58, 2 }
 0xa25   : > { %3571 = vpow2.f32 %v2071_v5 }
 0xa27   : > { %v2037_v2 = vpop.f32.mrf.mxu2  ;;  %v2064_v6 = vpop.f32.mrf.mxu3 }
 0xa28   : > { %v4345_v7 = vadd.f32 %v3516_v63, %v2037_v2  ;;  %2146 = vmatpush.msra.mxu0 %v2064_v6 }
 0xa2a   : > { %v2070_v22 = vmin.f32 %v4345_v7, 20.0  ;;  %2147 = vmatpush.msra.mxu0 %v2061_v1  ;;  %vm2068_vm6 = vcmp.gt.f32.partialorder %v4345_v7, 20.0  ;;  %v3517_v1 = vld [vmem:[%s4735_s16] ss:$0 sm:$0xff]  ;;  %s4740_s16 = smov 112  }
 0xa2b   : > { %v3572_v8 = vpop.eup %3571 }
 0xa2c   : > { %v2073_v9 = vmul.f32 1.442695, %v2070_v22  ;;  %2148 = vmatpush.msra.mxu0 %v2095_v17  ;;  %v2075_v11 = vadd.f32 1.0, %v3572_v8  ;;  %v2078_v12 = vmul.f32 -0.5, %v3572_v8  ;;  %v2081_v16 = vand.u32 2147483647, %v3572_v8 }
 0xa2d   : > { %3306 = vmatmul.msk.f32.vlgmr.msra.gmra.mxu0 %vm2105_vm2, %v2096_v50  ;;  %v2197_v17 = vperm.slane %v2177_v58, 3  ;;  %v3800_v58 = vmov 0  }
 0xa2e   : > { %3573 = vpow2.f32 %v2073_v9  ;;  %v2079_v14 = vadd.f32 1.0, %v2078_v12  ;;  %vm2082_vm3 = vcmp.lt.f32.partialorder %v2081_v16, 0.0004427343  ;;  %3485 = vset.pattern.permute.xlu1 %v3800_v58  ;;  %3486 = vset.pattern.permute.xlu2 %v3800_v58 }
 0xa2f   : > { %3575 = vlog2.f32 %v2075_v11 }
 0xa30   : > { %v2080_v23 = vmul.f32 %v3572_v8, %v2079_v14 }
 0xa34   : > { %v3574_v18 = vpop.eup %3573 }
 0xa35   : > { %v3576_v19 = vpop.eup %3575  ;;  %3307 = vmatmul.msk.f32.gmra.mxu0 %vm2105_vm2, %v2097_v13  ;;  %v2084_v25 = vadd.f32 1.0, %v3574_v18  ;;  %v2087_v26 = vmul.f32 -0.5, %v3574_v18  ;;  %v2090_v30 = vand.u32 2147483647, %v3574_v18 }
 0xa36   : > { %v2077_v20 = vmul.f32 0.6931472, %v3576_v19 }
 0xa37   : > { %3577 = vlog2.f32 %v2084_v25  ;;  %v2088_v29 = vadd.f32 1.0, %v2087_v26  ;;  %vm2091_vm5 = vcmp.lt.f32.partialorder %v2090_v30, 0.0004427343 }
 0xa38   : > { %v2083_v15 = vsel %vm2082_vm3, %v2080_v23, %v2077_v20 }
 0xa39   : > { %v2093_v27 = vsel %vm2067_vm8, %v4340_v3, %v2083_v15  ;;  %v2089_v33 = vmul.f32 %v3574_v18, %v2088_v29 }
 0xa3a   : > { %2257 = vrot.lane.b32.xlu0 %v2093_v27, %s4731_s5  ;;  %v2697_v60 = vsel %vm2696_vm4, %v2093_v27, 0.0 }
 0xa3d   : > { %v3578_v31 = vpop.eup %3577  ;;  %3308 = vmatmul.msk.f32.gmra.mxu0 %vm2105_vm2, %v2098_v56 }
 0xa3e   : > { %v2086_v32 = vmul.f32 0.6931472, %v3578_v31 }
 0xa40   : > { %v2092_v34 = vsel %vm2091_vm5, %v2089_v33, %v2086_v32  ;;  %vm2736_vm5 = vcmask 31744  }
 0xa41   : > { %v2094_v51 = vsel %vm2068_vm6, %v4345_v7, %v2092_v34  ;;  %vm2588_vm6 = vcmask 261248  }
 0xa42   : > { %2259 = vrot.lane.b32.xlu1 %v2094_v51, %s4731_s5  ;;  %v2698_v35 = vsel %vm2696_vm4, %v2094_v51, 0.0  ;;  %vm2743_vm4 = vcmask 1043456  }
 0xa43   : > { %v4361_v37 = vadd.f32 %v2698_v35, %v2697_v60 }
 0xa45   : > { %3309 = vmatmul.msk.f32.gmra.mxu0 %vm2105_vm2, %v2099_v36 }
 0xa4d   : > { %3310 = vmatmul.msk.f32.gmra.mxu0 %vm2105_vm2, %v2100_v62 }
 0xa55   : > { %3311 = vmatmul.msk.f32.gmra.mxu0 %vm2105_vm2, %v2101_v38 }
 0xa5d   : > { %3312 = vmatmul.msk.f32.gmra.mxu0 %vm2105_vm2, %v2102_v40 }
 0xa65   : > { %3313 = vmatmul.msk.f32.gmra.mxu0 %vm2105_vm2, %v2103_v41 }
 0xaaa   : > { %v2150_v42 = vpop.f32.mrf.mxu0 }
 0xaab   : > { %v2180_v0 = vmul.f32 %v2179_v59, %v2150_v42 }
 0xaac   : > { %v4383_v52 = vpop.permute.xlu0 %2257 }
 0xaad   : > { %v2185_v2 = vadd.f32 %v3517_v1, %v2180_v0 }
 0xab2   : > { %v2153_v47 = vpop.f32.mrf.mxu0 }
 0xab3   : > { %v2181_v8 = vmul.f32 %v2179_v59, %v2153_v47  ;;  %v3518_v59 = vld [vmem:[%s4739_s15] ss:$0 sm:$0xff] }
 0xab4   : > { %v4376_v49 = vpop.permute.xlu1 %2259 }
 0xab5   : > { %2283 = vmatpush.msrb.mxu2 %v4376_v49  ;;  %v2186_v14 = vadd.f32 %v3517_v1, %v2181_v8 }
 0xab7   : > { %2284 = vmatpush.msrb.mxu2 %v4383_v52 }
 0xab8   : > { %3319 = vmatmul.msk.f32.vlgmr.msrb.gmra.mxu2 %vm1396_vm9, %v4381_v39 }
 0xaba   : > { %v2156_v61 = vpop.f32.mrf.mxu0 }
 0xabb   : > { %v2188_v5 = vmul.f32 %v2187_v53, %v2156_v61 }
 0xabd   : > { %v2190_v22 = vadd.f32 %v2188_v5, %v2185_v2  ;;  %v3802_v5 = vmov 2  }
 0xac0   : > { %3320 = vmatmul.msk.f32.gmra.mxu2 %vm1396_vm9, %v4394_v43 }
 0xac2   : > { %v2159_v55 = vpop.f32.mrf.mxu0 }
 0xac3   : > { %v2189_v12 = vmul.f32 %v2187_v53, %v2159_v55 }
 0xac5   : > { %v2191_v19 = vadd.f32 %v2189_v12, %v2186_v14 }
 0xaca   : > { %v2162_v57 = vpop.f32.mrf.mxu0 }
 0xacb   : > { %v2193_v6 = vmul.f32 %v2192_v4, %v2162_v57 }
 0xacd   : > { %v2195_v9 = vadd.f32 %v2193_v6, %v2190_v22  ;;  %v3803_v6 = vmov 3  }
 0xad2   : > { %v2165_v63 = vpop.f32.mrf.mxu0 }
 0xad3   : > { %v2194_v16 = vmul.f32 %v2192_v4, %v2165_v63  ;;  %v3801_v4 = vmov 1  }
 0xad5   : > { %v2196_v20 = vadd.f32 %v2194_v16, %v2191_v19 }
 0xada   : > { %v2168_v50 = vpop.f32.mrf.mxu0 }
 0xadb   : > { %v2198_v11 = vmul.f32 %v2197_v17, %v2168_v50 }
 0xadd   : > { %v2200_v13 = vadd.f32 %v2198_v11, %v2195_v9 }
 0xadf   : > { %v3315_v18 = vmul.f32 -1.442695, %v2200_v13 }
 0xae1   : > { %3579 = vpow2.f32 %v3315_v18  ;;  %v2700_v18 = vrot.slane %v4361_v37, 4 }
 0xae2   : > { %v2171_v25 = vpop.f32.mrf.mxu0 }
 0xae3   : > { %v2199_v23 = vmul.f32 %v2197_v17, %v2171_v25  ;;  %v2701_v25 = vadd.f32 %v2700_v18, %v4361_v37 }
 0xae5   : > { %v2201_v26 = vadd.f32 %v2199_v23, %v2196_v20  ;;  %v2702_v20 = vrot.slane %v2701_v25, 2 }
 0xae7   : > { %v3580_v15 = vpop.eup %3579  ;;  %v3316_v27 = vmul.f32 -1.442695, %v2201_v26 }
 0xae8   : > { %v2208_v56 = vadd.f32 1.0, %v3580_v15 }
 0xae9   : > { %3581 = vpow2.f32 %v3316_v27  ;;  %v2703_v27 = vadd.f32 %v2702_v20, %v2701_v25 }
 0xaea   : > { %3583 = vrcp.f32 %v2208_v56  ;;  %v2221_v34 = vand.u32 2147483648, %v2208_v56  ;;  %v2219_v60 = vand.u32 2147483647, %v2208_v56  ;;  %vm2215_vm12 = vweird.f32 %v2208_v56 }
 0xaec   : > { %v2222_v62 = vor.u32 1.1754944e-38, %v2221_v34  ;;  %vm2220_vm14 = vcmp.eq.f32.partialorder %v2219_v60, 8.507059e+37 }
 0xaef   : > { %v3582_v29 = vpop.eup %3581 }
 0xaf0   : > { %v3584_v30 = vpop.eup %3583  ;;  %v2209_v31 = vadd.f32 1.0, %v3582_v29 }
 0xaf1   : > { %v2211_v32 = vmul.f32 %v3584_v30, %v2208_v56  ;;  %vm2216_vm11 = vweird.f32 %v3584_v30  ;;  %v2704_v56 = vrot.slane %v2703_v27, 1 }
 0xaf2   : > { %3585 = vrcp.f32 %v2209_v31  ;;  %vm2217_vm13 = vmor %vm2215_vm12, %vm2216_vm11  ;;  %v2236_v45 = vand.u32 2147483648, %v2209_v31  ;;  %v2234_v47 = vand.u32 2147483647, %v2209_v31  ;;  %vm2230_vm1 = vweird.f32 %v2209_v31 }
 0xaf3   : > { %v2212_v33 = vsub.f32 1.0, %v2211_v32  ;;  %v2705_v29 = vadd.f32 %v2704_v56, %v2703_v27 }
 0xaf4   : > { %v2237_v54 = vor.u32 1.1754944e-38, %v2236_v45  ;;  %vm2235_vm8 = vcmp.eq.f32.partialorder %v2234_v47, 8.507059e+37 }
 0xaf5   : > { %v2213_v51 = vmul.f32 %v3584_v30, %v2212_v33 }
 0xaf7   : > { %v2214_v35 = vadd.f32 %v3584_v30, %v2213_v51 }
 0xaf8   : > { %v3586_v36 = vpop.eup %3585 }
 0xaf9   : > { %v2218_v38 = vsel %vm2217_vm13, %v3584_v30, %v2214_v35  ;;  %v2226_v40 = vmul.f32 %v3586_v36, %v2209_v31  ;;  %vm2231_vm15 = vweird.f32 %v3586_v36 }
 0xafa   : > { %v2223_v41 = vsel %vm2220_vm14, %v2222_v62, %v2218_v38  ;;  %vm2232_vm3 = vmor %vm2230_vm1, %vm2231_vm15 }
 0xafb   : > { %v4400_v42 = vmul.f32 %v2223_v41, %v2200_v13  ;;  %v2227_v44 = vsub.f32 1.0, %v2226_v40 }
 0xafd   : > { %v2228_v46 = vmul.f32 %v3586_v36, %v2227_v44  ;;  %2433 = vrot.lane.b32.xlu2 %v4400_v42, %s4731_s5  ;;  %2471 = vrot.lane.b32.xlu1 %v4400_v42, %s4738_s3 }
 0xaff   : > { %v2229_v24 = vadd.f32 %v3586_v36, %v2228_v46 }
 0xb01   : > { %v2233_v61 = vsel %vm2232_vm3, %v3586_v36, %v2229_v24  ;;  %vm2885_vm3 = vcmask 523264  }
 0xb02   : > { %v2238_v55 = vsel %vm2235_vm8, %v2237_v54, %v2233_v61 }
 0xb03   : > { %v4406_v57 = vmul.f32 %v2238_v55, %v2201_v26 }
 0xb05   : > { %2473 = vrot.lane.b32.xlu2 %v4406_v57, %s4738_s3  ;;  %2435 = vrot.lane.b32.xlu0 %v4406_v57, %s4731_s5  ;;  %v3491_v17 = vpack.i.bf16 %v4400_v42, %v4406_v57 }
 0xb06   : > { %2529 = vmatpush.msrb.mxu1 %v4406_v57 }
 0xb08   : > { %2530 = vmatpush.msrb.mxu1 %v4400_v42 }
 0xb3b   : > { %v2286_v53 = vpop.f32.mrf.mxu2 }
 0xb3c   : > { %v4415_v63 = vmul.f32 %v3518_v59, %v2286_v53 }
 0xb3e   : > { %2363 = vperm.xlu1 %3485, %v4415_v63  }
 0xb43   : > { %v2289_v0 = vpop.f32.mrf.mxu2 }
 0xb44   : > { %v4418_v1 = vmul.f32 %v3518_v59, %v2289_v0 }
 0xb46   : > { %3487 = vset.pattern.permute.xlu1 %v3801_v4  ;;  %2368 = vperm.xlu2 %3486, %v4418_v1  }
 0xb47   : > { %2377 = vperm.xlu1 %3487, %v4415_v63  }
 0xb4e   : > { %3488 = vset.pattern.permute.xlu2 %v3802_v5 }
 0xb4f   : > { %2381 = vperm.xlu1 %3487, %v4418_v1   ;;  %2390 = vperm.xlu2 %3488, %v4415_v63  }
 0xb57   : > { %v2434_v2 = vpop.permute.xlu2 %2433  ;;  %3490 = vset.pattern.permute.xlu1 %v3802_v5  ;;  %3489 = vset.pattern.permute.xlu2 %v3803_v6 }
 0xb58   : > { %2439 = vxpose.xlu0.b32.start [1/2] (short) (narrow) %v2434_v2, 16  ;;  %2394 = vperm.xlu1 %3490, %v4418_v1  }
 0xb59   : > { %2403 = vperm.xlu2 %3489, %v4415_v63  }
 0xb5f   : > { %v4449_v33 = vpop.permute.xlu2 %2473 }
 0xb60   : > { %3492 = vrot.lane.b32.xlu1 %v3491_v17, %s4740_s16 }
 0xb68   : > { %3497 = vrot.lane.b32.xlu1 %v3491_v17, %s4717_s13  ;;  %s4742_s13 = sld [smem:[#allocation29_spill]] }
 0xb6f   : > { %v4434_v50 = vpop.permute.xlu1 %2471 }
 0xb70   : > { %3503 = vrot.lane.b32.xlu1 %v3491_v17, %s4741_s8  ;;  %s4743_s8 = sld [smem:[#allocation32_spill]] }
 0xb76   : > { %v2693_v45 = vld [vmem:[%s4743_s8] sm:$0xf]  ;;  %s4550_s8 = sand.u32 1, %s3741_s1  }
 0xb77   : > { %v2436_v22 = vpop.permute.xlu0 %2435 }
 0xb78   : > { %2440 = vxpose.xlu0.b32.end [2/2] (short) (narrow) %v2436_v22, 16 }
 0xb7f   : > { %2297 = vxpose.xlu2.b32.start [1/2] (short) (narrow) %v4415_v63, 8 }
 0xb87   : > { %2298 = vxpose.xlu2.b32.end [2/2] (short) (narrow) %v4418_v1, 8 }
 0xba0   : > { %v2369_v34 = vpop.permute.xlu2 %2368 }
 0xba5   : > { %2329 = vxpose.xlu1.b32.start [1/2] (short) (narrow) %v4383_v52, 8 }
 0xba9   : > { %v2391_v51 = vpop.permute.xlu2 %2390 }
 0xbad   : > { %2330 = vxpose.xlu1.b32.end [2/2] (short) (narrow) %v4376_v49, 8 }
 0xbb0   : > { %v2364_v8 = vpop.permute.xlu1 %2363 }
 0xbb3   : > { %v2404_v60 = vpop.permute.xlu2 %2403 }
 0xbb9   : > { %v2378_v9 = vpop.permute.xlu1 %2377 }
 0xbc1   : > { %v2382_v11 = vpop.permute.xlu1 %2381 }
 0xbca   : > { %v2395_v12 = vpop.permute.xlu1 %2394 }
 0xbd2   : > { %v3493_v13 = vpop.permute.xlu1 %3492 }
 0xbd3   : > { %v3494_v14 = vunpack.i.l.bf16 %v3493_v13  ;;  %v3495_v16 = vunpack.i.h.bf16 %v3493_v13 }
 0xbd5   : > { %2571 = vmatpush.msra.mxu2 %v3494_v14 }
 0xbd7   : > { %2572 = vmatpush.msra.mxu2 %v3495_v16 }
 0xbd9   : > { %3331 = vmatpush.msk.msrb.mxu2 %vm2743_vm4, %v2693_v45 }
 0xbda   : > { %v3498_v19 = vpop.permute.xlu1 %3497 }
 0xbdb   : > { %v3499_v37 = vunpack.i.l.bf16 %v3498_v19  ;;  %v3500_v32 = vunpack.i.h.bf16 %v3498_v19 }
 0xbdf   : > { %3501 = vset.pattern.permute.xlu0 %v3803_v6 }
 0xbe2   : > { %v3504_v23 = vpop.permute.xlu1 %3503 }
 0xbe3   : > { %v3505_v26 = vunpack.i.l.bf16 %v3504_v23  ;;  %v3506_v15 = vunpack.i.h.bf16 %v3504_v23 }
 0xbe5   : > { %2673 = vmatpush.msra.mxu1 %v3505_v26 }
 0xbe6   : > { %2407 = vperm.xlu0 %3501, %v4418_v1  }
 0xbe7   : > { %2674 = vmatpush.msra.mxu1 %v3506_v15 }
 0xbf0   : > { %2711 = vrot.lane.b32.xlu2 %v2705_v29, %s4731_s5  ;;  %s4744_s5 = sshll.u32 %s4028_s26, 4  ;;  %s4745_s26 = smov 16  }
 0xbf1   : > { %s1039_s16 = scalar_lea.vmem %s4742_s13, %s4744_s5  ;;  %s4746_s13 = smov 32  }
 0xbf2   : > { %v4456_v44 = vld [vmem:[%s1039_s16 + $0x8] sm:$0xff]  ;;  %v4459_v46 = vld [vmem:[%s1039_s16] sm:$0xff]  ;;  %s4675_s5 = sshll.u32 %s4550_s8, 4 }
 0xbf3   : > { %s4556_s16 = scalar_lea.vmem [#allocation8], %s4675_s5 }
 0xbf4   : > { %s3072_s12 = sshll.u32 %s4556_s16, 4  ;;  %s4587_s12 = int_to_ptr.vmem [resolvable:$true] %s3072_s12 }
 0xc14   : > { %v4441_v30 = vpop.trf.xlu0 }
 0xc18   : > { %v2313_v35 = vpop.trf.xlu2 }
 0xc19   : > { %v2371_v36 = vperm.slane %v2313_v35, 0  ;;  %v2384_v62 = vperm.slane %v2313_v35, 1  ;;  %v2397_v38 = vperm.slane %v2313_v35, 2  ;;  %v2410_v5 = vperm.slane %v2313_v35, 3 }
 0xc1b   : > { %v2372_v40 = vsub.f32 %v2364_v8, %v2371_v36  ;;  %v2385_v41 = vsub.f32 %v2378_v9, %v2384_v62  ;;  %v2398_v47 = vsub.f32 %v2391_v51, %v2397_v38  ;;  %v2373_v58 = vsub.f32 %v2369_v34, %v2371_v36  ;;  %v2243_v36 = vld [vmem:[%s4739_s15] sm:$0x1] }
 0xc1c   : > { %v4443_v31 = vpop.trf.xlu0  ;;  %v2386_v53 = vsub.f32 %v2382_v11, %v2384_v62  ;;  %v2399_v4 = vsub.f32 %v2395_v12, %v2397_v38  ;;  %v2411_v8 = vsub.f32 %v2404_v60, %v2410_v5 }
 0xc1d   : > { %2493 = vmatpush.msra.mxu3 %v4443_v31  ;;  %v2374_v24 = vsel %vm4372_vm7, %v2372_v40, 0.0  ;;  %v2387_v54 = vsel %vm4372_vm7, %v2385_v41, 0.0  ;;  %v2400_v61 = vsel %vm4372_vm7, %v2398_v47, 0.0  ;;  %v2375_v2 = vsel %vm4388_vm10, %v2373_v58, 0.0 }
 0xc1e   : > { %v2415_v55 = vmul.f32 1.442695, %v2374_v24  ;;  %v2419_v59 = vmul.f32 1.442695, %v2387_v54  ;;  %v2423_v0 = vmul.f32 1.442695, %v2400_v61 }
 0xc1f   : > { %2494 = vmatpush.msra.mxu3 %v4441_v30  ;;  %v2388_v6 = vsel %vm4388_vm10, %v2386_v53, 0.0  ;;  %v2401_v17 = vsel %vm4388_vm10, %v2399_v4, 0.0  ;;  %v2417_v22 = vmul.f32 1.442695, %v2375_v2  ;;  %v2413_v26 = vsel %vm4372_vm7, %v2411_v8, 0.0 }
 0xc20   : > { %3321 = vmatmul.msk.f32.vlgmr.msra.gmra.mxu3 %vm1396_vm9, %v4434_v50  ;;  %3587 = vpow2.f32 %v2415_v55  ;;  %v2421_v11 = vmul.f32 1.442695, %v2388_v6  ;;  %v2425_v12 = vmul.f32 1.442695, %v2401_v17  ;;  %v2427_v34 = vmul.f32 1.442695, %v2413_v26 }
 0xc21   : > { %2622 = vmatpush.msrb.mxu3 %v3499_v37  ;;  %3589 = vpow2.f32 %v2419_v59  ;;  %v2706_v61 = vmul.f32 1.442695, %v4415_v63  ;;  %v2708_v2 = vmul.f32 1.442695, %v4418_v1  ;;  %vm2639_vm7 = vcmask 392448  }
 0xc22   : > { %3591 = vpow2.f32 %v2423_v0 }
 0xc23   : > { %2623 = vmatpush.msrb.mxu3 %v3500_v32  ;;  %3593 = vpow2.f32 %v2417_v22 }
 0xc24   : > { %3595 = vpow2.f32 %v2421_v11 }
 0xc25   : > { %2784 = vmatpush.msra.mxu3 %v4456_v44  ;;  %3597 = vpow2.f32 %v2425_v12 }
 0xc26   : > { %v3588_v13 = vpop.eup %3587  ;;  %3599 = vpow2.f32 %v2427_v34 }
 0xc27   : > { %2785 = vmatpush.msra.mxu3 %v4459_v46  ;;  %v3590_v16 = vpop.eup %3589  ;;  %3601 = vpow2.f32 %v2706_v61 }
 0xc28   : > { %3322 = vmatmul.msk.f32.gmra.mxu3 %vm1396_vm9, %v4449_v33  ;;  %v3592_v23 = vpop.eup %3591 }
 0xc29   : > { %v3594_v60 = vpop.eup %3593 }
 0xc2a   : > { %v3596_v35 = vpop.eup %3595 }
 0xc2b   : > { %v3598_v40 = vpop.eup %3597 }
 0xc49   : > { %v4476_v9 = vpop.trf.xlu1 }
 0xc4a   : > { %v2506_v19 = vperm.slane %v4476_v9, 0  ;;  %v2542_v25 = vperm.slane %v4476_v9, 1  ;;  %v2593_v20 = vperm.slane %v4476_v9, 2  ;;  %v2712_v62 = vpop.permute.xlu2 %2711  ;;  %v2644_v4 = vperm.slane %v4476_v9, 3 }
 0xc4b   : > { %v2714_v55 = vmul.f32 %v2712_v62, %v2243_v36 }
 0xc58   : > { %v2408_v29 = vpop.permute.xlu0 %2407 }
 0xc59   : > { %v2412_v51 = vsub.f32 %v2408_v29, %v2410_v5 }
 0xc5b   : > { %v2414_v41 = vsel %vm4388_vm10, %v2412_v51, 0.0 }
 0xc5c   : > { %v2429_v0 = vmul.f32 1.442695, %v2414_v41 }
 0xc5e   : > { %3603 = vpow2.f32 %v2429_v0 }
 0xc5f   : > { %3605 = vpow2.f32 %v2708_v2 }
 0xca3   : > { %v2496_v14 = vpop.f32.mrf.mxu3 }
 0xca4   : > { %v2502_v18 = vmul.f32 %v4381_v39, %v2496_v14 }
 0xca6   : > { %v2504_v15 = vmul.f32 %v3588_v13, %v2502_v18  ;;  %v2540_v27 = vmul.f32 %v3590_v16, %v2502_v18  ;;  %v2591_v56 = vmul.f32 %v3592_v23, %v2502_v18 }
 0xca8   : > { %v2507_v37 = vmul.f32 %v2506_v19, %v2504_v15  ;;  %v2543_v39 = vmul.f32 %v2542_v25, %v2540_v27  ;;  %v2594_v32 = vmul.f32 %v2593_v20, %v2591_v56 }
 0xcaa   : > { %3323 = vmatmul.msk.f32.vlgmr.msrb.gmra.mxu1 %vm1396_vm9, %v2507_v37  ;;  %3325 = vmatmul.msk.f32.vlgmr.msra.gmra.mxu2 %vm1396_vm9, %v2543_v39  ;;  %v3343_v39 = vmul.f32 -1.442695, %v4340_v3 }
 0xcab   : > { %3327 = vmatmul.msk.f32.vlgmr.msrb.gmra.mxu3 %vm1396_vm9, %v2594_v32  ;;  %v2499_v48 = vpop.f32.mrf.mxu3  ;;  %3336 = vmatpush.msk.msrb.mxu1 %vm2743_vm4, %v2693_v45  ;;  %v3344_v32 = vmul.f32 -1.442695, %v4345_v7 }
 0xcac   : > { %v2503_v38 = vmul.f32 %v4394_v43, %v2499_v48  ;;  %3339 = vmatpush.msk.msra.mxu2 %vm2743_vm4, %v2693_v45  ;;  %v3600_v43 = vpop.eup %3599  ;;  %v2716_v45 = vperm.slane %v2714_v55, 0 }
 0xcad   : > { %v2642_v10 = vmul.f32 %v3600_v43, %v2502_v18  ;;  %v3602_v17 = vpop.eup %3601 }
 0xcae   : > { %v2505_v47 = vmul.f32 %v3594_v60, %v2503_v38  ;;  %v2541_v24 = vmul.f32 %v3596_v35, %v2503_v38  ;;  %v2592_v54 = vmul.f32 %v3598_v40, %v2503_v38  ;;  %v2718_v5 = vsub.f32 %v2716_v45, %v4415_v63  ;;  %v3604_v22 = vpop.eup %3603 }
 0xcaf   : > { %v2645_v6 = vmul.f32 %v2644_v4, %v2642_v10  ;;  %v2643_v11 = vmul.f32 %v3604_v22, %v2503_v38  ;;  %v2719_v9 = vsub.f32 %v2716_v45, %v4418_v1  ;;  %v2724_v63 = vmul.f32 1.442695, %v2714_v55  ;;  %v3606_v12 = vpop.eup %3605 }
 0xcb0   : > { %v2508_v58 = vmul.f32 %v2506_v19, %v2505_v47  ;;  %v2544_v59 = vmul.f32 %v2542_v25, %v2541_v24  ;;  %v2595_v53 = vmul.f32 %v2593_v20, %v2592_v54  ;;  %v2720_v8 = vmul.f32 1.442695, %v2718_v5 }
 0xcb1   : > { %v2646_v13 = vmul.f32 %v2644_v4, %v2643_v11  ;;  %v2722_v14 = vmul.f32 1.442695, %v2719_v9 }
 0xcb2   : > { %3324 = vmatmul.msk.f32.gmra.mxu1 %vm1396_vm9, %v2508_v58  ;;  %3326 = vmatmul.msk.f32.gmra.mxu2 %vm1396_vm9, %v2544_v59  ;;  %3607 = vpow2.f32 %v2720_v8 }
 0xcb3   : > { %3328 = vmatmul.msk.f32.gmra.mxu3 %vm1396_vm9, %v2595_v53  ;;  %3609 = vpow2.f32 %v2724_v63 }
 0xcb4   : > { %3611 = vpow2.f32 %v2722_v14 }
 0xcb5   : > { %3613 = vpow2.f32 %v3343_v39 }
 0xcb6   : > { %3615 = vpow2.f32 %v3344_v32 }
 0xcb8   : > { %v3608_v16 = vpop.eup %3607 }
 0xcb9   : > { %v3610_v18 = vpop.eup %3609 }
 0xcba   : > { %3329 = vmatmul.msk.f32.vlgmr.msra.gmra.mxu1 %vm1396_vm9, %v2645_v6  ;;  %3332 = vmatmul.msk.f32.vlgmr.msrb.gmra.mxu2 %vm2736_vm5, %v3602_v17  ;;  %v3612_v1 = vpop.eup %3611 }
 0xcbb   : > { %3334 = vmatmul.msk.f32.vlgmr.msra.gmra.mxu3 %vm1396_vm9, %v4434_v50  ;;  %v2797_v50 = vmul.f32 %v3608_v16, %v4383_v52  ;;  %v2798_v19 = vmul.f32 %v3612_v1, %v4376_v49  ;;  %v3614_v34 = vpop.eup %3613 }
 0xcbc   : > { %v2894_v51 = vadd.f32 1.0, %v3614_v34  ;;  %v3616_v60 = vpop.eup %3615 }
 0xcbd   : > { %v2895_v36 = vadd.f32 1.0, %v3616_v60 }
 0xcbe   : > { %3617 = vrcp.f32 %v2894_v51  ;;  %v2907_v61 = vand.u32 2147483648, %v2894_v51  ;;  %vm2901_vm11 = vweird.f32 %v2894_v51  ;;  %v2905_v59 = vand.u32 2147483647, %v2894_v51 }
 0xcbf   : > { %3619 = vrcp.f32 %v2895_v36  ;;  %vm2916_vm15 = vweird.f32 %v2895_v36 }
 0xcc0   : > { %v2908_v45 = vor.u32 1.1754944e-38, %v2907_v61  ;;  %vm2906_vm13 = vcmp.eq.f32.partialorder %v2905_v59, 8.507059e+37 }
 0xcc2   : > { %3330 = vmatmul.msk.f32.gmra.mxu1 %vm1396_vm9, %v2646_v13  ;;  %3333 = vmatmul.msk.f32.gmra.mxu2 %vm2736_vm5, %v3606_v12  ;;  %v2922_v13 = vand.u32 2147483648, %v2895_v36  ;;  %v2920_v12 = vand.u32 2147483647, %v2895_v36 }
 0xcc3   : > { %3335 = vmatmul.msk.f32.gmra.mxu3 %vm1396_vm9, %v4449_v33 }
 0xcc4   : > { %v2923_v1 = vor.u32 1.1754944e-38, %v2922_v13  ;;  %vm2921_vm8 = vcmp.eq.f32.partialorder %v2920_v12, 8.507059e+37 }
 0xcca   : > { %3337 = vmatmul.msk.f32.vlgmr.msrb.gmra.mxu1 %vm2736_vm5, %v2797_v50  ;;  %3340 = vmatmul.msk.f32.vlgmr.msra.gmra.mxu2 %vm2736_vm5, %v3610_v18 }
 0xcd2   : > { %3338 = vmatmul.msk.f32.gmra.mxu1 %vm2736_vm5, %v2798_v19 }
 0xd27   : > { %v2532_v25 = vpop.f32.mrf.mxu1 }
 0xd28   : > { %2538 = vst.msk [vmem:[#allocation3] sm:$0xff] %vm1396_vm9, %v2532_v25 }
 0xd2d   : > { %v2574_v20 = vpop.f32.mrf.mxu2 }
 0xd2e   : > { %v2625_v23 = vpop.f32.mrf.mxu3  ;;  %2582 = vrot.lane.b32.xlu1 %v2574_v20, %s4745_s26 }
 0xd2f   : > { %2633 = vrot.lane.b32.xlu0 %v2625_v23, %s4746_s13  ;;  %v2535_v52 = vpop.f32.mrf.mxu1 }
 0xd30   : > { %2539 = vst.msk [vmem:[#allocation3 + $0x8] sm:$0xff] %vm1396_vm9, %v2535_v52 }
 0xd35   : > { %v2577_v33 = vpop.f32.mrf.mxu2 }
 0xd36   : > { %v2628_v15 = vpop.f32.mrf.mxu3 }
 0xd37   : > { %2584 = vrot.lane.b32.xlu0 %v2577_v33, %s4745_s26  ;;  %v2676_v26 = vpop.f32.mrf.mxu1  ;;  %s4748_s26 = sld [smem:[#allocation33_spill]] }
 0xd3d   : > { %v2764_v53 = vpop.f32.mrf.mxu2 }
 0xd3e   : > { %v2787_v0 = vpop.f32.mrf.mxu3 }
 0xd3f   : > { %2684 = vrot.lane.b32.xlu0 %v2676_v26, %s4738_s3  ;;  %v2679_v49 = vpop.f32.mrf.mxu1  ;;  %v2793_v17 = vmul.f32 %v2787_v0, %v2764_v53 }
 0xd40   : > { %2686 = vrot.lane.b32.xlu2 %v2679_v49, %s4738_s3  ;;  %s4747_s3 = sld [smem:[#allocation31_spill]] }
 0xd45   : > { %v2767_v16 = vpop.f32.mrf.mxu2 }
 0xd46   : > { %v3519_v58 = vld [vmem:[%s4747_s3] ss:$0 sm:$0xff]  ;;  %v2790_v50 = vpop.f32.mrf.mxu3  ;;  %s3352_s3 = sshll.u32 %s3997_s0, 3 }
 0xd47   : > { %2635 = vrot.lane.b32.xlu0 %v2628_v15, %s4746_s13  ;;  %v2822_v27 = vpop.f32.mrf.mxu1  ;;  %v2732_v4 = vmul.f32 %v3519_v58, %v4400_v42  ;;  %v2733_v19 = vmul.f32 %v3519_v58, %v4406_v57  ;;  %v2794_v23 = vmul.f32 %v2790_v50, %v2767_v16  ;;  %v2104_v58 = vld [vmem:[%s4730_s9 + $0x40] sm:$0xff]  ;;  %s3261_s13 = sshll.u32 %s4550_s8, 3  ;;  %s3056_s5 = scalar_lea.hbm %s3969_s20, %s3352_s3 }
 0xd48   : > { %v2828_v37 = vmul.f32 %v2822_v27, %v4400_v42  ;;  %3314 = vmatmul.msk.f32.gmra.mxu0 %vm2105_vm2, %v2104_v58  ;;  %s1018_s9 = scalar_lea.vmem [#allocation6], %s3261_s13  ;;  %s3060_s15 = sshll.u32 %s3056_s5, 4  ;;  %s3061_s15 = int_to_ptr.hbm [resolvable:$true] %s3060_s15 }
 0xd49   : > { %s3058_s10 = sshll.u32 %s1018_s9, 4  ;;  %s4591_s3 = scalar_lea.sflag [#allocation7], %s3023_s14  ;;  %s3059_s10 = int_to_ptr.vmem [resolvable:$true] %s3058_s10 }
 0xd4a   : > { %s3647_s5 = scalar_lea.hbm %s3969_s20, 16 }
 0xd4f   : > { %v2825_v56 = vpop.f32.mrf.mxu1 }
 0xd50   : > { %v2829_v29 = vmul.f32 %v2825_v56, %v4406_v57  ;;  %v2850_v57 = vpop.f32.mrf.mxu2 }
 0xd51   : > { %v2853_v56 = vperm.slane %v2850_v57, 0 }
 0xd52   : > { %2876 = vmatpush.msrb.mxu3 %v2829_v29 }
 0xd53   : > { %v2854_v29 = vmul.f32 %v2853_v56, %v4459_v46  ;;  %v2855_v39 = vmul.f32 %v2853_v56, %v4456_v44  ;;  %v3804_v46 = vmov 64.0  }
 0xd54   : > { %2877 = vmatpush.msrb.mxu3 %v2828_v37  ;;  %3621 = vrcp.f32 %v3804_v46 }
 0xd55   : > { %3341 = vmatmul.msk.f32.vlgmr.msrb.gmra.mxu3 %vm1396_vm9, %v4441_v30  ;;  %v3618_v30 = vpop.eup %3617 }
 0xd56   : > { %v3620_v40 = vpop.eup %3619  ;;  %vm2902_vm10 = vweird.f32 %v3618_v30 }
 0xd57   : > { %v2912_v47 = vmul.f32 %v3620_v40, %v2895_v36  ;;  %vm2903_vm12 = vmor %vm2901_vm11, %vm2902_vm10  ;;  %vm2917_vm14 = vweird.f32 %v3620_v40  ;;  %v2983_v36 = vld [vmem:[%s4709_s4 + $0x30] sm:$0xff] }
 0xd58   : > { %vm2918_vm1 = vmor %vm2916_vm15, %vm2917_vm14 }
 0xd59   : > { %v2913_v55 = vsub.f32 1.0, %v2912_v47  ;;  %v2977_v47 = vld [vmem:[%s4709_s4] sm:$0xff] }
 0xd5b   : > { %v2914_v10 = vmul.f32 %v3620_v40, %v2913_v55 }
 0xd5d   : > { %3342 = vmatmul.msk.f32.gmra.mxu3 %vm1396_vm9, %v4443_v31  ;;  %v2897_v31 = vmul.f32 %v3618_v30, %v2894_v51  ;;  %vm2690_vm9 = vcmask 523648   ;;  %v2915_v11 = vadd.f32 %v3620_v40, %v2914_v10  ;;  %v3622_v51 = vpop.eup %3621 }
 0xd5e   : > { %v2940_v60 = vmul.f32 64.0, %v3622_v51  ;;  %vm2944_vm4 = vweird.f32 %v3622_v51 }
 0xd5f   : > { %v2898_v38 = vsub.f32 1.0, %v2897_v31  ;;  %v2919_v14 = vsel %vm2918_vm1, %v3620_v40, %v2915_v11  ;;  %v2981_v31 = vld [vmem:[%s4709_s4 + $0x20] sm:$0xff]  ;;  %v2979_v40 = vld [vmem:[%s4709_s4 + $0x10] sm:$0xff] }
 0xd60   : > { %v2924_v20 = vsel %vm2921_vm8, %v2923_v1, %v2919_v14 }
 0xd61   : > { %v2899_v41 = vmul.f32 %v3618_v30, %v2898_v38  ;;  %v2927_v26 = vmul.f32 %v2924_v20, %v4345_v7 }
 0xd63   : > { %v2900_v54 = vadd.f32 %v3618_v30, %v2899_v41  ;;  %v2978_v41 = vld [vmem:[%s4709_s4 + $0x8] sm:$0xff] }
 0xd65   : > { %v2904_v43 = vsel %vm2903_vm12, %v3618_v30, %v2900_v54  ;;  %v2982_v30 = vld [vmem:[%s4709_s4 + $0x28] sm:$0xff] }
 0xd66   : > { %v2909_v6 = vsel %vm2906_vm13, %v2908_v45, %v2904_v43 }
 0xd67   : > { %v2926_v63 = vmul.f32 %v2909_v6, %v4340_v3 }
 0xd9a   : > { %v2687_v22 = vpop.permute.xlu2 %2686 }
 0xda0   : > { %v2583_v48 = vpop.permute.xlu1 %2582 }
 0xda1   : > { %2589 = vst.msk [vmem:[#allocation3] sm:$0xff] %vm2588_vm6, %v2583_v48  ;;  %v2634_v35 = vpop.permute.xlu0 %2633  ;;  %v2984_v48 = vld [vmem:[%s4709_s4 + $0x38] sm:$0xff] }
 0xda2   : > { %2640 = vst.msk [vmem:[#allocation3] sm:$0xff] %vm2639_vm7, %v2634_v35  ;;  %v2941_v35 = vsub.f32 1.0, %v2940_v60  ;;  %2999 = vmatpush.msra.mxu1 %v2984_v48 }
 0xda4   : > { %3000 = vmatpush.msra.mxu1 %v2983_v36  ;;  %v2942_v44 = vmul.f32 %v3622_v51, %v2941_v35 }
 0xda6   : > { %3001 = vmatpush.msra.mxu1 %v2982_v30  ;;  %v2943_v38 = vadd.f32 %v3622_v51, %v2942_v44 }
 0xda8   : > { %3002 = vmatpush.msra.mxu1 %v2981_v31 }
 0xda9   : > { %v2585_v62 = vpop.permute.xlu0 %2584 }
 0xdaa   : > { %2590 = vst.msk [vmem:[#allocation3 + $0x8] sm:$0xff] %vm2588_vm6, %v2585_v62  ;;  %v2980_v62 = vld [vmem:[%s4709_s4 + $0x18] sm:$0xff] }
 0xdab   : > { %3003 = vmatpush.msra.mxu1 %v2980_v62 }
 0xdad   : > { %3004 = vmatpush.msra.mxu1 %v2979_v40 }
 0xdaf   : > { %3005 = vmatpush.msra.mxu1 %v2978_v41 }
 0xdb1   : > { %v2685_v24 = vpop.permute.xlu0 %2684  ;;  %3006 = vmatpush.msra.mxu1 %v2977_v47 }
 0xdb2   : > { %2691 = vst.msk [vmem:[#allocation3] sm:$0xff] %vm2690_vm9, %v2685_v24  ;;  %v2945_v24 = vsel %vm2944_vm4, %v3622_v51, %v2943_v38 }
 0xdb9   : > { %v2636_v5 = vpop.permute.xlu0 %2635  ;;  %v2726_v2 = vld [vmem:[#allocation3] sm:$0xff] }
 0xdba   : > { %2641 = vst.msk [vmem:[#allocation3 + $0x8] sm:$0xff] %vm2639_vm7, %v2636_v5  ;;  %v2734_v8 = vadd.f32 %v2732_v4, %v2726_v2 }
 0xdbb   : > { %2692 = vst.msk [vmem:[#allocation3 + $0x8] sm:$0xff] %vm2690_vm9, %v2687_v22 }
 0xdbc   : > { %v2795_v9 = vadd.f32 %v2793_v17, %v2734_v8  ;;  %v3520_v17 = vld [vmem:[%s4748_s26] ss:$0 sm:$0xff]  ;;  %s4682_s26 = sshll.u32 %s3997_s0, 4 }
 0xdbd   : > { %s3071_s4 = scalar_lea.hbm %s3974_s27, %s4682_s26  ;;  %s3641_s26 = sshra.s32 %s3061_s15, 4  ;;  %s3642_s26 = int_to_ptr.hbm [resolvable:$true] %s3641_s26 }
 0xdbe   : > { %v4537_v42 = vmul.f32 %v2926_v63, %v2795_v9  ;;  %s3074_s17 = sshll.u32 %s3071_s4, 4  ;;  %s3643_s13 = scalar_lea.hbm %s3642_s26, 8  ;;  %s4589_s17 = int_to_ptr.hbm [resolvable:$true] %s3074_s17 }
 0xdbf   : > { %p3644_p11 = scmp.ne.s32.totalorder %s3642_s26, %s3643_s13  ;;  %p3648_p0 = scmp.lt.s32.totalorder %s3642_s26, %s3969_s20 }
 0xdc0   : > { %v2931_v18 = vmul.f32 %v4537_v42, %v4537_v42  ;;  %p3649_p1 = scmp.lt.s32.totalorder %s3647_s5, %s3643_s13 }
 0xdc1   : > { %p3645_p12 = pnand %p3644_p11, %p4016_p5 }
 0xdc2   : > { %v2933_v3 = vsel %vm2885_vm3, %v2931_v18, 0.0  ;;  %v2727_v25 = vld [vmem:[#allocation3 + $0x8] sm:$0xff]  ;;  %p3650_p2 = por %p3649_p1, %p3648_p0 }
 0xdc3   : > { %2934 = vadd.xlane.f32.xlu0 %v2933_v3  ;;  %v2735_v52 = vadd.f32 %v2733_v19, %v2727_v25  ;;  %p3646_p13 = pneg %p3645_p12 }
 0xdc5   : > { %v2796_v33 = vadd.f32 %v2794_v23, %v2735_v52  ;;  %v2174_v18 = vpop.f32.mrf.mxu0  ;;  %p3651_p3 = pnand %p3650_p2, %p3646_p13 }
 0xdc6   : > { %2242 = vst [vmem:[%s1018_s9] sm:$0xff] %v2174_v18 }
 0xdc7   : > { %v4544_v49 = vmul.f32 %v2927_v26, %v2796_v33 }
 0xdc9   : > { %v2932_v15 = vmul.f32 %v4544_v49, %v4544_v49 }
 0xdcb   : > { %v2936_v27 = vsel %vm2885_vm3, %v2932_v15, 0.0 }
 0xdcc   : > { %2937 = vadd.xlane.f32.xlu2 %v2936_v27 }
 0xdd8   : > { %v2879_v7 = vpop.f32.mrf.mxu3 }
 0xdd9   : > { %v2880_v37 = vadd.f32 %v2879_v7, %v2854_v29 }
 0xddb   : > { %2886 = vst.msk [vmem:[%s4556_s16] sm:$0xff] %vm2885_vm3, %v2880_v37 }
 0xde0   : > { %v2882_v32 = vpop.f32.mrf.mxu3 }
 0xde1   : > { %v2883_v34 = vadd.f32 %v2882_v32, %v2855_v39 }
 0xde3   : > { %2887 = vst.msk [vmem:[%s4556_s16 + $0x8] sm:$0xff] %vm2885_vm3, %v2883_v34 }
 0xe36   : > { %v2935_v54 = vpop.xlane.xlu0 %2934 }
 0xe37   : > { %v2946_v61 = vmul.f32 %v2945_v24, %v2935_v54 }
 0xe39   : > { %v2948_v55 = vadd.f32 1e-05, %v2946_v61 }
 0xe3b   : > { %3623 = vrsqrt.f32 %v2948_v55  ;;  %vm2956_vm6 = vweird.f32 %v2948_v55 }
 0xe3f   : > { %v2938_v59 = vpop.xlane.xlu2 %2937 }
 0xe40   : > { %v2947_v53 = vmul.f32 %v2945_v24, %v2938_v59 }
 0xe41   : > { %v3624_v0 = vpop.eup %3623 }
 0xe42   : > { %v2951_v43 = vmul.f32 %v3624_v0, %v2948_v55  ;;  %v2949_v45 = vadd.f32 1e-05, %v2947_v53  ;;  %vm2957_vm5 = vweird.f32 %v3624_v0 }
 0xe43   : > { %vm2958_vm7 = vmor %vm2956_vm6, %vm2957_vm5 }
 0xe44   : > { %v2952_v10 = vmul.f32 %v3624_v0, %v2951_v43  ;;  %3625 = vrsqrt.f32 %v2949_v45  ;;  %vm2966_vm9 = vweird.f32 %v2949_v45 }
 0xe46   : > { %v2953_v4 = vmul.f32 0.5, %v2952_v10 }
 0xe48   : > { %v2954_v5 = vsub.f32 1.5, %v2953_v4 }
 0xe4a   : > { %v3626_v2 = vpop.eup %3625  ;;  %v2955_v6 = vmul.f32 %v3624_v0, %v2954_v5 }
 0xe4b   : > { %v2961_v22 = vmul.f32 %v3626_v2, %v2949_v45  ;;  %vm2967_vm2 = vweird.f32 %v3626_v2 }
 0xe4c   : > { %v2959_v8 = vsel %vm2958_vm7, %v3624_v0, %v2955_v6  ;;  %vm2968_vm10 = vmor %vm2966_vm9, %vm2967_vm2 }
 0xe4d   : > { %v2970_v11 = vmul.f32 %v2959_v8, %v4537_v42  ;;  %v2962_v9 = vmul.f32 %v3626_v2, %v2961_v22 }
 0xe4f   : > { %v2975_v63 = vmul.f32 %v3520_v17, %v2970_v11  ;;  %v2963_v13 = vmul.f32 0.5, %v2962_v9 }
 0xe51   : > { %v2964_v12 = vsub.f32 1.5, %v2963_v13  ;;  %3345 = vmatmul.msk.f32.vlgmr.msra.gmra.mxu1 %vm2885_vm3, %v2975_v63 }
 0xe53   : > { %v2965_v14 = vmul.f32 %v3626_v2, %v2964_v12 }
 0xe55   : > { %v2969_v16 = vsel %vm2968_vm10, %v3626_v2, %v2965_v14 }
 0xe56   : > { %v2971_v50 = vmul.f32 %v2969_v16, %v4544_v49 }
 0xe58   : > { %v2976_v42 = vmul.f32 %v3520_v17, %v2971_v50 }
 0xe5a   : > { %3346 = vmatmul.msk.f32.gmra.mxu1 %vm2885_vm3, %v2976_v42 }
 0xe5b   : > { %3654 = shalt.err (!%p3651_p3)
}
 0xe5c   : > { %3362 = dma.vmem_to_hbm [thread:$0]  (%p4016_p5), %s3059_s10, 128, %s3061_s15, %s4591_s3  }
 0xe5d   : > { %s3669_s14 = sshra.s32 %s4589_s17, 4  ;;  %s3675_s9 = scalar_lea.hbm %s3974_s27, 32  ;;  %s3670_s14 = int_to_ptr.hbm [resolvable:$true] %s3669_s14 }
 0xe5e   : > { %s3671_s4 = scalar_lea.hbm %s3670_s14, 16  ;;  %p3676_p9 = scmp.lt.s32.totalorder %s3670_s14, %s3974_s27 }
 0xe5f   : > { %p3672_p4 = scmp.ne.s32.totalorder %s3670_s14, %s3671_s4  ;;  %p3677_p10 = scmp.lt.s32.totalorder %s3675_s9, %s3671_s4 }
 0xe61   : > { %p3673_p7 = pnand %p3672_p4, %p4016_p5  ;;  %p3678_p11 = por %p3677_p10, %p3676_p9 }
 0xe63   : > { %p3674_p8 = pneg %p3673_p7 }
 0xe65   : > { %p3679_p12 = pnand %p3678_p11, %p3674_p8 }
 0xe67   : > { %3682 = shalt.err (!%p3679_p12)
}
 0xe68   : > { %s3805_s16 = smov 128   ;;  %s4749_s26 = smov 8  }
 0xe69   : > { %3363 = dma.vmem_to_hbm [thread:$0]  (%p4016_p5), %s4587_s12, 256, %s4589_s17, %s4591_s3, %s3805_s16, %s3805_s16, %s4749_s26  }
 0xe6a   : > { %s4750_s10 = sshll.u32 %s4550_s8, 4  ;;  %s4751_s13 = sshll.u32 %s3997_s0, 4 }
 0xe6b   : > { %s1011_s15 = scalar_lea.vmem [#allocation4], %s4750_s10  ;;  %s3040_s5 = scalar_lea.hbm %s3964_s6, %s4751_s13 }
 0xe6c   : > { %s3041_s14 = sshll.u32 %s1011_s15, 4  ;;  %s3043_s4 = sshll.u32 %s3040_s5, 4  ;;  %s3042_s14 = int_to_ptr.vmem [resolvable:$true] %s3041_s14  ;;  %s3044_s4 = int_to_ptr.hbm [resolvable:$true] %s3043_s4 }
 0xe6d   : > { %s3019_s17 = scalar_lea.sflag [#allocation5], %s4550_s8  ;;  %s3697_s12 = sshra.s32 %s3044_s4, 4  ;;  %s3698_s12 = int_to_ptr.hbm [resolvable:$true] %s3697_s12 }
 0xe6e   : > { %s3699_s3 = scalar_lea.hbm %s3698_s12, 16  ;;  %s3703_s0 = scalar_lea.hbm %s3964_s6, 32 }
 0xe6f   : > { %p3700_p13 = scmp.ne.s32.totalorder %s3698_s12, %s3699_s3  ;;  %p3704_p2 = scmp.lt.s32.totalorder %s3698_s12, %s3964_s6 }
 0xe70   : > { %p3705_p3 = scmp.lt.s32.totalorder %s3703_s0, %s3699_s3 }
 0xe71   : > { %p3701_p0 = pnand %p3700_p13, %p4016_p5 }
 0xe72   : > { %p3706_p4 = por %p3705_p3, %p3704_p2 }
 0xe73   : > { %p3702_p1 = pneg %p3701_p0 }
 0xe75   : > { %p3707_p7 = pnand %p3706_p4, %p3702_p1 }
 0xece   : > { %v3008_v1 = vpop.f32.mrf.mxu1 }
 0xecf   : > { %v3014_v19 = vadd.f32 %v3008_v1, %v4311_v21 }
 0xed1   : > { %3016 = vst.msk [vmem:[%s1011_s15] sm:$0xff] %vm1044_vm0, %v3014_v19 }
 0xed7   : > { %v3011_v3 = vpop.f32.mrf.mxu1 }
 0xed8   : > { %v3015_v25 = vadd.f32 %v3011_v3, %v4317_v28 }
 0xeda   : > { %3017 = vst.msk [vmem:[%s1011_s15 + $0x8] sm:$0xff] %vm1044_vm0, %v3015_v25 }
 0xedb   : > { %3710 = shalt.err (!%p3707_p7)
}
 0xedc   : > { %3361 = dma.vmem_to_hbm [thread:$0]  (%p4016_p5), %s3042_s14, 256, %s3044_s4, %s3019_s17, %s3805_s16, %s3805_s16, %s4749_s26  }
 0xedd PF: > { %p3377_p8 = scmp.ge.s32.totalorder %s3749_s7, 2  ;;  %s3089_s8 = sand.u32 1, %s3737_s28  }
 0xede   : > { %s3090_s9 = scalar_lea.sflag [#allocation5], %s3089_s8 }
 0xedf   : > { %p3368_p9 = pnand %p3377_p8, %p4020_p6 }
 0xee1   : > { %p3369_p10 = pneg %p3368_p9 }
 0xee3   : > { %3728 = dma.done.wait (%p3369_p10), %s3090_s9, 256  }
 0xee4   : > { %3730 = vsyncadd (%p3369_p10), %s3090_s9, 4294967040  ;;  %s4752_s10 = sadd.s32 4294967294, %s3749_s7  }
 0xee5   : > { %s3099_s15 = sand.u32 1, %s4752_s10  }
 0xee6   : > { %s3100_s22 = scalar_lea.sflag [#allocation7], %s3099_s15 }
 0xee7   : > { %3732 = dma.done.wait (%p3369_p10), %s3100_s22, 384  }
 0xee8   : > { %3734 = vsyncadd (%p3369_p10), %s3100_s22, 4294966912  ;;  %p79_p5 = scmp.ge.s32.totalorder %s4001_s11, 4   ;;  %s4753_s28 = smov %s3741_s1 }
 0xee9   : > { %s4754_s1 = smov %s3745_s2  ;;  %s4755_s2 = smov %s4014_s18 }
 0xeea   : > { %s4756_s7 = smov %s4001_s11  ;;  %81 = sbr.rel (!%p79_p5) target bundleno = 70 (0x46), region = 245 }
 0xeef   :  { %3116 = vsyncpa [#allocation5], 1 }
 0xef0   :  { %3118 = vsyncpa [#allocation5 + $0x1], 1 }
 0xef1   :  { %3119 = vsyncpa [#allocation7], 1 }
 0xef2   :  { %3121 = vsyncpa [#allocation7 + $0x1], 1 }

</bundles_post_ra>
